<compile_context>
chip_gen: v7x
topology: tpu7x:2x2x1
jax: 0.10.0
libtpu: 0.0.40
codegen_flags: <defaults>
</compile_context>

<pallas_src>
import functools
import numpy as np
import jax
import jax.numpy as jnp
from jax.experimental import pallas as pl
from jax.experimental.pallas import tpu as pltpu


# ----------------------------------------------------------------------------
# Small helpers
# ----------------------------------------------------------------------------

def _round_up(n, m):
    return ((n + m - 1) // m) * m


def _ln(x, g, b, eps):
    """LayerNorm in f32 (statistics along the lane dim)."""
    mu = jnp.mean(x, axis=-1, keepdims=True)
    xc = x - mu
    var = jnp.mean(xc * xc, axis=-1, keepdims=True)
    return xc * jax.lax.rsqrt(var + eps) * g + b


# Order in which per-layer (stacked) parameters are passed to the kernel.
_PARAM_ORDER = ('ln1_g', 'ln1_b', 'qkv_w', 'qkv_b', 'proj_w', 'proj_b',
                'ln2_g', 'ln2_b', 'fc1_w', 'fc1_b', 'fc2_w', 'fc2_b')


# ----------------------------------------------------------------------------
# Bookend dense kernel (patchify / decoder head)
# ----------------------------------------------------------------------------

def _dense_kernel(x_ref, w_ref, b_ref, o_ref):
    y = jnp.dot(x_ref[...].astype(jnp.bfloat16), w_ref[...],
                preferred_element_type=jnp.float32) + b_ref[...]
    o_ref[...] = y.astype(o_ref.dtype)


def dense(x, w, b, block_rows=256):
    """y = x @ w + b.  K and N are zero-padded to lane-dense multiples of 128
    (results unchanged); weight/bias use constant index_maps so they stay
    resident in VMEM across row-block grid steps."""
    M, K = x.shape
    _, N = w.shape
    Kp = _round_up(K, 128)
    Np = _round_up(N, 128)
    if Kp != K:
        x = jnp.pad(x, ((0, 0), (0, Kp - K)))
        w = jnp.pad(w, ((0, Kp - K), (0, 0)))
    if Np != N:
        w = jnp.pad(w, ((0, 0), (0, Np - N)))
        b = jnp.pad(b, ((0, 0), (0, Np - N)))
    tm = block_rows if (M > block_rows and M % block_rows == 0) else M
    out = pl.pallas_call(
        _dense_kernel,
        out_shape=jax.ShapeDtypeStruct((M, Np), jnp.float32),
        grid=(M // tm,),
        in_specs=[pl.BlockSpec((tm, Kp), lambda i: (i, 0)),
                  pl.BlockSpec((Kp, Np), lambda i: (0, 0)),
                  pl.BlockSpec((1, Np), lambda i: (0, 0))],
        out_specs=pl.BlockSpec((tm, Np), lambda i: (i, 0)),
        compiler_params=pltpu.CompilerParams(dimension_semantics=("parallel",)),
    )(x, w, b)
    return out[:, :N] if Np != N else out


# ----------------------------------------------------------------------------
# Fused transformer-stack kernel
#   grid = (batch_tiles, num_layers); the residual stream stays resident in the
#   output VMEM block across the layer axis while per-layer weights stream.
# ----------------------------------------------------------------------------

def _stack_kernel(x_ref,
                  ln1g_ref, ln1b_ref, qkvw_ref, qkvb_ref,
                  projw_ref, projb_ref, ln2g_ref, ln2b_ref,
                  fc1w_ref, fc1b_ref, fc2w_ref, fc2b_ref,
                  flng_ref, flnb_ref,
                  o_ref,
                  *, num_head, eps, seq_len, pad_len, batch_rows,
                  num_layers, apply_final_ln):
    f32 = jnp.float32
    bf16 = jnp.bfloat16
    layer = pl.program_id(1)

    # Load the residual stream into the resident output block on layer 0.
    @pl.when(layer == 0)
    def _():
        o_ref[...] = x_ref[...]

    x = o_ref[...]                                  # (batch_rows*pad_len, E) f32
    E = x.shape[-1]
    dh = E // num_head

    # ---------------- attention half ----------------
    h = _ln(x, ln1g_ref[...], ln1b_ref[...], eps)
    qkv = jnp.dot(h.astype(bf16), qkvw_ref[...],
                  preferred_element_type=f32) + qkvb_ref[...]          # (M, 3E)

    need_mask = seq_len != pad_len                   # static
    if need_mask:
        key_valid = (jax.lax.broadcasted_iota(jnp.int32,
                                              (pad_len, pad_len), 1) < seq_len)

    wproj = projw_ref[...]                           # (E, E) bf16, resident
    attn_rows = []
    for b in range(batch_rows):                      # static unroll over batch rows
        r0 = b * pad_len                             # sublane-aligned row offset
        qkv_b = qkv[r0:r0 + pad_len, :]              # (pad_len, 3E)
        acc = None
        for hd in range(num_head):                   # static unroll over heads
            c = hd * dh
            q = qkv_b[:, c:c + dh]
            k = qkv_b[:, E + c:E + c + dh]
            v = qkv_b[:, 2 * E + c:2 * E + c + dh]
            # 1/sqrt(dh) is pre-folded into the Q columns of qkv_w at init.
            s = jnp.einsum('td,sd->ts', q.astype(bf16), k.astype(bf16),
                           preferred_element_type=f32)
            if need_mask:                            # mask padded key positions
                s = jnp.where(key_valid, s, -1e30)
            s = s - jnp.max(s, axis=-1, keepdims=True)
            p = jnp.exp(s)
            p = p * pl.reciprocal(jnp.sum(p, axis=-1, keepdims=True), approx=True)
            ho = jnp.dot(p.astype(bf16), v.astype(bf16),
                         preferred_element_type=f32)                   # (Tp, dh)
            # Accumulate straight into the output projection (no lane concat).
            contrib = jnp.dot(ho.astype(bf16), wproj[c:c + dh, :],
                              preferred_element_type=f32)              # (Tp, E)
            acc = contrib if acc is None else acc + contrib
        attn_rows.append(acc)
    attn = attn_rows[0] if batch_rows == 1 else jnp.concatenate(attn_rows, axis=0)
    x = x + attn + projb_ref[...]

    # ---------------- MLP half ----------------
    h = _ln(x, ln2g_ref[...], ln2b_ref[...], eps)
    h = jnp.dot(h.astype(bf16), fc1w_ref[...],
                preferred_element_type=f32) + fc1b_ref[...]
    # TODO(synk): torch nn.GELU default is exact erf; tanh approximation here.
    h = jax.nn.gelu(h, approximate=True)
    h = jnp.dot(h.astype(bf16), fc2w_ref[...],
                preferred_element_type=f32) + fc2b_ref[...]
    x = x + h

    o_ref[...] = x
    if apply_final_ln:                               # fused final LN epilogue
        @pl.when(layer == num_layers - 1)
        def _():
            o_ref[...] = _ln(x, flng_ref[...], flnb_ref[...], eps)


def _pick_batch_tile(B):
    # >=2 parallel grid steps when possible (keeps both v7x TensorCores busy)
    # while still folding several batch rows into the matmul M dimension.
    if B % 2 == 0 and B >= 2:
        return B // 2
    return B


def transformer_stack(x, stacked, num_head, *, apply_final_ln,
                      final_g=None, final_b=None, eps=1e-5, batch_tile=None):
    """Run a whole stack of pre-norm ViT blocks (and optionally a final LN)
    in a single pallas_call.  x: (B, T, E) float32."""
    B, T, E = x.shape
    L = stacked['qkv_w'].shape[0]
    Tp = _round_up(T, 8)                             # sublane-aligned sequence
    if Tp != T:
        x = jnp.pad(x, ((0, 0), (0, Tp - T), (0, 0)))
    if batch_tile is None:
        batch_tile = _pick_batch_tile(B)
    nb = B // batch_tile
    Mt = batch_tile * Tp
    x2d = x.astype(jnp.float32).reshape(B * Tp, E)

    if final_g is None:
        final_g = jnp.ones((1, E), jnp.float32)
        final_b = jnp.zeros((1, E), jnp.float32)

    weight_args = [stacked[k] for k in _PARAM_ORDER]
    # Per-layer weights: leading layer axis indexed by the layer grid coord.
    weight_specs = [pl.BlockSpec((None,) + stacked[k].shape[1:],
                                 lambda b, l: (l, 0, 0))
                    for k in _PARAM_ORDER]

    kernel = functools.partial(
        _stack_kernel, num_head=num_head, eps=eps, seq_len=T, pad_len=Tp,
        batch_rows=batch_tile, num_layers=L, apply_final_ln=apply_final_ln)

    out2d = pl.pallas_call(
        kernel,
        out_shape=jax.ShapeDtypeStruct((B * Tp, E), jnp.float32),
        grid=(nb, L),
        in_specs=[pl.BlockSpec((Mt, E), lambda b, l: (b, 0))] + weight_specs
                 + [pl.BlockSpec((1, E), lambda b, l: (0, 0)),
                    pl.BlockSpec((1, E), lambda b, l: (0, 0))],
        out_specs=pl.BlockSpec((Mt, E), lambda b, l: (b, 0)),
        compiler_params=pltpu.CompilerParams(
            dimension_semantics=("parallel", "arbitrary"),
            vmem_limit_bytes=48 * 1024 * 1024),
    )(x2d, *weight_args, final_g, final_b)

    out = out2d.reshape(B, Tp, E)
    return out[:, :T, :] if Tp != T else out


# ----------------------------------------------------------------------------
# Model glue (gathers / rearranges) in plain JAX
# ----------------------------------------------------------------------------

def take_indexes(patches, indexes):
    # out[t, b, e] = patches[indexes[t, b], b, e]   (torch.gather dim=0)
    return jnp.take_along_axis(patches, indexes[:, :, None].astype(jnp.int32), axis=0)


def patch2img(patches, h, w, p, c):
    # '(h w) b (c p1 p2) -> b c (h p1) (w p2)'
    T, B, _ = patches.shape
    x = patches.reshape(h, w, B, c, p, p)
    x = x.transpose(2, 3, 0, 4, 1, 5)
    return x.reshape(B, c, h * p, w * p)


def mae_vit_forward(params, images, forward_indexes, backward_indexes, cfg):
    B, C, H, W = images.shape
    p = cfg['patch_size']
    E = cfg['emb_dim']
    gh = H // p
    gw = W // p
    T = gh * gw

    # ---------------- Encoder ----------------
    # patchify Conv2d(3, E, k=p, s=p) == per-patch linear over (c, p1, p2)
    xp = images.reshape(B, C, gh, p, gw, p).transpose(2, 4, 0, 1, 3, 5)
    xp = xp.reshape(T * B, C * p * p)
    patches = dense(xp, params['patch_w'], params['patch_b']).reshape(T, B, E)
    patches = patches + params['enc_pos']                       # (T, 1, E) broadcast

    # PatchShuffle (random permutation supplied externally, see __main__)
    patches = take_indexes(patches, forward_indexes)
    remain_T = int((1.0 - cfg['mask_ratio']) * T)
    patches = patches[:remain_T]

    cls = jnp.broadcast_to(params['cls_token'], (1, B, E))
    patches = jnp.concatenate([cls, patches], axis=0)           # (remain_T+1, B, E)

    x = patches.transpose(1, 0, 2)                              # (B, remain_T+1, E)
    x = transformer_stack(x, params['enc_blocks'], cfg['enc_heads'],
                          apply_final_ln=True,
                          final_g=params['enc_ln_g'], final_b=params['enc_ln_b'])
    features = x.transpose(1, 0, 2)                             # (remain_T+1, B, E)

    # ---------------- Decoder ----------------
    remain = features.shape[0]
    Tfull = backward_indexes.shape[0]
    mask_feature = jnp.broadcast_to(params['mask_token'], (Tfull - remain, B, E))
    feats = jnp.concatenate([features, mask_feature], axis=0)   # (Tfull, B, E)
    feats = take_indexes(feats, backward_indexes)
    feats = feats + params['dec_pos']

    x = feats.transpose(1, 0, 2)                                # (B, Tfull, E)
    x = transformer_stack(x, params['dec_blocks'], cfg['dec_heads'],
                          apply_final_ln=False)
    x = x.transpose(1, 0, 2)                                    # (Tfull, B, E)

    out_dim = 3 * p * p
    patches_out = dense(x.reshape(Tfull * B, E),
                        params['head_w'], params['head_b']).reshape(Tfull, B, out_dim)

    mask = jnp.zeros_like(patches_out)
    mask = mask.at[remain:].set(1.0)
    mask = take_indexes(mask, backward_indexes)

    img = patch2img(patches_out, gh, gw, p, 3)
    mask_img = patch2img(mask, gh, gw, p, 3)
    return img, mask_img


# ----------------------------------------------------------------------------
# Deterministic parameter init (synthetic).  MXU weight matrices are stored in
# bf16; biases / LN params stay f32.  The 1/sqrt(head_dim) softmax scale is
# folded into the Q columns of each qkv weight.
# ----------------------------------------------------------------------------

def _normal(key, shape, std=0.02):
    return std * jax.random.normal(key, shape, dtype=jnp.float32)


def init_stacked_blocks(key, E, L, num_head):
    mlp = 4 * E
    dh = E // num_head
    scale = dh ** -0.5
    bf16 = jnp.bfloat16
    layer_keys = jax.random.split(key, L)

    def one(k):
        k0, k1, k2, k3 = jax.random.split(k, 4)
        qkv_w = _normal(k0, (E, 3 * E))
        qkv_w = qkv_w.at[:, :E].multiply(scale)      # fold softmax scale into Q
        qkv_b = jnp.zeros((1, 3 * E), jnp.float32)   # (scale fold also applies to
                                                     #  the Q bias; it is zero here)
        return dict(
            ln1_g=jnp.ones((1, E), jnp.float32), ln1_b=jnp.zeros((1, E), jnp.float32),
            qkv_w=qkv_w.astype(bf16), qkv_b=qkv_b,
            proj_w=_normal(k1, (E, E)).astype(bf16),
            proj_b=jnp.zeros((1, E), jnp.float32),
            ln2_g=jnp.ones((1, E), jnp.float32), ln2_b=jnp.zeros((1, E), jnp.float32),
            fc1_w=_normal(k2, (E, mlp)).astype(bf16),
            fc1_b=jnp.zeros((1, mlp), jnp.float32),
            fc2_w=_normal(k3, (mlp, E)).astype(bf16),
            fc2_b=jnp.zeros((1, E), jnp.float32),
        )

    blocks = [one(k) for k in layer_keys]
    return {name: jnp.stack([blk[name] for blk in blocks], axis=0)
            for name in blocks[0]}


def init_params(key, cfg):
    E = cfg['emb_dim']
    p = cfg['patch_size']
    T = (cfg['image_size'] // p) ** 2
    keys = jax.random.split(key, 8)
    return dict(
        # encoder
        patch_w=_normal(keys[0], (3 * p * p, E)).astype(jnp.bfloat16),
        patch_b=jnp.zeros((1, E), jnp.float32),
        cls_token=_normal(keys[1], (1, 1, E)),                   # trunc_normal(0.02)-like
        enc_pos=_normal(keys[2], (T, 1, E)),
        enc_ln_g=jnp.ones((1, E), jnp.float32),
        enc_ln_b=jnp.zeros((1, E), jnp.float32),
        enc_blocks=init_stacked_blocks(keys[3], E, cfg['enc_layers'], cfg['enc_heads']),
        # decoder (mask_token / decoder pos stay zero, matching the reference init)
        mask_token=jnp.zeros((1, 1, E), jnp.float32),
        dec_pos=jnp.zeros((T, 1, E), jnp.float32),
        dec_blocks=init_stacked_blocks(keys[4], E, cfg['dec_layers'], cfg['dec_heads']),
        head_w=_normal(keys[5], (E, 3 * p * p)).astype(jnp.bfloat16),
        head_b=jnp.zeros((1, 3 * p * p), jnp.float32),
    )


# ----------------------------------------------------------------------------
# Main
# ----------------------------------------------------------------------------

if __name__ == "__main__":
    # emb_dim=128 keeps activations lane-dense; heads=4 -> dh=32.
    # batch=4 -> batch_tile=2: two parallel grid steps (v7x megacore) with two
    # batch rows folded into the matmul M dimension per step.
    cfg = dict(image_size=16, patch_size=4, emb_dim=128,
               enc_layers=2, enc_heads=4,
               dec_layers=2, dec_heads=4,
               mask_ratio=0.75)
    batch = 4
    T = (cfg['image_size'] // cfg['patch_size']) ** 2

    key = jax.random.PRNGKey(0)
    k_img, k_prm = jax.random.split(key)
    images = jax.random.normal(
        k_img, (batch, 3, cfg['image_size'], cfg['image_size']), dtype=jnp.float32)
    params = init_params(k_prm, cfg)

    # PatchShuffle random permutations (deterministic, per-batch, like random_indexes)
    rng = np.random.RandomState(0)
    fwd_idx, bwd_idx = [], []
    for _ in range(batch):
        f = np.arange(T)
        rng.shuffle(f)
        fwd_idx.append(f)
        bwd_idx.append(np.argsort(f))
    forward_indexes = jnp.asarray(np.stack(fwd_idx, axis=-1), dtype=jnp.int32)   # (T, B)
    backward_indexes = jnp.asarray(np.stack(bwd_idx, axis=-1), dtype=jnp.int32)  # (T, B)

    fwd_fn = jax.jit(functools.partial(mae_vit_forward, cfg=cfg))
    img, mask = fwd_fn(params, images, forward_indexes, backward_indexes)
    img = jax.block_until_ready(img)
    mask = jax.block_until_ready(mask)

    assert img.shape == (batch, 3, cfg['image_size'], cfg['image_size'])
    assert mask.shape == (batch, 3, cfg['image_size'], cfg['image_size'])
    assert bool(jnp.all(jnp.isfinite(img)))
    assert bool(jnp.all(jnp.isfinite(mask)))
    print("KERNEL_OK")
</pallas_src>

<mosaic_0001>
module attributes {stable_mosaic.version = 11 : i64} {
  func.func @_dense_kernel(%arg0: i32, %arg1: memref<64x128xf32, #tpu.memory_space<vmem>>, %arg2: memref<128x128xbf16, #tpu.memory_space<vmem>>, %arg3: memref<1x128xf32, #tpu.memory_space<vmem>>, %arg4: memref<64x128xf32, #tpu.memory_space<vmem>>) attributes {dimension_semantics = [#tpu.dimension_semantics<parallel>], iteration_bounds = array<i64: 1>, scalar_prefetch = 0 : i64, scratch_operands = 0 : i64, tpu.core_type = #tpu.core_type<tc>, window_params = [{transform_indices = @transform_0, window_bounds = array<i64: 64, 128>}, {pipeline_mode = #tpu.pipeline_mode<synchronous>, transform_indices = @transform_1, window_bounds = array<i64: 128, 128>}, {pipeline_mode = #tpu.pipeline_mode<synchronous>, transform_indices = @transform_2, window_bounds = array<i64: 1, 128>}, {transform_indices = @transform_3, window_bounds = array<i64: 64, 128>}]} {
    %c0 = arith.constant 0 : index
    %c0_0 = arith.constant 0 : index
    %0 = vector.load %arg1[%c0, %c0_0] : memref<64x128xf32, #tpu.memory_space<vmem>>, vector<64x128xf32>
    %1 = arith.truncf %0 : vector<64x128xf32> to vector<64x128xbf16>
    %c0_1 = arith.constant 0 : index
    %c0_2 = arith.constant 0 : index
    %2 = vector.load %arg2[%c0_1, %c0_2] : memref<128x128xbf16, #tpu.memory_space<vmem>>, vector<128x128xbf16>
    %cst = arith.constant dense<0.000000e+00> : vector<64x128xf32>
    %3 = tpu.matmul %1, %2, %cst {dimension_numbers = #tpu.dot_dimension_numbers<[1], [0], [0], [1], [0, 0, 1, 1], [], []>} : vector<64x128xbf16>, vector<128x128xbf16>, vector<64x128xf32> -> vector<64x128xf32>
    %c0_3 = arith.constant 0 : index
    %c0_4 = arith.constant 0 : index
    %4 = vector.load %arg3[%c0_3, %c0_4] : memref<1x128xf32, #tpu.memory_space<vmem>>, vector<1x128xf32>
    %5 = vector.broadcast %4 : vector<1x128xf32> to vector<64x128xf32>
    %6 = arith.addf %3, %5 : vector<64x128xf32>
    %c0_5 = arith.constant 0 : index
    %c0_6 = arith.constant 0 : index
    %7 = vector.load %arg4[%c0_5, %c0_6] : memref<64x128xf32, #tpu.memory_space<vmem>>, vector<64x128xf32>
    tpu.vector_store %arg4[%c0_5, %c0_6], %6 {strides = array<i32>} : memref<64x128xf32, #tpu.memory_space<vmem>>, vector<64x128xf32>,
    return
  }
  func.func @transform_0(%arg0: i32) -> (i32, i32) {
    %c0_i32 = arith.constant 0 : i32
    %c0_i32_0 = arith.constant 0 : i32
    return %arg0, %c0_i32 : i32, i32
  }
  func.func @transform_1(%arg0: i32) -> (i32, i32) {
    %c0_i32 = arith.constant 0 : i32
    %c0_i32_0 = arith.constant 0 : i32
    %c0_i32_1 = arith.constant 0 : i32
    return %c0_i32, %c0_i32_0 : i32, i32
  }
  func.func @transform_2(%arg0: i32) -> (i32, i32) {
    %c0_i32 = arith.constant 0 : i32
    %c0_i32_0 = arith.constant 0 : i32
    %c0_i32_1 = arith.constant 0 : i32
    return %c0_i32, %c0_i32_0 : i32, i32
  }
  func.func @transform_3(%arg0: i32) -> (i32, i32) {
    %c0_i32 = arith.constant 0 : i32
    %c0_i32_0 = arith.constant 0 : i32
    return %arg0, %c0_i32 : i32, i32
  }
}

module attributes {stable_mosaic.version = 11 : i64} {
  func.func @_stack_kernel(%arg0: i32, %arg1: i32, %arg2: memref<16x128xf32, #tpu.memory_space<vmem>>, %arg3: memref<1x1x128xf32, #tpu.memory_space<vmem>>, %arg4: memref<1x1x128xf32, #tpu.memory_space<vmem>>, %arg5: memref<1x128x384xbf16, #tpu.memory_space<vmem>>, %arg6: memref<1x1x384xf32, #tpu.memory_space<vmem>>, %arg7: memref<1x128x128xbf16, #tpu.memory_space<vmem>>, %arg8: memref<1x1x128xf32, #tpu.memory_space<vmem>>, %arg9: memref<1x1x128xf32, #tpu.memory_space<vmem>>, %arg10: memref<1x1x128xf32, #tpu.memory_space<vmem>>, %arg11: memref<1x128x512xbf16, #tpu.memory_space<vmem>>, %arg12: memref<1x1x512xf32, #tpu.memory_space<vmem>>, %arg13: memref<1x512x128xbf16, #tpu.memory_space<vmem>>, %arg14: memref<1x1x128xf32, #tpu.memory_space<vmem>>, %arg15: memref<1x128xf32, #tpu.memory_space<vmem>>, %arg16: memref<1x128xf32, #tpu.memory_space<vmem>>, %arg17: memref<16x128xf32, #tpu.memory_space<vmem>>) attributes {dimension_semantics = [#tpu.dimension_semantics<parallel>, #tpu.dimension_semantics<arbitrary>], iteration_bounds = array<i64: 2, 2>, scalar_prefetch = 0 : i64, scratch_operands = 0 : i64, tpu.core_type = #tpu.core_type<tc>, window_params = [{transform_indices = @transform_0, window_bounds = array<i64: 16, 128>}, {transform_indices = @transform_1, window_bounds = array<i64: 1, 1, 128>}, {transform_indices = @transform_2, window_bounds = array<i64: 1, 1, 128>}, {transform_indices = @transform_3, window_bounds = array<i64: 1, 128, 384>}, {transform_indices = @transform_4, window_bounds = array<i64: 1, 1, 384>}, {transform_indices = @transform_5, window_bounds = array<i64: 1, 128, 128>}, {transform_indices = @transform_6, window_bounds = array<i64: 1, 1, 128>}, {transform_indices = @transform_7, window_bounds = array<i64: 1, 1, 128>}, {transform_indices = @transform_8, window_bounds = array<i64: 1, 1, 128>}, {transform_indices = @transform_9, window_bounds = array<i64: 1, 128, 512>}, {transform_indices = @transform_10, window_bounds = array<i64: 1, 1, 512>}, {transform_indices = @transform_11, window_bounds = array<i64: 1, 512, 128>}, {transform_indices = @transform_12, window_bounds = array<i64: 1, 1, 128>}, {pipeline_mode = #tpu.pipeline_mode<synchronous>, transform_indices = @transform_13, window_bounds = array<i64: 1, 128>}, {pipeline_mode = #tpu.pipeline_mode<synchronous>, transform_indices = @transform_14, window_bounds = array<i64: 1, 128>}, {transform_indices = @transform_15, window_bounds = array<i64: 16, 128>}]} {
    %c0_i32 = arith.constant 0 : i32
    %0 = arith.cmpi eq, %arg1, %c0_i32 : i32
    %1 = arith.extui %0 : i1 to i32
    %c0_i32_0 = arith.constant 0 : i32
    %2 = arith.cmpi ne, %1, %c0_i32_0 : i32
    scf.if %2 {
      %c0_105 = arith.constant 0 : index
      %c0_106 = arith.constant 0 : index
      %305 = vector.load %arg2[%c0_105, %c0_106] : memref<16x128xf32, #tpu.memory_space<vmem>>, vector<16x128xf32>
      %c0_107 = arith.constant 0 : index
      %c0_108 = arith.constant 0 : index
      %306 = vector.load %arg17[%c0_107, %c0_108] : memref<16x128xf32, #tpu.memory_space<vmem>>, vector<16x128xf32>
      tpu.vector_store %arg17[%c0_107, %c0_108], %305 {strides = array<i32>} : memref<16x128xf32, #tpu.memory_space<vmem>>, vector<16x128xf32>,
    } else {
    }
    %c0 = arith.constant 0 : index
    %c0_1 = arith.constant 0 : index
    %3 = vector.load %arg17[%c0, %c0_1] : memref<16x128xf32, #tpu.memory_space<vmem>>, vector<16x128xf32>
    %c0_2 = arith.constant 0 : index
    %c0_3 = arith.constant 0 : index
    %c0_4 = arith.constant 0 : index
    %4 = vector.load %arg3[%c0_2, %c0_3, %c0_4] : memref<1x1x128xf32, #tpu.memory_space<vmem>>, vector<1x1x128xf32>
    %5 = vector.shape_cast %4 : vector<1x1x128xf32> to vector<1x128xf32>
    %c0_5 = arith.constant 0 : index
    %c0_6 = arith.constant 0 : index
    %c0_7 = arith.constant 0 : index
    %6 = vector.load %arg4[%c0_5, %c0_6, %c0_7] : memref<1x1x128xf32, #tpu.memory_space<vmem>>, vector<1x1x128xf32>
    %7 = vector.shape_cast %6 : vector<1x1x128xf32> to vector<1x128xf32>
    %cst = arith.constant dense<0.000000e+00> : vector<16xf32>
    %8 = vector.multi_reduction <add>, %3, %cst [1] : vector<16x128xf32> to vector<16xf32>
    %9 = vector.shape_cast %8 : vector<16xf32> to vector<16x1xf32>
    %cst_8 = arith.constant 1.280000e+02 : f32
    %10 = vector.broadcast %cst_8 : f32 to vector<16x1xf32>
    %11 = arith.divf %9, %10 : vector<16x1xf32>
    %12 = vector.broadcast %11 : vector<16x1xf32> to vector<16x128xf32>
    %13 = arith.subf %3, %12 : vector<16x128xf32>
    %14 = arith.mulf %13, %13 : vector<16x128xf32>
    %cst_9 = arith.constant dense<0.000000e+00> : vector<16xf32>
    %15 = vector.multi_reduction <add>, %14, %cst_9 [1] : vector<16x128xf32> to vector<16xf32>
    %16 = vector.shape_cast %15 : vector<16xf32> to vector<16x1xf32>
    %cst_10 = arith.constant 1.280000e+02 : f32
    %17 = vector.broadcast %cst_10 : f32 to vector<16x1xf32>
    %18 = arith.divf %16, %17 : vector<16x1xf32>
    %cst_11 = arith.constant 9.99999974E-6 : f32
    %19 = vector.broadcast %cst_11 : f32 to vector<16x1xf32>
    %20 = arith.addf %18, %19 : vector<16x1xf32>
    %21 = math.rsqrt %20 : vector<16x1xf32>
    %22 = vector.broadcast %21 : vector<16x1xf32> to vector<16x128xf32>
    %23 = arith.mulf %13, %22 : vector<16x128xf32>
    %24 = vector.broadcast %5 : vector<1x128xf32> to vector<16x128xf32>
    %25 = arith.mulf %23, %24 : vector<16x128xf32>
    %26 = vector.broadcast %7 : vector<1x128xf32> to vector<16x128xf32>
    %27 = arith.addf %25, %26 : vector<16x128xf32>
    %28 = arith.truncf %27 : vector<16x128xf32> to vector<16x128xbf16>
    %c0_12 = arith.constant 0 : index
    %c0_13 = arith.constant 0 : index
    %c0_14 = arith.constant 0 : index
    %29 = vector.load %arg5[%c0_12, %c0_13, %c0_14] : memref<1x128x384xbf16, #tpu.memory_space<vmem>>, vector<1x128x384xbf16>
    %30 = vector.shape_cast %29 : vector<1x128x384xbf16> to vector<128x384xbf16>
    %cst_15 = arith.constant dense<0.000000e+00> : vector<16x384xf32>
    %31 = tpu.matmul %28, %30, %cst_15 {dimension_numbers = #tpu.dot_dimension_numbers<[1], [0], [0], [1], [0, 0, 1, 1], [], []>} : vector<16x128xbf16>, vector<128x384xbf16>, vector<16x384xf32> -> vector<16x384xf32>
    %c0_16 = arith.constant 0 : index
    %c0_17 = arith.constant 0 : index
    %c0_18 = arith.constant 0 : index
    %32 = vector.load %arg6[%c0_16, %c0_17, %c0_18] : memref<1x1x384xf32, #tpu.memory_space<vmem>>, vector<1x1x384xf32>
    %33 = vector.shape_cast %32 : vector<1x1x384xf32> to vector<1x384xf32>
    %34 = vector.broadcast %33 : vector<1x384xf32> to vector<16x384xf32>
    %35 = arith.addf %31, %34 : vector<16x384xf32>
    %36 = tpu.iota {dimensions = array<i32: 1>} : vector<8x8xi32>
    %c5_i32 = arith.constant 5 : i32
    %37 = vector.broadcast %c5_i32 : i32 to vector<8x8xi32>
    %38 = arith.cmpi slt, %36, %37 : vector<8x8xi32>
    %c0_19 = arith.constant 0 : index
    %c0_20 = arith.constant 0 : index
    %c0_21 = arith.constant 0 : index
    %39 = vector.load %arg7[%c0_19, %c0_20, %c0_21] : memref<1x128x128xbf16, #tpu.memory_space<vmem>>, vector<1x128x128xbf16>
    %40 = vector.shape_cast %39 : vector<1x128x128xbf16> to vector<128x128xbf16>
    %41 = vector.extract_strided_slice %35 {offsets = [0, 0], sizes = [8, 384], strides = [1, 1]} : vector<16x384xf32> to vector<8x384xf32>
    %42 = vector.extract_strided_slice %41 {offsets = [0, 0], sizes = [8, 32], strides = [1, 1]} : vector<8x384xf32> to vector<8x32xf32>
    %43 = vector.extract_strided_slice %41 {offsets = [0, 128], sizes = [8, 32], strides = [1, 1]} : vector<8x384xf32> to vector<8x32xf32>
    %44 = vector.extract_strided_slice %41 {offsets = [0, 256], sizes = [8, 32], strides = [1, 1]} : vector<8x384xf32> to vector<8x32xf32>
    %45 = arith.truncf %42 : vector<8x32xf32> to vector<8x32xbf16>
    %46 = arith.truncf %43 : vector<8x32xf32> to vector<8x32xbf16>
    "tpu.trace_start"() <{level = 10 : i32, message = "td,sd->ts"}> : () -> ()
    %cst_22 = arith.constant dense<0.000000e+00> : vector<8x8xf32>
    %47 = tpu.matmul %45, %46, %cst_22 {dimension_numbers = #tpu.dot_dimension_numbers<[1], [1], [0], [0], [0, 0, 1, 0], [], []>} : vector<8x32xbf16>, vector<8x32xbf16>, vector<8x8xf32> -> vector<8x8xf32>
    %cst_23 = arith.constant -1.000000e+30 : f32
    "tpu.trace_stop"() : () -> ()
    %48 = vector.broadcast %cst_23 : f32 to vector<8x8xf32>
    %49 = arith.select %38, %47, %48 : vector<8x8xi1>, vector<8x8xf32>
    %cst_24 = arith.constant dense<0xFF800000> : vector<8xf32>
    %50 = vector.multi_reduction <maximumf>, %49, %cst_24 [1] : vector<8x8xf32> to vector<8xf32>
    %51 = vector.shape_cast %50 : vector<8xf32> to vector<8x1xf32>
    %52 = vector.broadcast %51 : vector<8x1xf32> to vector<8x8xf32>
    %53 = arith.subf %49, %52 : vector<8x8xf32>
    %54 = math.exp %53 : vector<8x8xf32>
    %cst_25 = arith.constant dense<0.000000e+00> : vector<8xf32>
    %55 = vector.multi_reduction <add>, %54, %cst_25 [1] : vector<8x8xf32> to vector<8xf32>
    %56 = vector.shape_cast %55 : vector<8xf32> to vector<8x1xf32>
    %57 = tpu.reciprocal %56 {approx = true} : vector<8x1xf32> -> vector<8x1xf32>
    %58 = vector.broadcast %57 : vector<8x1xf32> to vector<8x8xf32>
    %59 = arith.mulf %54, %58 : vector<8x8xf32>
    %60 = arith.truncf %59 : vector<8x8xf32> to vector<8x8xbf16>
    %61 = arith.truncf %44 : vector<8x32xf32> to vector<8x32xbf16>
    %cst_26 = arith.constant dense<0.000000e+00> : vector<8x32xf32>
    %62 = tpu.matmul %60, %61, %cst_26 {dimension_numbers = #tpu.dot_dimension_numbers<[1], [0], [0], [1], [0, 0, 1, 1], [], []>} : vector<8x8xbf16>, vector<8x32xbf16>, vector<8x32xf32> -> vector<8x32xf32>
    %63 = arith.truncf %62 : vector<8x32xf32> to vector<8x32xbf16>
    %64 = vector.extract_strided_slice %40 {offsets = [0, 0], sizes = [32, 128], strides = [1, 1]} : vector<128x128xbf16> to vector<32x128xbf16>
    %cst_27 = arith.constant dense<0.000000e+00> : vector<8x128xf32>
    %65 = tpu.matmul %63, %64, %cst_27 {dimension_numbers = #tpu.dot_dimension_numbers<[1], [0], [0], [1], [0, 0, 1, 1], [], []>} : vector<8x32xbf16>, vector<32x128xbf16>, vector<8x128xf32> -> vector<8x128xf32>
    %66 = vector.extract_strided_slice %41 {offsets = [0, 32], sizes = [8, 32], strides = [1, 1]} : vector<8x384xf32> to vector<8x32xf32>
    %67 = vector.extract_strided_slice %41 {offsets = [0, 160], sizes = [8, 32], strides = [1, 1]} : vector<8x384xf32> to vector<8x32xf32>
    %68 = vector.extract_strided_slice %41 {offsets = [0, 288], sizes = [8, 32], strides = [1, 1]} : vector<8x384xf32> to vector<8x32xf32>
    %69 = arith.truncf %66 : vector<8x32xf32> to vector<8x32xbf16>
    %70 = arith.truncf %67 : vector<8x32xf32> to vector<8x32xbf16>
    "tpu.trace_start"() <{level = 10 : i32, message = "td,sd->ts"}> : () -> ()
    %cst_28 = arith.constant dense<0.000000e+00> : vector<8x8xf32>
    %71 = tpu.matmul %69, %70, %cst_28 {dimension_numbers = #tpu.dot_dimension_numbers<[1], [1], [0], [0], [0, 0, 1, 0], [], []>} : vector<8x32xbf16>, vector<8x32xbf16>, vector<8x8xf32> -> vector<8x8xf32>
    %cst_29 = arith.constant -1.000000e+30 : f32
    "tpu.trace_stop"() : () -> ()
    %72 = vector.broadcast %cst_29 : f32 to vector<8x8xf32>
    %73 = arith.select %38, %71, %72 : vector<8x8xi1>, vector<8x8xf32>
    %cst_30 = arith.constant dense<0xFF800000> : vector<8xf32>
    %74 = vector.multi_reduction <maximumf>, %73, %cst_30 [1] : vector<8x8xf32> to vector<8xf32>
    %75 = vector.shape_cast %74 : vector<8xf32> to vector<8x1xf32>
    %76 = vector.broadcast %75 : vector<8x1xf32> to vector<8x8xf32>
    %77 = arith.subf %73, %76 : vector<8x8xf32>
    %78 = math.exp %77 : vector<8x8xf32>
    %cst_31 = arith.constant dense<0.000000e+00> : vector<8xf32>
    %79 = vector.multi_reduction <add>, %78, %cst_31 [1] : vector<8x8xf32> to vector<8xf32>
    %80 = vector.shape_cast %79 : vector<8xf32> to vector<8x1xf32>
    %81 = tpu.reciprocal %80 {approx = true} : vector<8x1xf32> -> vector<8x1xf32>
    %82 = vector.broadcast %81 : vector<8x1xf32> to vector<8x8xf32>
    %83 = arith.mulf %78, %82 : vector<8x8xf32>
    %84 = arith.truncf %83 : vector<8x8xf32> to vector<8x8xbf16>
    %85 = arith.truncf %68 : vector<8x32xf32> to vector<8x32xbf16>
    %cst_32 = arith.constant dense<0.000000e+00> : vector<8x32xf32>
    %86 = tpu.matmul %84, %85, %cst_32 {dimension_numbers = #tpu.dot_dimension_numbers<[1], [0], [0], [1], [0, 0, 1, 1], [], []>} : vector<8x8xbf16>, vector<8x32xbf16>, vector<8x32xf32> -> vector<8x32xf32>
    %87 = arith.truncf %86 : vector<8x32xf32> to vector<8x32xbf16>
    %88 = vector.extract_strided_slice %40 {offsets = [32, 0], sizes = [32, 128], strides = [1, 1]} : vector<128x128xbf16> to vector<32x128xbf16>
    %cst_33 = arith.constant dense<0.000000e+00> : vector<8x128xf32>
    %89 = tpu.matmul %87, %88, %cst_33 {dimension_numbers = #tpu.dot_dimension_numbers<[1], [0], [0], [1], [0, 0, 1, 1], [], []>} : vector<8x32xbf16>, vector<32x128xbf16>, vector<8x128xf32> -> vector<8x128xf32>
    %90 = arith.addf %65, %89 : vector<8x128xf32>
    %91 = vector.extract_strided_slice %41 {offsets = [0, 64], sizes = [8, 32], strides = [1, 1]} : vector<8x384xf32> to vector<8x32xf32>
    %92 = vector.extract_strided_slice %41 {offsets = [0, 192], sizes = [8, 32], strides = [1, 1]} : vector<8x384xf32> to vector<8x32xf32>
    %93 = vector.extract_strided_slice %41 {offsets = [0, 320], sizes = [8, 32], strides = [1, 1]} : vector<8x384xf32> to vector<8x32xf32>
    %94 = arith.truncf %91 : vector<8x32xf32> to vector<8x32xbf16>
    %95 = arith.truncf %92 : vector<8x32xf32> to vector<8x32xbf16>
    "tpu.trace_start"() <{level = 10 : i32, message = "td,sd->ts"}> : () -> ()
    %cst_34 = arith.constant dense<0.000000e+00> : vector<8x8xf32>
    %96 = tpu.matmul %94, %95, %cst_34 {dimension_numbers = #tpu.dot_dimension_numbers<[1], [1], [0], [0], [0, 0, 1, 0], [], []>} : vector<8x32xbf16>, vector<8x32xbf16>, vector<8x8xf32> -> vector<8x8xf32>
    %cst_35 = arith.constant -1.000000e+30 : f32
    "tpu.trace_stop"() : () -> ()
    %97 = vector.broadcast %cst_35 : f32 to vector<8x8xf32>
    %98 = arith.select %38, %96, %97 : vector<8x8xi1>, vector<8x8xf32>
    %cst_36 = arith.constant dense<0xFF800000> : vector<8xf32>
    %99 = vector.multi_reduction <maximumf>, %98, %cst_36 [1] : vector<8x8xf32> to vector<8xf32>
    %100 = vector.shape_cast %99 : vector<8xf32> to vector<8x1xf32>
    %101 = vector.broadcast %100 : vector<8x1xf32> to vector<8x8xf32>
    %102 = arith.subf %98, %101 : vector<8x8xf32>
    %103 = math.exp %102 : vector<8x8xf32>
    %cst_37 = arith.constant dense<0.000000e+00> : vector<8xf32>
    %104 = vector.multi_reduction <add>, %103, %cst_37 [1] : vector<8x8xf32> to vector<8xf32>
    %105 = vector.shape_cast %104 : vector<8xf32> to vector<8x1xf32>
    %106 = tpu.reciprocal %105 {approx = true} : vector<8x1xf32> -> vector<8x1xf32>
    %107 = vector.broadcast %106 : vector<8x1xf32> to vector<8x8xf32>
    %108 = arith.mulf %103, %107 : vector<8x8xf32>
    %109 = arith.truncf %108 : vector<8x8xf32> to vector<8x8xbf16>
    %110 = arith.truncf %93 : vector<8x32xf32> to vector<8x32xbf16>
    %cst_38 = arith.constant dense<0.000000e+00> : vector<8x32xf32>
    %111 = tpu.matmul %109, %110, %cst_38 {dimension_numbers = #tpu.dot_dimension_numbers<[1], [0], [0], [1], [0, 0, 1, 1], [], []>} : vector<8x8xbf16>, vector<8x32xbf16>, vector<8x32xf32> -> vector<8x32xf32>
    %112 = arith.truncf %111 : vector<8x32xf32> to vector<8x32xbf16>
    %113 = vector.extract_strided_slice %40 {offsets = [64, 0], sizes = [32, 128], strides = [1, 1]} : vector<128x128xbf16> to vector<32x128xbf16>
    %cst_39 = arith.constant dense<0.000000e+00> : vector<8x128xf32>
    %114 = tpu.matmul %112, %113, %cst_39 {dimension_numbers = #tpu.dot_dimension_numbers<[1], [0], [0], [1], [0, 0, 1, 1], [], []>} : vector<8x32xbf16>, vector<32x128xbf16>, vector<8x128xf32> -> vector<8x128xf32>
    %115 = arith.addf %90, %114 : vector<8x128xf32>
    %116 = vector.extract_strided_slice %41 {offsets = [0, 96], sizes = [8, 32], strides = [1, 1]} : vector<8x384xf32> to vector<8x32xf32>
    %117 = vector.extract_strided_slice %41 {offsets = [0, 224], sizes = [8, 32], strides = [1, 1]} : vector<8x384xf32> to vector<8x32xf32>
    %118 = vector.extract_strided_slice %41 {offsets = [0, 352], sizes = [8, 32], strides = [1, 1]} : vector<8x384xf32> to vector<8x32xf32>
    %119 = arith.truncf %116 : vector<8x32xf32> to vector<8x32xbf16>
    %120 = arith.truncf %117 : vector<8x32xf32> to vector<8x32xbf16>
    "tpu.trace_start"() <{level = 10 : i32, message = "td,sd->ts"}> : () -> ()
    %cst_40 = arith.constant dense<0.000000e+00> : vector<8x8xf32>
    %121 = tpu.matmul %119, %120, %cst_40 {dimension_numbers = #tpu.dot_dimension_numbers<[1], [1], [0], [0], [0, 0, 1, 0], [], []>} : vector<8x32xbf16>, vector<8x32xbf16>, vector<8x8xf32> -> vector<8x8xf32>
    %cst_41 = arith.constant -1.000000e+30 : f32
    "tpu.trace_stop"() : () -> ()
    %122 = vector.broadcast %cst_41 : f32 to vector<8x8xf32>
    %123 = arith.select %38, %121, %122 : vector<8x8xi1>, vector<8x8xf32>
    %cst_42 = arith.constant dense<0xFF800000> : vector<8xf32>
    %124 = vector.multi_reduction <maximumf>, %123, %cst_42 [1] : vector<8x8xf32> to vector<8xf32>
    %125 = vector.shape_cast %124 : vector<8xf32> to vector<8x1xf32>
    %126 = vector.broadcast %125 : vector<8x1xf32> to vector<8x8xf32>
    %127 = arith.subf %123, %126 : vector<8x8xf32>
    %128 = math.exp %127 : vector<8x8xf32>
    %cst_43 = arith.constant dense<0.000000e+00> : vector<8xf32>
    %129 = vector.multi_reduction <add>, %128, %cst_43 [1] : vector<8x8xf32> to vector<8xf32>
    %130 = vector.shape_cast %129 : vector<8xf32> to vector<8x1xf32>
    %131 = tpu.reciprocal %130 {approx = true} : vector<8x1xf32> -> vector<8x1xf32>
    %132 = vector.broadcast %131 : vector<8x1xf32> to vector<8x8xf32>
    %133 = arith.mulf %128, %132 : vector<8x8xf32>
    %134 = arith.truncf %133 : vector<8x8xf32> to vector<8x8xbf16>
    %135 = arith.truncf %118 : vector<8x32xf32> to vector<8x32xbf16>
    %cst_44 = arith.constant dense<0.000000e+00> : vector<8x32xf32>
    %136 = tpu.matmul %134, %135, %cst_44 {dimension_numbers = #tpu.dot_dimension_numbers<[1], [0], [0], [1], [0, 0, 1, 1], [], []>} : vector<8x8xbf16>, vector<8x32xbf16>, vector<8x32xf32> -> vector<8x32xf32>
    %137 = arith.truncf %136 : vector<8x32xf32> to vector<8x32xbf16>
    %138 = vector.extract_strided_slice %40 {offsets = [96, 0], sizes = [32, 128], strides = [1, 1]} : vector<128x128xbf16> to vector<32x128xbf16>
    %cst_45 = arith.constant dense<0.000000e+00> : vector<8x128xf32>
    %139 = tpu.matmul %137, %138, %cst_45 {dimension_numbers = #tpu.dot_dimension_numbers<[1], [0], [0], [1], [0, 0, 1, 1], [], []>} : vector<8x32xbf16>, vector<32x128xbf16>, vector<8x128xf32> -> vector<8x128xf32>
    %140 = arith.addf %115, %139 : vector<8x128xf32>
    %141 = vector.extract_strided_slice %35 {offsets = [8, 0], sizes = [8, 384], strides = [1, 1]} : vector<16x384xf32> to vector<8x384xf32>
    %142 = vector.extract_strided_slice %141 {offsets = [0, 0], sizes = [8, 32], strides = [1, 1]} : vector<8x384xf32> to vector<8x32xf32>
    %143 = vector.extract_strided_slice %141 {offsets = [0, 128], sizes = [8, 32], strides = [1, 1]} : vector<8x384xf32> to vector<8x32xf32>
    %144 = vector.extract_strided_slice %141 {offsets = [0, 256], sizes = [8, 32], strides = [1, 1]} : vector<8x384xf32> to vector<8x32xf32>
    %145 = arith.truncf %142 : vector<8x32xf32> to vector<8x32xbf16>
    %146 = arith.truncf %143 : vector<8x32xf32> to vector<8x32xbf16>
    "tpu.trace_start"() <{level = 10 : i32, message = "td,sd->ts"}> : () -> ()
    %cst_46 = arith.constant dense<0.000000e+00> : vector<8x8xf32>
    %147 = tpu.matmul %145, %146, %cst_46 {dimension_numbers = #tpu.dot_dimension_numbers<[1], [1], [0], [0], [0, 0, 1, 0], [], []>} : vector<8x32xbf16>, vector<8x32xbf16>, vector<8x8xf32> -> vector<8x8xf32>
    %cst_47 = arith.constant -1.000000e+30 : f32
    "tpu.trace_stop"() : () -> ()
    %148 = vector.broadcast %cst_47 : f32 to vector<8x8xf32>
    %149 = arith.select %38, %147, %148 : vector<8x8xi1>, vector<8x8xf32>
    %cst_48 = arith.constant dense<0xFF800000> : vector<8xf32>
    %150 = vector.multi_reduction <maximumf>, %149, %cst_48 [1] : vector<8x8xf32> to vector<8xf32>
    %151 = vector.shape_cast %150 : vector<8xf32> to vector<8x1xf32>
    %152 = vector.broadcast %151 : vector<8x1xf32> to vector<8x8xf32>
    %153 = arith.subf %149, %152 : vector<8x8xf32>
    %154 = math.exp %153 : vector<8x8xf32>
    %cst_49 = arith.constant dense<0.000000e+00> : vector<8xf32>
    %155 = vector.multi_reduction <add>, %154, %cst_49 [1] : vector<8x8xf32> to vector<8xf32>
    %156 = vector.shape_cast %155 : vector<8xf32> to vector<8x1xf32>
    %157 = tpu.reciprocal %156 {approx = true} : vector<8x1xf32> -> vector<8x1xf32>
    %158 = vector.broadcast %157 : vector<8x1xf32> to vector<8x8xf32>
    %159 = arith.mulf %154, %158 : vector<8x8xf32>
    %160 = arith.truncf %159 : vector<8x8xf32> to vector<8x8xbf16>
    %161 = arith.truncf %144 : vector<8x32xf32> to vector<8x32xbf16>
    %cst_50 = arith.constant dense<0.000000e+00> : vector<8x32xf32>
    %162 = tpu.matmul %160, %161, %cst_50 {dimension_numbers = #tpu.dot_dimension_numbers<[1], [0], [0], [1], [0, 0, 1, 1], [], []>} : vector<8x8xbf16>, vector<8x32xbf16>, vector<8x32xf32> -> vector<8x32xf32>
    %163 = arith.truncf %162 : vector<8x32xf32> to vector<8x32xbf16>
    %164 = vector.extract_strided_slice %40 {offsets = [0, 0], sizes = [32, 128], strides = [1, 1]} : vector<128x128xbf16> to vector<32x128xbf16>
    %cst_51 = arith.constant dense<0.000000e+00> : vector<8x128xf32>
    %165 = tpu.matmul %163, %164, %cst_51 {dimension_numbers = #tpu.dot_dimension_numbers<[1], [0], [0], [1], [0, 0, 1, 1], [], []>} : vector<8x32xbf16>, vector<32x128xbf16>, vector<8x128xf32> -> vector<8x128xf32>
    %166 = vector.extract_strided_slice %141 {offsets = [0, 32], sizes = [8, 32], strides = [1, 1]} : vector<8x384xf32> to vector<8x32xf32>
    %167 = vector.extract_strided_slice %141 {offsets = [0, 160], sizes = [8, 32], strides = [1, 1]} : vector<8x384xf32> to vector<8x32xf32>
    %168 = vector.extract_strided_slice %141 {offsets = [0, 288], sizes = [8, 32], strides = [1, 1]} : vector<8x384xf32> to vector<8x32xf32>
    %169 = arith.truncf %166 : vector<8x32xf32> to vector<8x32xbf16>
    %170 = arith.truncf %167 : vector<8x32xf32> to vector<8x32xbf16>
    "tpu.trace_start"() <{level = 10 : i32, message = "td,sd->ts"}> : () -> ()
    %cst_52 = arith.constant dense<0.000000e+00> : vector<8x8xf32>
    %171 = tpu.matmul %169, %170, %cst_52 {dimension_numbers = #tpu.dot_dimension_numbers<[1], [1], [0], [0], [0, 0, 1, 0], [], []>} : vector<8x32xbf16>, vector<8x32xbf16>, vector<8x8xf32> -> vector<8x8xf32>
    %cst_53 = arith.constant -1.000000e+30 : f32
    "tpu.trace_stop"() : () -> ()
    %172 = vector.broadcast %cst_53 : f32 to vector<8x8xf32>
    %173 = arith.select %38, %171, %172 : vector<8x8xi1>, vector<8x8xf32>
    %cst_54 = arith.constant dense<0xFF800000> : vector<8xf32>
    %174 = vector.multi_reduction <maximumf>, %173, %cst_54 [1] : vector<8x8xf32> to vector<8xf32>
    %175 = vector.shape_cast %174 : vector<8xf32> to vector<8x1xf32>
    %176 = vector.broadcast %175 : vector<8x1xf32> to vector<8x8xf32>
    %177 = arith.subf %173, %176 : vector<8x8xf32>
    %178 = math.exp %177 : vector<8x8xf32>
    %cst_55 = arith.constant dense<0.000000e+00> : vector<8xf32>
    %179 = vector.multi_reduction <add>, %178, %cst_55 [1] : vector<8x8xf32> to vector<8xf32>
    %180 = vector.shape_cast %179 : vector<8xf32> to vector<8x1xf32>
    %181 = tpu.reciprocal %180 {approx = true} : vector<8x1xf32> -> vector<8x1xf32>
    %182 = vector.broadcast %181 : vector<8x1xf32> to vector<8x8xf32>
    %183 = arith.mulf %178, %182 : vector<8x8xf32>
    %184 = arith.truncf %183 : vector<8x8xf32> to vector<8x8xbf16>
    %185 = arith.truncf %168 : vector<8x32xf32> to vector<8x32xbf16>
    %cst_56 = arith.constant dense<0.000000e+00> : vector<8x32xf32>
    %186 = tpu.matmul %184, %185, %cst_56 {dimension_numbers = #tpu.dot_dimension_numbers<[1], [0], [0], [1], [0, 0, 1, 1], [], []>} : vector<8x8xbf16>, vector<8x32xbf16>, vector<8x32xf32> -> vector<8x32xf32>
    %187 = arith.truncf %186 : vector<8x32xf32> to vector<8x32xbf16>
    %188 = vector.extract_strided_slice %40 {offsets = [32, 0], sizes = [32, 128], strides = [1, 1]} : vector<128x128xbf16> to vector<32x128xbf16>
    %cst_57 = arith.constant dense<0.000000e+00> : vector<8x128xf32>
    %189 = tpu.matmul %187, %188, %cst_57 {dimension_numbers = #tpu.dot_dimension_numbers<[1], [0], [0], [1], [0, 0, 1, 1], [], []>} : vector<8x32xbf16>, vector<32x128xbf16>, vector<8x128xf32> -> vector<8x128xf32>
    %190 = arith.addf %165, %189 : vector<8x128xf32>
    %191 = vector.extract_strided_slice %141 {offsets = [0, 64], sizes = [8, 32], strides = [1, 1]} : vector<8x384xf32> to vector<8x32xf32>
    %192 = vector.extract_strided_slice %141 {offsets = [0, 192], sizes = [8, 32], strides = [1, 1]} : vector<8x384xf32> to vector<8x32xf32>
    %193 = vector.extract_strided_slice %141 {offsets = [0, 320], sizes = [8, 32], strides = [1, 1]} : vector<8x384xf32> to vector<8x32xf32>
    %194 = arith.truncf %191 : vector<8x32xf32> to vector<8x32xbf16>
    %195 = arith.truncf %192 : vector<8x32xf32> to vector<8x32xbf16>
    "tpu.trace_start"() <{level = 10 : i32, message = "td,sd->ts"}> : () -> ()
    %cst_58 = arith.constant dense<0.000000e+00> : vector<8x8xf32>
    %196 = tpu.matmul %194, %195, %cst_58 {dimension_numbers = #tpu.dot_dimension_numbers<[1], [1], [0], [0], [0, 0, 1, 0], [], []>} : vector<8x32xbf16>, vector<8x32xbf16>, vector<8x8xf32> -> vector<8x8xf32>
    %cst_59 = arith.constant -1.000000e+30 : f32
    "tpu.trace_stop"() : () -> ()
    %197 = vector.broadcast %cst_59 : f32 to vector<8x8xf32>
    %198 = arith.select %38, %196, %197 : vector<8x8xi1>, vector<8x8xf32>
    %cst_60 = arith.constant dense<0xFF800000> : vector<8xf32>
    %199 = vector.multi_reduction <maximumf>, %198, %cst_60 [1] : vector<8x8xf32> to vector<8xf32>
    %200 = vector.shape_cast %199 : vector<8xf32> to vector<8x1xf32>
    %201 = vector.broadcast %200 : vector<8x1xf32> to vector<8x8xf32>
    %202 = arith.subf %198, %201 : vector<8x8xf32>
    %203 = math.exp %202 : vector<8x8xf32>
    %cst_61 = arith.constant dense<0.000000e+00> : vector<8xf32>
    %204 = vector.multi_reduction <add>, %203, %cst_61 [1] : vector<8x8xf32> to vector<8xf32>
    %205 = vector.shape_cast %204 : vector<8xf32> to vector<8x1xf32>
    %206 = tpu.reciprocal %205 {approx = true} : vector<8x1xf32> -> vector<8x1xf32>
    %207 = vector.broadcast %206 : vector<8x1xf32> to vector<8x8xf32>
    %208 = arith.mulf %203, %207 : vector<8x8xf32>
    %209 = arith.truncf %208 : vector<8x8xf32> to vector<8x8xbf16>
    %210 = arith.truncf %193 : vector<8x32xf32> to vector<8x32xbf16>
    %cst_62 = arith.constant dense<0.000000e+00> : vector<8x32xf32>
    %211 = tpu.matmul %209, %210, %cst_62 {dimension_numbers = #tpu.dot_dimension_numbers<[1], [0], [0], [1], [0, 0, 1, 1], [], []>} : vector<8x8xbf16>, vector<8x32xbf16>, vector<8x32xf32> -> vector<8x32xf32>
    %212 = arith.truncf %211 : vector<8x32xf32> to vector<8x32xbf16>
    %213 = vector.extract_strided_slice %40 {offsets = [64, 0], sizes = [32, 128], strides = [1, 1]} : vector<128x128xbf16> to vector<32x128xbf16>
    %cst_63 = arith.constant dense<0.000000e+00> : vector<8x128xf32>
    %214 = tpu.matmul %212, %213, %cst_63 {dimension_numbers = #tpu.dot_dimension_numbers<[1], [0], [0], [1], [0, 0, 1, 1], [], []>} : vector<8x32xbf16>, vector<32x128xbf16>, vector<8x128xf32> -> vector<8x128xf32>
    %215 = arith.addf %190, %214 : vector<8x128xf32>
    %216 = vector.extract_strided_slice %141 {offsets = [0, 96], sizes = [8, 32], strides = [1, 1]} : vector<8x384xf32> to vector<8x32xf32>
    %217 = vector.extract_strided_slice %141 {offsets = [0, 224], sizes = [8, 32], strides = [1, 1]} : vector<8x384xf32> to vector<8x32xf32>
    %218 = vector.extract_strided_slice %141 {offsets = [0, 352], sizes = [8, 32], strides = [1, 1]} : vector<8x384xf32> to vector<8x32xf32>
    %219 = arith.truncf %216 : vector<8x32xf32> to vector<8x32xbf16>
    %220 = arith.truncf %217 : vector<8x32xf32> to vector<8x32xbf16>
    "tpu.trace_start"() <{level = 10 : i32, message = "td,sd->ts"}> : () -> ()
    %cst_64 = arith.constant dense<0.000000e+00> : vector<8x8xf32>
    %221 = tpu.matmul %219, %220, %cst_64 {dimension_numbers = #tpu.dot_dimension_numbers<[1], [1], [0], [0], [0, 0, 1, 0], [], []>} : vector<8x32xbf16>, vector<8x32xbf16>, vector<8x8xf32> -> vector<8x8xf32>
    %cst_65 = arith.constant -1.000000e+30 : f32
    "tpu.trace_stop"() : () -> ()
    %222 = vector.broadcast %cst_65 : f32 to vector<8x8xf32>
    %223 = arith.select %38, %221, %222 : vector<8x8xi1>, vector<8x8xf32>
    %cst_66 = arith.constant dense<0xFF800000> : vector<8xf32>
    %224 = vector.multi_reduction <maximumf>, %223, %cst_66 [1] : vector<8x8xf32> to vector<8xf32>
    %225 = vector.shape_cast %224 : vector<8xf32> to vector<8x1xf32>
    %226 = vector.broadcast %225 : vector<8x1xf32> to vector<8x8xf32>
    %227 = arith.subf %223, %226 : vector<8x8xf32>
    %228 = math.exp %227 : vector<8x8xf32>
    %cst_67 = arith.constant dense<0.000000e+00> : vector<8xf32>
    %229 = vector.multi_reduction <add>, %228, %cst_67 [1] : vector<8x8xf32> to vector<8xf32>
    %230 = vector.shape_cast %229 : vector<8xf32> to vector<8x1xf32>
    %231 = tpu.reciprocal %230 {approx = true} : vector<8x1xf32> -> vector<8x1xf32>
    %232 = vector.broadcast %231 : vector<8x1xf32> to vector<8x8xf32>
    %233 = arith.mulf %228, %232 : vector<8x8xf32>
    %234 = arith.truncf %233 : vector<8x8xf32> to vector<8x8xbf16>
    %235 = arith.truncf %218 : vector<8x32xf32> to vector<8x32xbf16>
    %cst_68 = arith.constant dense<0.000000e+00> : vector<8x32xf32>
    %236 = tpu.matmul %234, %235, %cst_68 {dimension_numbers = #tpu.dot_dimension_numbers<[1], [0], [0], [1], [0, 0, 1, 1], [], []>} : vector<8x8xbf16>, vector<8x32xbf16>, vector<8x32xf32> -> vector<8x32xf32>
    %237 = arith.truncf %236 : vector<8x32xf32> to vector<8x32xbf16>
    %238 = vector.extract_strided_slice %40 {offsets = [96, 0], sizes = [32, 128], strides = [1, 1]} : vector<128x128xbf16> to vector<32x128xbf16>
    %cst_69 = arith.constant dense<0.000000e+00> : vector<8x128xf32>
    %239 = tpu.matmul %237, %238, %cst_69 {dimension_numbers = #tpu.dot_dimension_numbers<[1], [0], [0], [1], [0, 0, 1, 1], [], []>} : vector<8x32xbf16>, vector<32x128xbf16>, vector<8x128xf32> -> vector<8x128xf32>
    %240 = arith.addf %215, %239 : vector<8x128xf32>
    %241 = tpu.concatenate %140, %240 in 0 : vector<8x128xf32>, vector<8x128xf32> -> vector<16x128xf32>
    %242 = arith.addf %3, %241 : vector<16x128xf32>
    %c0_70 = arith.constant 0 : index
    %c0_71 = arith.constant 0 : index
    %c0_72 = arith.constant 0 : index
    %243 = vector.load %arg8[%c0_70, %c0_71, %c0_72] : memref<1x1x128xf32, #tpu.memory_space<vmem>>, vector<1x1x128xf32>
    %244 = vector.shape_cast %243 : vector<1x1x128xf32> to vector<1x128xf32>
    %245 = vector.broadcast %244 : vector<1x128xf32> to vector<16x128xf32>
    %246 = arith.addf %242, %245 : vector<16x128xf32>
    %c0_73 = arith.constant 0 : index
    %c0_74 = arith.constant 0 : index
    %c0_75 = arith.constant 0 : index
    %247 = vector.load %arg9[%c0_73, %c0_74, %c0_75] : memref<1x1x128xf32, #tpu.memory_space<vmem>>, vector<1x1x128xf32>
    %248 = vector.shape_cast %247 : vector<1x1x128xf32> to vector<1x128xf32>
    %c0_76 = arith.constant 0 : index
    %c0_77 = arith.constant 0 : index
    %c0_78 = arith.constant 0 : index
    %249 = vector.load %arg10[%c0_76, %c0_77, %c0_78] : memref<1x1x128xf32, #tpu.memory_space<vmem>>, vector<1x1x128xf32>
    %250 = vector.shape_cast %249 : vector<1x1x128xf32> to vector<1x128xf32>
    %cst_79 = arith.constant dense<0.000000e+00> : vector<16xf32>
    %251 = vector.multi_reduction <add>, %246, %cst_79 [1] : vector<16x128xf32> to vector<16xf32>
    %252 = vector.shape_cast %251 : vector<16xf32> to vector<16x1xf32>
    %cst_80 = arith.constant 1.280000e+02 : f32
    %253 = vector.broadcast %cst_80 : f32 to vector<16x1xf32>
    %254 = arith.divf %252, %253 : vector<16x1xf32>
    %255 = vector.broadcast %254 : vector<16x1xf32> to vector<16x128xf32>
    %256 = arith.subf %246, %255 : vector<16x128xf32>
    %257 = arith.mulf %256, %256 : vector<16x128xf32>
    %cst_81 = arith.constant dense<0.000000e+00> : vector<16xf32>
    %258 = vector.multi_reduction <add>, %257, %cst_81 [1] : vector<16x128xf32> to vector<16xf32>
    %259 = vector.shape_cast %258 : vector<16xf32> to vector<16x1xf32>
    %cst_82 = arith.constant 1.280000e+02 : f32
    %260 = vector.broadcast %cst_82 : f32 to vector<16x1xf32>
    %261 = arith.divf %259, %260 : vector<16x1xf32>
    %cst_83 = arith.constant 9.99999974E-6 : f32
    %262 = vector.broadcast %cst_83 : f32 to vector<16x1xf32>
    %263 = arith.addf %261, %262 : vector<16x1xf32>
    %264 = math.rsqrt %263 : vector<16x1xf32>
    %265 = vector.broadcast %264 : vector<16x1xf32> to vector<16x128xf32>
    %266 = arith.mulf %256, %265 : vector<16x128xf32>
    %267 = vector.broadcast %248 : vector<1x128xf32> to vector<16x128xf32>
    %268 = arith.mulf %266, %267 : vector<16x128xf32>
    %269 = vector.broadcast %250 : vector<1x128xf32> to vector<16x128xf32>
    %270 = arith.addf %268, %269 : vector<16x128xf32>
    %271 = arith.truncf %270 : vector<16x128xf32> to vector<16x128xbf16>
    %c0_84 = arith.constant 0 : index
    %c0_85 = arith.constant 0 : index
    %c0_86 = arith.constant 0 : index
    %272 = vector.load %arg11[%c0_84, %c0_85, %c0_86] : memref<1x128x512xbf16, #tpu.memory_space<vmem>>, vector<1x128x512xbf16>
    %273 = vector.shape_cast %272 : vector<1x128x512xbf16> to vector<128x512xbf16>
    %cst_87 = arith.constant dense<0.000000e+00> : vector<16x512xf32>
    %274 = tpu.matmul %271, %273, %cst_87 {dimension_numbers = #tpu.dot_dimension_numbers<[1], [0], [0], [1], [0, 0, 1, 1], [], []>} : vector<16x128xbf16>, vector<128x512xbf16>, vector<16x512xf32> -> vector<16x512xf32>
    %c0_88 = arith.constant 0 : index
    %c0_89 = arith.constant 0 : index
    %c0_90 = arith.constant 0 : index
    %275 = vector.load %arg12[%c0_88, %c0_89, %c0_90] : memref<1x1x512xf32, #tpu.memory_space<vmem>>, vector<1x1x512xf32>
    %276 = vector.shape_cast %275 : vector<1x1x512xf32> to vector<1x512xf32>
    %277 = vector.broadcast %276 : vector<1x512xf32> to vector<16x512xf32>
    %278 = arith.addf %274, %277 : vector<16x512xf32>
    %279 = arith.mulf %278, %278 : vector<16x512xf32>
    %280 = arith.mulf %278, %279 : vector<16x512xf32>
    %cst_91 = arith.constant 4.471500e-02 : f32
    %281 = vector.broadcast %cst_91 : f32 to vector<16x512xf32>
    %282 = arith.mulf %281, %280 : vector<16x512xf32>
    %283 = arith.addf %278, %282 : vector<16x512xf32>
    %cst_92 = arith.constant 0.797884583 : f32
    %284 = vector.broadcast %cst_92 : f32 to vector<16x512xf32>
    %285 = arith.mulf %284, %283 : vector<16x512xf32>
    %286 = math.tanh %285 : vector<16x512xf32>
    %cst_93 = arith.constant 1.000000e+00 : f32
    %287 = vector.broadcast %cst_93 : f32 to vector<16x512xf32>
    %288 = arith.addf %287, %286 : vector<16x512xf32>
    %cst_94 = arith.constant 5.000000e-01 : f32
    %289 = vector.broadcast %cst_94 : f32 to vector<16x512xf32>
    %290 = arith.mulf %289, %288 : vector<16x512xf32>
    %291 = arith.mulf %278, %290 : vector<16x512xf32>
    %292 = arith.truncf %291 : vector<16x512xf32> to vector<16x512xbf16>
    %c0_95 = arith.constant 0 : index
    %c0_96 = arith.constant 0 : index
    %c0_97 = arith.constant 0 : index
    %293 = vector.load %arg13[%c0_95, %c0_96, %c0_97] : memref<1x512x128xbf16, #tpu.memory_space<vmem>>, vector<1x512x128xbf16>
    %294 = vector.shape_cast %293 : vector<1x512x128xbf16> to vector<512x128xbf16>
    %cst_98 = arith.constant dense<0.000000e+00> : vector<16x128xf32>
    %295 = tpu.matmul %292, %294, %cst_98 {dimension_numbers = #tpu.dot_dimension_numbers<[1], [0], [0], [1], [0, 0, 1, 1], [], []>} : vector<16x512xbf16>, vector<512x128xbf16>, vector<16x128xf32> -> vector<16x128xf32>
    %c0_99 = arith.constant 0 : index
    %c0_100 = arith.constant 0 : index
    %c0_101 = arith.constant 0 : index
    %296 = vector.load %arg14[%c0_99, %c0_100, %c0_101] : memref<1x1x128xf32, #tpu.memory_space<vmem>>, vector<1x1x128xf32>
    %297 = vector.shape_cast %296 : vector<1x1x128xf32> to vector<1x128xf32>
    %298 = vector.broadcast %297 : vector<1x128xf32> to vector<16x128xf32>
    %299 = arith.addf %295, %298 : vector<16x128xf32>
    %300 = arith.addf %246, %299 : vector<16x128xf32>
    %c0_102 = arith.constant 0 : index
    %c0_103 = arith.constant 0 : index
    %301 = vector.load %arg17[%c0_102, %c0_103] : memref<16x128xf32, #tpu.memory_space<vmem>>, vector<16x128xf32>
    tpu.vector_store %arg17[%c0_102, %c0_103], %300 {strides = array<i32>} : memref<16x128xf32, #tpu.memory_space<vmem>>, vector<16x128xf32>,
    %c1_i32 = arith.constant 1 : i32
    %302 = arith.cmpi eq, %arg1, %c1_i32 : i32
    %303 = arith.extui %302 : i1 to i32
    %c0_i32_104 = arith.constant 0 : i32
    %304 = arith.cmpi ne, %303, %c0_i32_104 : i32
    scf.if %304 {
      %c0_105 = arith.constant 0 : index
      %c0_106 = arith.constant 0 : index
      %305 = vector.load %arg15[%c0_105, %c0_106] : memref<1x128xf32, #tpu.memory_space<vmem>>, vector<1x128xf32>
      %c0_107 = arith.constant 0 : index
      %c0_108 = arith.constant 0 : index
      %306 = vector.load %arg16[%c0_107, %c0_108] : memref<1x128xf32, #tpu.memory_space<vmem>>, vector<1x128xf32>
      %cst_109 = arith.constant dense<0.000000e+00> : vector<16xf32>
      %307 = vector.multi_reduction <add>, %300, %cst_109 [1] : vector<16x128xf32> to vector<16xf32>
      %308 = vector.shape_cast %307 : vector<16xf32> to vector<16x1xf32>
      %cst_110 = arith.constant 1.280000e+02 : f32
      %309 = vector.broadcast %cst_110 : f32 to vector<16x1xf32>
      %310 = arith.divf %308, %309 : vector<16x1xf32>
      %311 = vector.broadcast %310 : vector<16x1xf32> to vector<16x128xf32>
      %312 = arith.subf %300, %311 : vector<16x128xf32>
      %313 = arith.mulf %312, %312 : vector<16x128xf32>
      %cst_111 = arith.constant dense<0.000000e+00> : vector<16xf32>
      %314 = vector.multi_reduction <add>, %313, %cst_111 [1] : vector<16x128xf32> to vector<16xf32>
      %315 = vector.shape_cast %314 : vector<16xf32> to vector<16x1xf32>
      %cst_112 = arith.constant 1.280000e+02 : f32
      %316 = vector.broadcast %cst_112 : f32 to vector<16x1xf32>
      %317 = arith.divf %315, %316 : vector<16x1xf32>
      %cst_113 = arith.constant 9.99999974E-6 : f32
      %318 = vector.broadcast %cst_113 : f32 to vector<16x1xf32>
      %319 = arith.addf %317, %318 : vector<16x1xf32>
      %320 = math.rsqrt %319 : vector<16x1xf32>
      %321 = vector.broadcast %320 : vector<16x1xf32> to vector<16x128xf32>
      %322 = arith.mulf %312, %321 : vector<16x128xf32>
      %323 = vector.broadcast %305 : vector<1x128xf32> to vector<16x128xf32>
      %324 = arith.mulf %322, %323 : vector<16x128xf32>
      %325 = vector.broadcast %306 : vector<1x128xf32> to vector<16x128xf32>
      %326 = arith.addf %324, %325 : vector<16x128xf32>
      %c0_114 = arith.constant 0 : index
      %c0_115 = arith.constant 0 : index
      %327 = vector.load %arg17[%c0_114, %c0_115] : memref<16x128xf32, #tpu.memory_space<vmem>>, vector<16x128xf32>
      tpu.vector_store %arg17[%c0_114, %c0_115], %326 {strides = array<i32>} : memref<16x128xf32, #tpu.memory_space<vmem>>, vector<16x128xf32>,
    } else {
    }
    return
  }
  func.func @transform_0(%arg0: i32, %arg1: i32) -> (i32, i32) {
    %c0_i32 = arith.constant 0 : i32
    %c0_i32_0 = arith.constant 0 : i32
    return %arg0, %c0_i32 : i32, i32
  }
  func.func @transform_1(%arg0: i32, %arg1: i32) -> (i32, i32, i32) {
    %c0_i32 = arith.constant 0 : i32
    %c0_i32_0 = arith.constant 0 : i32
    %c0_i32_1 = arith.constant 0 : i32
    return %arg1, %c0_i32, %c0_i32_0 : i32, i32, i32
  }
  func.func @transform_2(%arg0: i32, %arg1: i32) -> (i32, i32, i32) {
    %c0_i32 = arith.constant 0 : i32
    %c0_i32_0 = arith.constant 0 : i32
    %c0_i32_1 = arith.constant 0 : i32
    return %arg1, %c0_i32, %c0_i32_0 : i32, i32, i32
  }
  func.func @transform_3(%arg0: i32, %arg1: i32) -> (i32, i32, i32) {
    %c0_i32 = arith.constant 0 : i32
    %c0_i32_0 = arith.constant 0 : i32
    %c0_i32_1 = arith.constant 0 : i32
    return %arg1, %c0_i32, %c0_i32_0 : i32, i32, i32
  }
  func.func @transform_4(%arg0: i32, %arg1: i32) -> (i32, i32, i32) {
    %c0_i32 = arith.constant 0 : i32
    %c0_i32_0 = arith.constant 0 : i32
    %c0_i32_1 = arith.constant 0 : i32
    return %arg1, %c0_i32, %c0_i32_0 : i32, i32, i32
  }
  func.func @transform_5(%arg0: i32, %arg1: i32) -> (i32, i32, i32) {
    %c0_i32 = arith.constant 0 : i32
    %c0_i32_0 = arith.constant 0 : i32
    %c0_i32_1 = arith.constant 0 : i32
    return %arg1, %c0_i32, %c0_i32_0 : i32, i32, i32
  }
  func.func @transform_6(%arg0: i32, %arg1: i32) -> (i32, i32, i32) {
    %c0_i32 = arith.constant 0 : i32
    %c0_i32_0 = arith.constant 0 : i32
    %c0_i32_1 = arith.constant 0 : i32
    return %arg1, %c0_i32, %c0_i32_0 : i32, i32, i32
  }
  func.func @transform_7(%arg0: i32, %arg1: i32) -> (i32, i32, i32) {
    %c0_i32 = arith.constant 0 : i32
    %c0_i32_0 = arith.constant 0 : i32
    %c0_i32_1 = arith.constant 0 : i32
    return %arg1, %c0_i32, %c0_i32_0 : i32, i32, i32
  }
  func.func @transform_8(%arg0: i32, %arg1: i32) -> (i32, i32, i32) {
    %c0_i32 = arith.constant 0 : i32
    %c0_i32_0 = arith.constant 0 : i32
    %c0_i32_1 = arith.constant 0 : i32
    return %arg1, %c0_i32, %c0_i32_0 : i32, i32, i32
  }
  func.func @transform_9(%arg0: i32, %arg1: i32) -> (i32, i32, i32) {
    %c0_i32 = arith.constant 0 : i32
    %c0_i32_0 = arith.constant 0 : i32
    %c0_i32_1 = arith.constant 0 : i32
    return %arg1, %c0_i32, %c0_i32_0 : i32, i32, i32
  }
  func.func @transform_10(%arg0: i32, %arg1: i32) -> (i32, i32, i32) {
    %c0_i32 = arith.constant 0 : i32
    %c0_i32_0 = arith.constant 0 : i32
    %c0_i32_1 = arith.constant 0 : i32
    return %arg1, %c0_i32, %c0_i32_0 : i32, i32, i32
  }
  func.func @transform_11(%arg0: i32, %arg1: i32) -> (i32, i32, i32) {
    %c0_i32 = arith.constant 0 : i32
    %c0_i32_0 = arith.constant 0 : i32
    %c0_i32_1 = arith.constant 0 : i32
    return %arg1, %c0_i32, %c0_i32_0 : i32, i32, i32
  }
  func.func @transform_12(%arg0: i32, %arg1: i32) -> (i32, i32, i32) {
    %c0_i32 = arith.constant 0 : i32
    %c0_i32_0 = arith.constant 0 : i32
    %c0_i32_1 = arith.constant 0 : i32
    return %arg1, %c0_i32, %c0_i32_0 : i32, i32, i32
  }
  func.func @transform_13(%arg0: i32, %arg1: i32) -> (i32, i32) {
    %c0_i32 = arith.constant 0 : i32
    %c0_i32_0 = arith.constant 0 : i32
    %c0_i32_1 = arith.constant 0 : i32
    return %c0_i32, %c0_i32_0 : i32, i32
  }
  func.func @transform_14(%arg0: i32, %arg1: i32) -> (i32, i32) {
    %c0_i32 = arith.constant 0 : i32
    %c0_i32_0 = arith.constant 0 : i32
    %c0_i32_1 = arith.constant 0 : i32
    return %c0_i32, %c0_i32_0 : i32, i32
  }
  func.func @transform_15(%arg0: i32, %arg1: i32) -> (i32, i32) {
    %c0_i32 = arith.constant 0 : i32
    %c0_i32_0 = arith.constant 0 : i32
    return %arg0, %c0_i32 : i32, i32
  }
}

module attributes {stable_mosaic.version = 11 : i64} {
  func.func @_stack_kernel(%arg0: i32, %arg1: i32, %arg2: memref<32x128xf32, #tpu.memory_space<vmem>>, %arg3: memref<1x1x128xf32, #tpu.memory_space<vmem>>, %arg4: memref<1x1x128xf32, #tpu.memory_space<vmem>>, %arg5: memref<1x128x384xbf16, #tpu.memory_space<vmem>>, %arg6: memref<1x1x384xf32, #tpu.memory_space<vmem>>, %arg7: memref<1x128x128xbf16, #tpu.memory_space<vmem>>, %arg8: memref<1x1x128xf32, #tpu.memory_space<vmem>>, %arg9: memref<1x1x128xf32, #tpu.memory_space<vmem>>, %arg10: memref<1x1x128xf32, #tpu.memory_space<vmem>>, %arg11: memref<1x128x512xbf16, #tpu.memory_space<vmem>>, %arg12: memref<1x1x512xf32, #tpu.memory_space<vmem>>, %arg13: memref<1x512x128xbf16, #tpu.memory_space<vmem>>, %arg14: memref<1x1x128xf32, #tpu.memory_space<vmem>>, %arg15: memref<1x128xf32, #tpu.memory_space<vmem>>, %arg16: memref<1x128xf32, #tpu.memory_space<vmem>>, %arg17: memref<32x128xf32, #tpu.memory_space<vmem>>) attributes {dimension_semantics = [#tpu.dimension_semantics<parallel>, #tpu.dimension_semantics<arbitrary>], iteration_bounds = array<i64: 2, 2>, scalar_prefetch = 0 : i64, scratch_operands = 0 : i64, tpu.core_type = #tpu.core_type<tc>, window_params = [{transform_indices = @transform_0, window_bounds = array<i64: 32, 128>}, {transform_indices = @transform_1, window_bounds = array<i64: 1, 1, 128>}, {transform_indices = @transform_2, window_bounds = array<i64: 1, 1, 128>}, {transform_indices = @transform_3, window_bounds = array<i64: 1, 128, 384>}, {transform_indices = @transform_4, window_bounds = array<i64: 1, 1, 384>}, {transform_indices = @transform_5, window_bounds = array<i64: 1, 128, 128>}, {transform_indices = @transform_6, window_bounds = array<i64: 1, 1, 128>}, {transform_indices = @transform_7, window_bounds = array<i64: 1, 1, 128>}, {transform_indices = @transform_8, window_bounds = array<i64: 1, 1, 128>}, {transform_indices = @transform_9, window_bounds = array<i64: 1, 128, 512>}, {transform_indices = @transform_10, window_bounds = array<i64: 1, 1, 512>}, {transform_indices = @transform_11, window_bounds = array<i64: 1, 512, 128>}, {transform_indices = @transform_12, window_bounds = array<i64: 1, 1, 128>}, {pipeline_mode = #tpu.pipeline_mode<synchronous>, transform_indices = @transform_13, window_bounds = array<i64: 1, 128>}, {pipeline_mode = #tpu.pipeline_mode<synchronous>, transform_indices = @transform_14, window_bounds = array<i64: 1, 128>}, {transform_indices = @transform_15, window_bounds = array<i64: 32, 128>}]} {
    %c0_i32 = arith.constant 0 : i32
    %0 = arith.cmpi eq, %arg1, %c0_i32 : i32
    %1 = arith.extui %0 : i1 to i32
    %c0_i32_0 = arith.constant 0 : i32
    %2 = arith.cmpi ne, %1, %c0_i32_0 : i32
    scf.if %2 {
      %c0_96 = arith.constant 0 : index
      %c0_97 = arith.constant 0 : index
      %283 = vector.load %arg2[%c0_96, %c0_97] : memref<32x128xf32, #tpu.memory_space<vmem>>, vector<32x128xf32>
      %c0_98 = arith.constant 0 : index
      %c0_99 = arith.constant 0 : index
      %284 = vector.load %arg17[%c0_98, %c0_99] : memref<32x128xf32, #tpu.memory_space<vmem>>, vector<32x128xf32>
      tpu.vector_store %arg17[%c0_98, %c0_99], %283 {strides = array<i32>} : memref<32x128xf32, #tpu.memory_space<vmem>>, vector<32x128xf32>,
    } else {
    }
    %c0 = arith.constant 0 : index
    %c0_1 = arith.constant 0 : index
    %3 = vector.load %arg17[%c0, %c0_1] : memref<32x128xf32, #tpu.memory_space<vmem>>, vector<32x128xf32>
    %c0_2 = arith.constant 0 : index
    %c0_3 = arith.constant 0 : index
    %c0_4 = arith.constant 0 : index
    %4 = vector.load %arg3[%c0_2, %c0_3, %c0_4] : memref<1x1x128xf32, #tpu.memory_space<vmem>>, vector<1x1x128xf32>
    %5 = vector.shape_cast %4 : vector<1x1x128xf32> to vector<1x128xf32>
    %c0_5 = arith.constant 0 : index
    %c0_6 = arith.constant 0 : index
    %c0_7 = arith.constant 0 : index
    %6 = vector.load %arg4[%c0_5, %c0_6, %c0_7] : memref<1x1x128xf32, #tpu.memory_space<vmem>>, vector<1x1x128xf32>
    %7 = vector.shape_cast %6 : vector<1x1x128xf32> to vector<1x128xf32>
    %cst = arith.constant dense<0.000000e+00> : vector<32xf32>
    %8 = vector.multi_reduction <add>, %3, %cst [1] : vector<32x128xf32> to vector<32xf32>
    %9 = vector.shape_cast %8 : vector<32xf32> to vector<32x1xf32>
    %cst_8 = arith.constant 1.280000e+02 : f32
    %10 = vector.broadcast %cst_8 : f32 to vector<32x1xf32>
    %11 = arith.divf %9, %10 : vector<32x1xf32>
    %12 = vector.broadcast %11 : vector<32x1xf32> to vector<32x128xf32>
    %13 = arith.subf %3, %12 : vector<32x128xf32>
    %14 = arith.mulf %13, %13 : vector<32x128xf32>
    %cst_9 = arith.constant dense<0.000000e+00> : vector<32xf32>
    %15 = vector.multi_reduction <add>, %14, %cst_9 [1] : vector<32x128xf32> to vector<32xf32>
    %16 = vector.shape_cast %15 : vector<32xf32> to vector<32x1xf32>
    %cst_10 = arith.constant 1.280000e+02 : f32
    %17 = vector.broadcast %cst_10 : f32 to vector<32x1xf32>
    %18 = arith.divf %16, %17 : vector<32x1xf32>
    %cst_11 = arith.constant 9.99999974E-6 : f32
    %19 = vector.broadcast %cst_11 : f32 to vector<32x1xf32>
    %20 = arith.addf %18, %19 : vector<32x1xf32>
    %21 = math.rsqrt %20 : vector<32x1xf32>
    %22 = vector.broadcast %21 : vector<32x1xf32> to vector<32x128xf32>
    %23 = arith.mulf %13, %22 : vector<32x128xf32>
    %24 = vector.broadcast %5 : vector<1x128xf32> to vector<32x128xf32>
    %25 = arith.mulf %23, %24 : vector<32x128xf32>
    %26 = vector.broadcast %7 : vector<1x128xf32> to vector<32x128xf32>
    %27 = arith.addf %25, %26 : vector<32x128xf32>
    %28 = arith.truncf %27 : vector<32x128xf32> to vector<32x128xbf16>
    %c0_12 = arith.constant 0 : index
    %c0_13 = arith.constant 0 : index
    %c0_14 = arith.constant 0 : index
    %29 = vector.load %arg5[%c0_12, %c0_13, %c0_14] : memref<1x128x384xbf16, #tpu.memory_space<vmem>>, vector<1x128x384xbf16>
    %30 = vector.shape_cast %29 : vector<1x128x384xbf16> to vector<128x384xbf16>
    %cst_15 = arith.constant dense<0.000000e+00> : vector<32x384xf32>
    %31 = tpu.matmul %28, %30, %cst_15 {dimension_numbers = #tpu.dot_dimension_numbers<[1], [0], [0], [1], [0, 0, 1, 1], [], []>} : vector<32x128xbf16>, vector<128x384xbf16>, vector<32x384xf32> -> vector<32x384xf32>
    %c0_16 = arith.constant 0 : index
    %c0_17 = arith.constant 0 : index
    %c0_18 = arith.constant 0 : index
    %32 = vector.load %arg6[%c0_16, %c0_17, %c0_18] : memref<1x1x384xf32, #tpu.memory_space<vmem>>, vector<1x1x384xf32>
    %33 = vector.shape_cast %32 : vector<1x1x384xf32> to vector<1x384xf32>
    %34 = vector.broadcast %33 : vector<1x384xf32> to vector<32x384xf32>
    %35 = arith.addf %31, %34 : vector<32x384xf32>
    %c0_19 = arith.constant 0 : index
    %c0_20 = arith.constant 0 : index
    %c0_21 = arith.constant 0 : index
    %36 = vector.load %arg7[%c0_19, %c0_20, %c0_21] : memref<1x128x128xbf16, #tpu.memory_space<vmem>>, vector<1x128x128xbf16>
    %37 = vector.shape_cast %36 : vector<1x128x128xbf16> to vector<128x128xbf16>
    %38 = vector.extract_strided_slice %35 {offsets = [0, 0], sizes = [16, 384], strides = [1, 1]} : vector<32x384xf32> to vector<16x384xf32>
    %39 = vector.extract_strided_slice %38 {offsets = [0, 0], sizes = [16, 32], strides = [1, 1]} : vector<16x384xf32> to vector<16x32xf32>
    %40 = vector.extract_strided_slice %38 {offsets = [0, 128], sizes = [16, 32], strides = [1, 1]} : vector<16x384xf32> to vector<16x32xf32>
    %41 = vector.extract_strided_slice %38 {offsets = [0, 256], sizes = [16, 32], strides = [1, 1]} : vector<16x384xf32> to vector<16x32xf32>
    %42 = arith.truncf %39 : vector<16x32xf32> to vector<16x32xbf16>
    %43 = arith.truncf %40 : vector<16x32xf32> to vector<16x32xbf16>
    "tpu.trace_start"() <{level = 10 : i32, message = "td,sd->ts"}> : () -> ()
    %cst_22 = arith.constant dense<0.000000e+00> : vector<16x16xf32>
    %44 = tpu.matmul %42, %43, %cst_22 {dimension_numbers = #tpu.dot_dimension_numbers<[1], [1], [0], [0], [0, 0, 1, 0], [], []>} : vector<16x32xbf16>, vector<16x32xbf16>, vector<16x16xf32> -> vector<16x16xf32>
    "tpu.trace_stop"() : () -> ()
    %cst_23 = arith.constant dense<0xFF800000> : vector<16xf32>
    %45 = vector.multi_reduction <maximumf>, %44, %cst_23 [1] : vector<16x16xf32> to vector<16xf32>
    %46 = vector.shape_cast %45 : vector<16xf32> to vector<16x1xf32>
    %47 = vector.broadcast %46 : vector<16x1xf32> to vector<16x16xf32>
    %48 = arith.subf %44, %47 : vector<16x16xf32>
    %49 = math.exp %48 : vector<16x16xf32>
    %cst_24 = arith.constant dense<0.000000e+00> : vector<16xf32>
    %50 = vector.multi_reduction <add>, %49, %cst_24 [1] : vector<16x16xf32> to vector<16xf32>
    %51 = vector.shape_cast %50 : vector<16xf32> to vector<16x1xf32>
    %52 = tpu.reciprocal %51 {approx = true} : vector<16x1xf32> -> vector<16x1xf32>
    %53 = vector.broadcast %52 : vector<16x1xf32> to vector<16x16xf32>
    %54 = arith.mulf %49, %53 : vector<16x16xf32>
    %55 = arith.truncf %54 : vector<16x16xf32> to vector<16x16xbf16>
    %56 = arith.truncf %41 : vector<16x32xf32> to vector<16x32xbf16>
    %cst_25 = arith.constant dense<0.000000e+00> : vector<16x32xf32>
    %57 = tpu.matmul %55, %56, %cst_25 {dimension_numbers = #tpu.dot_dimension_numbers<[1], [0], [0], [1], [0, 0, 1, 1], [], []>} : vector<16x16xbf16>, vector<16x32xbf16>, vector<16x32xf32> -> vector<16x32xf32>
    %58 = arith.truncf %57 : vector<16x32xf32> to vector<16x32xbf16>
    %59 = vector.extract_strided_slice %37 {offsets = [0, 0], sizes = [32, 128], strides = [1, 1]} : vector<128x128xbf16> to vector<32x128xbf16>
    %cst_26 = arith.constant dense<0.000000e+00> : vector<16x128xf32>
    %60 = tpu.matmul %58, %59, %cst_26 {dimension_numbers = #tpu.dot_dimension_numbers<[1], [0], [0], [1], [0, 0, 1, 1], [], []>} : vector<16x32xbf16>, vector<32x128xbf16>, vector<16x128xf32> -> vector<16x128xf32>
    %61 = vector.extract_strided_slice %38 {offsets = [0, 32], sizes = [16, 32], strides = [1, 1]} : vector<16x384xf32> to vector<16x32xf32>
    %62 = vector.extract_strided_slice %38 {offsets = [0, 160], sizes = [16, 32], strides = [1, 1]} : vector<16x384xf32> to vector<16x32xf32>
    %63 = vector.extract_strided_slice %38 {offsets = [0, 288], sizes = [16, 32], strides = [1, 1]} : vector<16x384xf32> to vector<16x32xf32>
    %64 = arith.truncf %61 : vector<16x32xf32> to vector<16x32xbf16>
    %65 = arith.truncf %62 : vector<16x32xf32> to vector<16x32xbf16>
    "tpu.trace_start"() <{level = 10 : i32, message = "td,sd->ts"}> : () -> ()
    %cst_27 = arith.constant dense<0.000000e+00> : vector<16x16xf32>
    %66 = tpu.matmul %64, %65, %cst_27 {dimension_numbers = #tpu.dot_dimension_numbers<[1], [1], [0], [0], [0, 0, 1, 0], [], []>} : vector<16x32xbf16>, vector<16x32xbf16>, vector<16x16xf32> -> vector<16x16xf32>
    "tpu.trace_stop"() : () -> ()
    %cst_28 = arith.constant dense<0xFF800000> : vector<16xf32>
    %67 = vector.multi_reduction <maximumf>, %66, %cst_28 [1] : vector<16x16xf32> to vector<16xf32>
    %68 = vector.shape_cast %67 : vector<16xf32> to vector<16x1xf32>
    %69 = vector.broadcast %68 : vector<16x1xf32> to vector<16x16xf32>
    %70 = arith.subf %66, %69 : vector<16x16xf32>
    %71 = math.exp %70 : vector<16x16xf32>
    %cst_29 = arith.constant dense<0.000000e+00> : vector<16xf32>
    %72 = vector.multi_reduction <add>, %71, %cst_29 [1] : vector<16x16xf32> to vector<16xf32>
    %73 = vector.shape_cast %72 : vector<16xf32> to vector<16x1xf32>
    %74 = tpu.reciprocal %73 {approx = true} : vector<16x1xf32> -> vector<16x1xf32>
    %75 = vector.broadcast %74 : vector<16x1xf32> to vector<16x16xf32>
    %76 = arith.mulf %71, %75 : vector<16x16xf32>
    %77 = arith.truncf %76 : vector<16x16xf32> to vector<16x16xbf16>
    %78 = arith.truncf %63 : vector<16x32xf32> to vector<16x32xbf16>
    %cst_30 = arith.constant dense<0.000000e+00> : vector<16x32xf32>
    %79 = tpu.matmul %77, %78, %cst_30 {dimension_numbers = #tpu.dot_dimension_numbers<[1], [0], [0], [1], [0, 0, 1, 1], [], []>} : vector<16x16xbf16>, vector<16x32xbf16>, vector<16x32xf32> -> vector<16x32xf32>
    %80 = arith.truncf %79 : vector<16x32xf32> to vector<16x32xbf16>
    %81 = vector.extract_strided_slice %37 {offsets = [32, 0], sizes = [32, 128], strides = [1, 1]} : vector<128x128xbf16> to vector<32x128xbf16>
    %cst_31 = arith.constant dense<0.000000e+00> : vector<16x128xf32>
    %82 = tpu.matmul %80, %81, %cst_31 {dimension_numbers = #tpu.dot_dimension_numbers<[1], [0], [0], [1], [0, 0, 1, 1], [], []>} : vector<16x32xbf16>, vector<32x128xbf16>, vector<16x128xf32> -> vector<16x128xf32>
    %83 = arith.addf %60, %82 : vector<16x128xf32>
    %84 = vector.extract_strided_slice %38 {offsets = [0, 64], sizes = [16, 32], strides = [1, 1]} : vector<16x384xf32> to vector<16x32xf32>
    %85 = vector.extract_strided_slice %38 {offsets = [0, 192], sizes = [16, 32], strides = [1, 1]} : vector<16x384xf32> to vector<16x32xf32>
    %86 = vector.extract_strided_slice %38 {offsets = [0, 320], sizes = [16, 32], strides = [1, 1]} : vector<16x384xf32> to vector<16x32xf32>
    %87 = arith.truncf %84 : vector<16x32xf32> to vector<16x32xbf16>
    %88 = arith.truncf %85 : vector<16x32xf32> to vector<16x32xbf16>
    "tpu.trace_start"() <{level = 10 : i32, message = "td,sd->ts"}> : () -> ()
    %cst_32 = arith.constant dense<0.000000e+00> : vector<16x16xf32>
    %89 = tpu.matmul %87, %88, %cst_32 {dimension_numbers = #tpu.dot_dimension_numbers<[1], [1], [0], [0], [0, 0, 1, 0], [], []>} : vector<16x32xbf16>, vector<16x32xbf16>, vector<16x16xf32> -> vector<16x16xf32>
    "tpu.trace_stop"() : () -> ()
    %cst_33 = arith.constant dense<0xFF800000> : vector<16xf32>
    %90 = vector.multi_reduction <maximumf>, %89, %cst_33 [1] : vector<16x16xf32> to vector<16xf32>
    %91 = vector.shape_cast %90 : vector<16xf32> to vector<16x1xf32>
    %92 = vector.broadcast %91 : vector<16x1xf32> to vector<16x16xf32>
    %93 = arith.subf %89, %92 : vector<16x16xf32>
    %94 = math.exp %93 : vector<16x16xf32>
    %cst_34 = arith.constant dense<0.000000e+00> : vector<16xf32>
    %95 = vector.multi_reduction <add>, %94, %cst_34 [1] : vector<16x16xf32> to vector<16xf32>
    %96 = vector.shape_cast %95 : vector<16xf32> to vector<16x1xf32>
    %97 = tpu.reciprocal %96 {approx = true} : vector<16x1xf32> -> vector<16x1xf32>
    %98 = vector.broadcast %97 : vector<16x1xf32> to vector<16x16xf32>
    %99 = arith.mulf %94, %98 : vector<16x16xf32>
    %100 = arith.truncf %99 : vector<16x16xf32> to vector<16x16xbf16>
    %101 = arith.truncf %86 : vector<16x32xf32> to vector<16x32xbf16>
    %cst_35 = arith.constant dense<0.000000e+00> : vector<16x32xf32>
    %102 = tpu.matmul %100, %101, %cst_35 {dimension_numbers = #tpu.dot_dimension_numbers<[1], [0], [0], [1], [0, 0, 1, 1], [], []>} : vector<16x16xbf16>, vector<16x32xbf16>, vector<16x32xf32> -> vector<16x32xf32>
    %103 = arith.truncf %102 : vector<16x32xf32> to vector<16x32xbf16>
    %104 = vector.extract_strided_slice %37 {offsets = [64, 0], sizes = [32, 128], strides = [1, 1]} : vector<128x128xbf16> to vector<32x128xbf16>
    %cst_36 = arith.constant dense<0.000000e+00> : vector<16x128xf32>
    %105 = tpu.matmul %103, %104, %cst_36 {dimension_numbers = #tpu.dot_dimension_numbers<[1], [0], [0], [1], [0, 0, 1, 1], [], []>} : vector<16x32xbf16>, vector<32x128xbf16>, vector<16x128xf32> -> vector<16x128xf32>
    %106 = arith.addf %83, %105 : vector<16x128xf32>
    %107 = vector.extract_strided_slice %38 {offsets = [0, 96], sizes = [16, 32], strides = [1, 1]} : vector<16x384xf32> to vector<16x32xf32>
    %108 = vector.extract_strided_slice %38 {offsets = [0, 224], sizes = [16, 32], strides = [1, 1]} : vector<16x384xf32> to vector<16x32xf32>
    %109 = vector.extract_strided_slice %38 {offsets = [0, 352], sizes = [16, 32], strides = [1, 1]} : vector<16x384xf32> to vector<16x32xf32>
    %110 = arith.truncf %107 : vector<16x32xf32> to vector<16x32xbf16>
    %111 = arith.truncf %108 : vector<16x32xf32> to vector<16x32xbf16>
    "tpu.trace_start"() <{level = 10 : i32, message = "td,sd->ts"}> : () -> ()
    %cst_37 = arith.constant dense<0.000000e+00> : vector<16x16xf32>
    %112 = tpu.matmul %110, %111, %cst_37 {dimension_numbers = #tpu.dot_dimension_numbers<[1], [1], [0], [0], [0, 0, 1, 0], [], []>} : vector<16x32xbf16>, vector<16x32xbf16>, vector<16x16xf32> -> vector<16x16xf32>
    "tpu.trace_stop"() : () -> ()
    %cst_38 = arith.constant dense<0xFF800000> : vector<16xf32>
    %113 = vector.multi_reduction <maximumf>, %112, %cst_38 [1] : vector<16x16xf32> to vector<16xf32>
    %114 = vector.shape_cast %113 : vector<16xf32> to vector<16x1xf32>
    %115 = vector.broadcast %114 : vector<16x1xf32> to vector<16x16xf32>
    %116 = arith.subf %112, %115 : vector<16x16xf32>
    %117 = math.exp %116 : vector<16x16xf32>
    %cst_39 = arith.constant dense<0.000000e+00> : vector<16xf32>
    %118 = vector.multi_reduction <add>, %117, %cst_39 [1] : vector<16x16xf32> to vector<16xf32>
    %119 = vector.shape_cast %118 : vector<16xf32> to vector<16x1xf32>
    %120 = tpu.reciprocal %119 {approx = true} : vector<16x1xf32> -> vector<16x1xf32>
    %121 = vector.broadcast %120 : vector<16x1xf32> to vector<16x16xf32>
    %122 = arith.mulf %117, %121 : vector<16x16xf32>
    %123 = arith.truncf %122 : vector<16x16xf32> to vector<16x16xbf16>
    %124 = arith.truncf %109 : vector<16x32xf32> to vector<16x32xbf16>
    %cst_40 = arith.constant dense<0.000000e+00> : vector<16x32xf32>
    %125 = tpu.matmul %123, %124, %cst_40 {dimension_numbers = #tpu.dot_dimension_numbers<[1], [0], [0], [1], [0, 0, 1, 1], [], []>} : vector<16x16xbf16>, vector<16x32xbf16>, vector<16x32xf32> -> vector<16x32xf32>
    %126 = arith.truncf %125 : vector<16x32xf32> to vector<16x32xbf16>
    %127 = vector.extract_strided_slice %37 {offsets = [96, 0], sizes = [32, 128], strides = [1, 1]} : vector<128x128xbf16> to vector<32x128xbf16>
    %cst_41 = arith.constant dense<0.000000e+00> : vector<16x128xf32>
    %128 = tpu.matmul %126, %127, %cst_41 {dimension_numbers = #tpu.dot_dimension_numbers<[1], [0], [0], [1], [0, 0, 1, 1], [], []>} : vector<16x32xbf16>, vector<32x128xbf16>, vector<16x128xf32> -> vector<16x128xf32>
    %129 = arith.addf %106, %128 : vector<16x128xf32>
    %130 = vector.extract_strided_slice %35 {offsets = [16, 0], sizes = [16, 384], strides = [1, 1]} : vector<32x384xf32> to vector<16x384xf32>
    %131 = vector.extract_strided_slice %130 {offsets = [0, 0], sizes = [16, 32], strides = [1, 1]} : vector<16x384xf32> to vector<16x32xf32>
    %132 = vector.extract_strided_slice %130 {offsets = [0, 128], sizes = [16, 32], strides = [1, 1]} : vector<16x384xf32> to vector<16x32xf32>
    %133 = vector.extract_strided_slice %130 {offsets = [0, 256], sizes = [16, 32], strides = [1, 1]} : vector<16x384xf32> to vector<16x32xf32>
    %134 = arith.truncf %131 : vector<16x32xf32> to vector<16x32xbf16>
    %135 = arith.truncf %132 : vector<16x32xf32> to vector<16x32xbf16>
    "tpu.trace_start"() <{level = 10 : i32, message = "td,sd->ts"}> : () -> ()
    %cst_42 = arith.constant dense<0.000000e+00> : vector<16x16xf32>
    %136 = tpu.matmul %134, %135, %cst_42 {dimension_numbers = #tpu.dot_dimension_numbers<[1], [1], [0], [0], [0, 0, 1, 0], [], []>} : vector<16x32xbf16>, vector<16x32xbf16>, vector<16x16xf32> -> vector<16x16xf32>
    "tpu.trace_stop"() : () -> ()
    %cst_43 = arith.constant dense<0xFF800000> : vector<16xf32>
    %137 = vector.multi_reduction <maximumf>, %136, %cst_43 [1] : vector<16x16xf32> to vector<16xf32>
    %138 = vector.shape_cast %137 : vector<16xf32> to vector<16x1xf32>
    %139 = vector.broadcast %138 : vector<16x1xf32> to vector<16x16xf32>
    %140 = arith.subf %136, %139 : vector<16x16xf32>
    %141 = math.exp %140 : vector<16x16xf32>
    %cst_44 = arith.constant dense<0.000000e+00> : vector<16xf32>
    %142 = vector.multi_reduction <add>, %141, %cst_44 [1] : vector<16x16xf32> to vector<16xf32>
    %143 = vector.shape_cast %142 : vector<16xf32> to vector<16x1xf32>
    %144 = tpu.reciprocal %143 {approx = true} : vector<16x1xf32> -> vector<16x1xf32>
    %145 = vector.broadcast %144 : vector<16x1xf32> to vector<16x16xf32>
    %146 = arith.mulf %141, %145 : vector<16x16xf32>
    %147 = arith.truncf %146 : vector<16x16xf32> to vector<16x16xbf16>
    %148 = arith.truncf %133 : vector<16x32xf32> to vector<16x32xbf16>
    %cst_45 = arith.constant dense<0.000000e+00> : vector<16x32xf32>
    %149 = tpu.matmul %147, %148, %cst_45 {dimension_numbers = #tpu.dot_dimension_numbers<[1], [0], [0], [1], [0, 0, 1, 1], [], []>} : vector<16x16xbf16>, vector<16x32xbf16>, vector<16x32xf32> -> vector<16x32xf32>
    %150 = arith.truncf %149 : vector<16x32xf32> to vector<16x32xbf16>
    %151 = vector.extract_strided_slice %37 {offsets = [0, 0], sizes = [32, 128], strides = [1, 1]} : vector<128x128xbf16> to vector<32x128xbf16>
    %cst_46 = arith.constant dense<0.000000e+00> : vector<16x128xf32>
    %152 = tpu.matmul %150, %151, %cst_46 {dimension_numbers = #tpu.dot_dimension_numbers<[1], [0], [0], [1], [0, 0, 1, 1], [], []>} : vector<16x32xbf16>, vector<32x128xbf16>, vector<16x128xf32> -> vector<16x128xf32>
    %153 = vector.extract_strided_slice %130 {offsets = [0, 32], sizes = [16, 32], strides = [1, 1]} : vector<16x384xf32> to vector<16x32xf32>
    %154 = vector.extract_strided_slice %130 {offsets = [0, 160], sizes = [16, 32], strides = [1, 1]} : vector<16x384xf32> to vector<16x32xf32>
    %155 = vector.extract_strided_slice %130 {offsets = [0, 288], sizes = [16, 32], strides = [1, 1]} : vector<16x384xf32> to vector<16x32xf32>
    %156 = arith.truncf %153 : vector<16x32xf32> to vector<16x32xbf16>
    %157 = arith.truncf %154 : vector<16x32xf32> to vector<16x32xbf16>
    "tpu.trace_start"() <{level = 10 : i32, message = "td,sd->ts"}> : () -> ()
    %cst_47 = arith.constant dense<0.000000e+00> : vector<16x16xf32>
    %158 = tpu.matmul %156, %157, %cst_47 {dimension_numbers = #tpu.dot_dimension_numbers<[1], [1], [0], [0], [0, 0, 1, 0], [], []>} : vector<16x32xbf16>, vector<16x32xbf16>, vector<16x16xf32> -> vector<16x16xf32>
    "tpu.trace_stop"() : () -> ()
    %cst_48 = arith.constant dense<0xFF800000> : vector<16xf32>
    %159 = vector.multi_reduction <maximumf>, %158, %cst_48 [1] : vector<16x16xf32> to vector<16xf32>
    %160 = vector.shape_cast %159 : vector<16xf32> to vector<16x1xf32>
    %161 = vector.broadcast %160 : vector<16x1xf32> to vector<16x16xf32>
    %162 = arith.subf %158, %161 : vector<16x16xf32>
    %163 = math.exp %162 : vector<16x16xf32>
    %cst_49 = arith.constant dense<0.000000e+00> : vector<16xf32>
    %164 = vector.multi_reduction <add>, %163, %cst_49 [1] : vector<16x16xf32> to vector<16xf32>
    %165 = vector.shape_cast %164 : vector<16xf32> to vector<16x1xf32>
    %166 = tpu.reciprocal %165 {approx = true} : vector<16x1xf32> -> vector<16x1xf32>
    %167 = vector.broadcast %166 : vector<16x1xf32> to vector<16x16xf32>
    %168 = arith.mulf %163, %167 : vector<16x16xf32>
    %169 = arith.truncf %168 : vector<16x16xf32> to vector<16x16xbf16>
    %170 = arith.truncf %155 : vector<16x32xf32> to vector<16x32xbf16>
    %cst_50 = arith.constant dense<0.000000e+00> : vector<16x32xf32>
    %171 = tpu.matmul %169, %170, %cst_50 {dimension_numbers = #tpu.dot_dimension_numbers<[1], [0], [0], [1], [0, 0, 1, 1], [], []>} : vector<16x16xbf16>, vector<16x32xbf16>, vector<16x32xf32> -> vector<16x32xf32>
    %172 = arith.truncf %171 : vector<16x32xf32> to vector<16x32xbf16>
    %173 = vector.extract_strided_slice %37 {offsets = [32, 0], sizes = [32, 128], strides = [1, 1]} : vector<128x128xbf16> to vector<32x128xbf16>
    %cst_51 = arith.constant dense<0.000000e+00> : vector<16x128xf32>
    %174 = tpu.matmul %172, %173, %cst_51 {dimension_numbers = #tpu.dot_dimension_numbers<[1], [0], [0], [1], [0, 0, 1, 1], [], []>} : vector<16x32xbf16>, vector<32x128xbf16>, vector<16x128xf32> -> vector<16x128xf32>
    %175 = arith.addf %152, %174 : vector<16x128xf32>
    %176 = vector.extract_strided_slice %130 {offsets = [0, 64], sizes = [16, 32], strides = [1, 1]} : vector<16x384xf32> to vector<16x32xf32>
    %177 = vector.extract_strided_slice %130 {offsets = [0, 192], sizes = [16, 32], strides = [1, 1]} : vector<16x384xf32> to vector<16x32xf32>
    %178 = vector.extract_strided_slice %130 {offsets = [0, 320], sizes = [16, 32], strides = [1, 1]} : vector<16x384xf32> to vector<16x32xf32>
    %179 = arith.truncf %176 : vector<16x32xf32> to vector<16x32xbf16>
    %180 = arith.truncf %177 : vector<16x32xf32> to vector<16x32xbf16>
    "tpu.trace_start"() <{level = 10 : i32, message = "td,sd->ts"}> : () -> ()
    %cst_52 = arith.constant dense<0.000000e+00> : vector<16x16xf32>
    %181 = tpu.matmul %179, %180, %cst_52 {dimension_numbers = #tpu.dot_dimension_numbers<[1], [1], [0], [0], [0, 0, 1, 0], [], []>} : vector<16x32xbf16>, vector<16x32xbf16>, vector<16x16xf32> -> vector<16x16xf32>
    "tpu.trace_stop"() : () -> ()
    %cst_53 = arith.constant dense<0xFF800000> : vector<16xf32>
    %182 = vector.multi_reduction <maximumf>, %181, %cst_53 [1] : vector<16x16xf32> to vector<16xf32>
    %183 = vector.shape_cast %182 : vector<16xf32> to vector<16x1xf32>
    %184 = vector.broadcast %183 : vector<16x1xf32> to vector<16x16xf32>
    %185 = arith.subf %181, %184 : vector<16x16xf32>
    %186 = math.exp %185 : vector<16x16xf32>
    %cst_54 = arith.constant dense<0.000000e+00> : vector<16xf32>
    %187 = vector.multi_reduction <add>, %186, %cst_54 [1] : vector<16x16xf32> to vector<16xf32>
    %188 = vector.shape_cast %187 : vector<16xf32> to vector<16x1xf32>
    %189 = tpu.reciprocal %188 {approx = true} : vector<16x1xf32> -> vector<16x1xf32>
    %190 = vector.broadcast %189 : vector<16x1xf32> to vector<16x16xf32>
    %191 = arith.mulf %186, %190 : vector<16x16xf32>
    %192 = arith.truncf %191 : vector<16x16xf32> to vector<16x16xbf16>
    %193 = arith.truncf %178 : vector<16x32xf32> to vector<16x32xbf16>
    %cst_55 = arith.constant dense<0.000000e+00> : vector<16x32xf32>
    %194 = tpu.matmul %192, %193, %cst_55 {dimension_numbers = #tpu.dot_dimension_numbers<[1], [0], [0], [1], [0, 0, 1, 1], [], []>} : vector<16x16xbf16>, vector<16x32xbf16>, vector<16x32xf32> -> vector<16x32xf32>
    %195 = arith.truncf %194 : vector<16x32xf32> to vector<16x32xbf16>
    %196 = vector.extract_strided_slice %37 {offsets = [64, 0], sizes = [32, 128], strides = [1, 1]} : vector<128x128xbf16> to vector<32x128xbf16>
    %cst_56 = arith.constant dense<0.000000e+00> : vector<16x128xf32>
    %197 = tpu.matmul %195, %196, %cst_56 {dimension_numbers = #tpu.dot_dimension_numbers<[1], [0], [0], [1], [0, 0, 1, 1], [], []>} : vector<16x32xbf16>, vector<32x128xbf16>, vector<16x128xf32> -> vector<16x128xf32>
    %198 = arith.addf %175, %197 : vector<16x128xf32>
    %199 = vector.extract_strided_slice %130 {offsets = [0, 96], sizes = [16, 32], strides = [1, 1]} : vector<16x384xf32> to vector<16x32xf32>
    %200 = vector.extract_strided_slice %130 {offsets = [0, 224], sizes = [16, 32], strides = [1, 1]} : vector<16x384xf32> to vector<16x32xf32>
    %201 = vector.extract_strided_slice %130 {offsets = [0, 352], sizes = [16, 32], strides = [1, 1]} : vector<16x384xf32> to vector<16x32xf32>
    %202 = arith.truncf %199 : vector<16x32xf32> to vector<16x32xbf16>
    %203 = arith.truncf %200 : vector<16x32xf32> to vector<16x32xbf16>
    "tpu.trace_start"() <{level = 10 : i32, message = "td,sd->ts"}> : () -> ()
    %cst_57 = arith.constant dense<0.000000e+00> : vector<16x16xf32>
    %204 = tpu.matmul %202, %203, %cst_57 {dimension_numbers = #tpu.dot_dimension_numbers<[1], [1], [0], [0], [0, 0, 1, 0], [], []>} : vector<16x32xbf16>, vector<16x32xbf16>, vector<16x16xf32> -> vector<16x16xf32>
    "tpu.trace_stop"() : () -> ()
    %cst_58 = arith.constant dense<0xFF800000> : vector<16xf32>
    %205 = vector.multi_reduction <maximumf>, %204, %cst_58 [1] : vector<16x16xf32> to vector<16xf32>
    %206 = vector.shape_cast %205 : vector<16xf32> to vector<16x1xf32>
    %207 = vector.broadcast %206 : vector<16x1xf32> to vector<16x16xf32>
    %208 = arith.subf %204, %207 : vector<16x16xf32>
    %209 = math.exp %208 : vector<16x16xf32>
    %cst_59 = arith.constant dense<0.000000e+00> : vector<16xf32>
    %210 = vector.multi_reduction <add>, %209, %cst_59 [1] : vector<16x16xf32> to vector<16xf32>
    %211 = vector.shape_cast %210 : vector<16xf32> to vector<16x1xf32>
    %212 = tpu.reciprocal %211 {approx = true} : vector<16x1xf32> -> vector<16x1xf32>
    %213 = vector.broadcast %212 : vector<16x1xf32> to vector<16x16xf32>
    %214 = arith.mulf %209, %213 : vector<16x16xf32>
    %215 = arith.truncf %214 : vector<16x16xf32> to vector<16x16xbf16>
    %216 = arith.truncf %201 : vector<16x32xf32> to vector<16x32xbf16>
    %cst_60 = arith.constant dense<0.000000e+00> : vector<16x32xf32>
    %217 = tpu.matmul %215, %216, %cst_60 {dimension_numbers = #tpu.dot_dimension_numbers<[1], [0], [0], [1], [0, 0, 1, 1], [], []>} : vector<16x16xbf16>, vector<16x32xbf16>, vector<16x32xf32> -> vector<16x32xf32>
    %218 = arith.truncf %217 : vector<16x32xf32> to vector<16x32xbf16>
    %219 = vector.extract_strided_slice %37 {offsets = [96, 0], sizes = [32, 128], strides = [1, 1]} : vector<128x128xbf16> to vector<32x128xbf16>
    %cst_61 = arith.constant dense<0.000000e+00> : vector<16x128xf32>
    %220 = tpu.matmul %218, %219, %cst_61 {dimension_numbers = #tpu.dot_dimension_numbers<[1], [0], [0], [1], [0, 0, 1, 1], [], []>} : vector<16x32xbf16>, vector<32x128xbf16>, vector<16x128xf32> -> vector<16x128xf32>
    %221 = arith.addf %198, %220 : vector<16x128xf32>
    %222 = tpu.concatenate %129, %221 in 0 : vector<16x128xf32>, vector<16x128xf32> -> vector<32x128xf32>
    %223 = arith.addf %3, %222 : vector<32x128xf32>
    %c0_62 = arith.constant 0 : index
    %c0_63 = arith.constant 0 : index
    %c0_64 = arith.constant 0 : index
    %224 = vector.load %arg8[%c0_62, %c0_63, %c0_64] : memref<1x1x128xf32, #tpu.memory_space<vmem>>, vector<1x1x128xf32>
    %225 = vector.shape_cast %224 : vector<1x1x128xf32> to vector<1x128xf32>
    %226 = vector.broadcast %225 : vector<1x128xf32> to vector<32x128xf32>
    %227 = arith.addf %223, %226 : vector<32x128xf32>
    %c0_65 = arith.constant 0 : index
    %c0_66 = arith.constant 0 : index
    %c0_67 = arith.constant 0 : index
    %228 = vector.load %arg9[%c0_65, %c0_66, %c0_67] : memref<1x1x128xf32, #tpu.memory_space<vmem>>, vector<1x1x128xf32>
    %229 = vector.shape_cast %228 : vector<1x1x128xf32> to vector<1x128xf32>
    %c0_68 = arith.constant 0 : index
    %c0_69 = arith.constant 0 : index
    %c0_70 = arith.constant 0 : index
    %230 = vector.load %arg10[%c0_68, %c0_69, %c0_70] : memref<1x1x128xf32, #tpu.memory_space<vmem>>, vector<1x1x128xf32>
    %231 = vector.shape_cast %230 : vector<1x1x128xf32> to vector<1x128xf32>
    %cst_71 = arith.constant dense<0.000000e+00> : vector<32xf32>
    %232 = vector.multi_reduction <add>, %227, %cst_71 [1] : vector<32x128xf32> to vector<32xf32>
    %233 = vector.shape_cast %232 : vector<32xf32> to vector<32x1xf32>
    %cst_72 = arith.constant 1.280000e+02 : f32
    %234 = vector.broadcast %cst_72 : f32 to vector<32x1xf32>
    %235 = arith.divf %233, %234 : vector<32x1xf32>
    %236 = vector.broadcast %235 : vector<32x1xf32> to vector<32x128xf32>
    %237 = arith.subf %227, %236 : vector<32x128xf32>
    %238 = arith.mulf %237, %237 : vector<32x128xf32>
    %cst_73 = arith.constant dense<0.000000e+00> : vector<32xf32>
    %239 = vector.multi_reduction <add>, %238, %cst_73 [1] : vector<32x128xf32> to vector<32xf32>
    %240 = vector.shape_cast %239 : vector<32xf32> to vector<32x1xf32>
    %cst_74 = arith.constant 1.280000e+02 : f32
    %241 = vector.broadcast %cst_74 : f32 to vector<32x1xf32>
    %242 = arith.divf %240, %241 : vector<32x1xf32>
    %cst_75 = arith.constant 9.99999974E-6 : f32
    %243 = vector.broadcast %cst_75 : f32 to vector<32x1xf32>
    %244 = arith.addf %242, %243 : vector<32x1xf32>
    %245 = math.rsqrt %244 : vector<32x1xf32>
    %246 = vector.broadcast %245 : vector<32x1xf32> to vector<32x128xf32>
    %247 = arith.mulf %237, %246 : vector<32x128xf32>
    %248 = vector.broadcast %229 : vector<1x128xf32> to vector<32x128xf32>
    %249 = arith.mulf %247, %248 : vector<32x128xf32>
    %250 = vector.broadcast %231 : vector<1x128xf32> to vector<32x128xf32>
    %251 = arith.addf %249, %250 : vector<32x128xf32>
    %252 = arith.truncf %251 : vector<32x128xf32> to vector<32x128xbf16>
    %c0_76 = arith.constant 0 : index
    %c0_77 = arith.constant 0 : index
    %c0_78 = arith.constant 0 : index
    %253 = vector.load %arg11[%c0_76, %c0_77, %c0_78] : memref<1x128x512xbf16, #tpu.memory_space<vmem>>, vector<1x128x512xbf16>
    %254 = vector.shape_cast %253 : vector<1x128x512xbf16> to vector<128x512xbf16>
    %cst_79 = arith.constant dense<0.000000e+00> : vector<32x512xf32>
    %255 = tpu.matmul %252, %254, %cst_79 {dimension_numbers = #tpu.dot_dimension_numbers<[1], [0], [0], [1], [0, 0, 1, 1], [], []>} : vector<32x128xbf16>, vector<128x512xbf16>, vector<32x512xf32> -> vector<32x512xf32>
    %c0_80 = arith.constant 0 : index
    %c0_81 = arith.constant 0 : index
    %c0_82 = arith.constant 0 : index
    %256 = vector.load %arg12[%c0_80, %c0_81, %c0_82] : memref<1x1x512xf32, #tpu.memory_space<vmem>>, vector<1x1x512xf32>
    %257 = vector.shape_cast %256 : vector<1x1x512xf32> to vector<1x512xf32>
    %258 = vector.broadcast %257 : vector<1x512xf32> to vector<32x512xf32>
    %259 = arith.addf %255, %258 : vector<32x512xf32>
    %260 = arith.mulf %259, %259 : vector<32x512xf32>
    %261 = arith.mulf %259, %260 : vector<32x512xf32>
    %cst_83 = arith.constant 4.471500e-02 : f32
    %262 = vector.broadcast %cst_83 : f32 to vector<32x512xf32>
    %263 = arith.mulf %262, %261 : vector<32x512xf32>
    %264 = arith.addf %259, %263 : vector<32x512xf32>
    %cst_84 = arith.constant 0.797884583 : f32
    %265 = vector.broadcast %cst_84 : f32 to vector<32x512xf32>
    %266 = arith.mulf %265, %264 : vector<32x512xf32>
    %267 = math.tanh %266 : vector<32x512xf32>
    %cst_85 = arith.constant 1.000000e+00 : f32
    %268 = vector.broadcast %cst_85 : f32 to vector<32x512xf32>
    %269 = arith.addf %268, %267 : vector<32x512xf32>
    %cst_86 = arith.constant 5.000000e-01 : f32
    %270 = vector.broadcast %cst_86 : f32 to vector<32x512xf32>
    %271 = arith.mulf %270, %269 : vector<32x512xf32>
    %272 = arith.mulf %259, %271 : vector<32x512xf32>
    %273 = arith.truncf %272 : vector<32x512xf32> to vector<32x512xbf16>
    %c0_87 = arith.constant 0 : index
    %c0_88 = arith.constant 0 : index
    %c0_89 = arith.constant 0 : index
    %274 = vector.load %arg13[%c0_87, %c0_88, %c0_89] : memref<1x512x128xbf16, #tpu.memory_space<vmem>>, vector<1x512x128xbf16>
    %275 = vector.shape_cast %274 : vector<1x512x128xbf16> to vector<512x128xbf16>
    %cst_90 = arith.constant dense<0.000000e+00> : vector<32x128xf32>
    %276 = tpu.matmul %273, %275, %cst_90 {dimension_numbers = #tpu.dot_dimension_numbers<[1], [0], [0], [1], [0, 0, 1, 1], [], []>} : vector<32x512xbf16>, vector<512x128xbf16>, vector<32x128xf32> -> vector<32x128xf32>
    %c0_91 = arith.constant 0 : index
    %c0_92 = arith.constant 0 : index
    %c0_93 = arith.constant 0 : index
    %277 = vector.load %arg14[%c0_91, %c0_92, %c0_93] : memref<1x1x128xf32, #tpu.memory_space<vmem>>, vector<1x1x128xf32>
    %278 = vector.shape_cast %277 : vector<1x1x128xf32> to vector<1x128xf32>
    %279 = vector.broadcast %278 : vector<1x128xf32> to vector<32x128xf32>
    %280 = arith.addf %276, %279 : vector<32x128xf32>
    %281 = arith.addf %227, %280 : vector<32x128xf32>
    %c0_94 = arith.constant 0 : index
    %c0_95 = arith.constant 0 : index
    %282 = vector.load %arg17[%c0_94, %c0_95] : memref<32x128xf32, #tpu.memory_space<vmem>>, vector<32x128xf32>
    tpu.vector_store %arg17[%c0_94, %c0_95], %281 {strides = array<i32>} : memref<32x128xf32, #tpu.memory_space<vmem>>, vector<32x128xf32>,
    return
  }
  func.func @transform_0(%arg0: i32, %arg1: i32) -> (i32, i32) {
    %c0_i32 = arith.constant 0 : i32
    %c0_i32_0 = arith.constant 0 : i32
    return %arg0, %c0_i32 : i32, i32
  }
  func.func @transform_1(%arg0: i32, %arg1: i32) -> (i32, i32, i32) {
    %c0_i32 = arith.constant 0 : i32
    %c0_i32_0 = arith.constant 0 : i32
    %c0_i32_1 = arith.constant 0 : i32
    return %arg1, %c0_i32, %c0_i32_0 : i32, i32, i32
  }
  func.func @transform_2(%arg0: i32, %arg1: i32) -> (i32, i32, i32) {
    %c0_i32 = arith.constant 0 : i32
    %c0_i32_0 = arith.constant 0 : i32
    %c0_i32_1 = arith.constant 0 : i32
    return %arg1, %c0_i32, %c0_i32_0 : i32, i32, i32
  }
  func.func @transform_3(%arg0: i32, %arg1: i32) -> (i32, i32, i32) {
    %c0_i32 = arith.constant 0 : i32
    %c0_i32_0 = arith.constant 0 : i32
    %c0_i32_1 = arith.constant 0 : i32
    return %arg1, %c0_i32, %c0_i32_0 : i32, i32, i32
  }
  func.func @transform_4(%arg0: i32, %arg1: i32) -> (i32, i32, i32) {
    %c0_i32 = arith.constant 0 : i32
    %c0_i32_0 = arith.constant 0 : i32
    %c0_i32_1 = arith.constant 0 : i32
    return %arg1, %c0_i32, %c0_i32_0 : i32, i32, i32
  }
  func.func @transform_5(%arg0: i32, %arg1: i32) -> (i32, i32, i32) {
    %c0_i32 = arith.constant 0 : i32
    %c0_i32_0 = arith.constant 0 : i32
    %c0_i32_1 = arith.constant 0 : i32
    return %arg1, %c0_i32, %c0_i32_0 : i32, i32, i32
  }
  func.func @transform_6(%arg0: i32, %arg1: i32) -> (i32, i32, i32) {
    %c0_i32 = arith.constant 0 : i32
    %c0_i32_0 = arith.constant 0 : i32
    %c0_i32_1 = arith.constant 0 : i32
    return %arg1, %c0_i32, %c0_i32_0 : i32, i32, i32
  }
  func.func @transform_7(%arg0: i32, %arg1: i32) -> (i32, i32, i32) {
    %c0_i32 = arith.constant 0 : i32
    %c0_i32_0 = arith.constant 0 : i32
    %c0_i32_1 = arith.constant 0 : i32
    return %arg1, %c0_i32, %c0_i32_0 : i32, i32, i32
  }
  func.func @transform_8(%arg0: i32, %arg1: i32) -> (i32, i32, i32) {
    %c0_i32 = arith.constant 0 : i32
    %c0_i32_0 = arith.constant 0 : i32
    %c0_i32_1 = arith.constant 0 : i32
    return %arg1, %c0_i32, %c0_i32_0 : i32, i32, i32
  }
  func.func @transform_9(%arg0: i32, %arg1: i32) -> (i32, i32, i32) {
    %c0_i32 = arith.constant 0 : i32
    %c0_i32_0 = arith.constant 0 : i32
    %c0_i32_1 = arith.constant 0 : i32
    return %arg1, %c0_i32, %c0_i32_0 : i32, i32, i32
  }
  func.func @transform_10(%arg0: i32, %arg1: i32) -> (i32, i32, i32) {
    %c0_i32 = arith.constant 0 : i32
    %c0_i32_0 = arith.constant 0 : i32
    %c0_i32_1 = arith.constant 0 : i32
    return %arg1, %c0_i32, %c0_i32_0 : i32, i32, i32
  }
  func.func @transform_11(%arg0: i32, %arg1: i32) -> (i32, i32, i32) {
    %c0_i32 = arith.constant 0 : i32
    %c0_i32_0 = arith.constant 0 : i32
    %c0_i32_1 = arith.constant 0 : i32
    return %arg1, %c0_i32, %c0_i32_0 : i32, i32, i32
  }
  func.func @transform_12(%arg0: i32, %arg1: i32) -> (i32, i32, i32) {
    %c0_i32 = arith.constant 0 : i32
    %c0_i32_0 = arith.constant 0 : i32
    %c0_i32_1 = arith.constant 0 : i32
    return %arg1, %c0_i32, %c0_i32_0 : i32, i32, i32
  }
  func.func @transform_13(%arg0: i32, %arg1: i32) -> (i32, i32) {
    %c0_i32 = arith.constant 0 : i32
    %c0_i32_0 = arith.constant 0 : i32
    %c0_i32_1 = arith.constant 0 : i32
    return %c0_i32, %c0_i32_0 : i32, i32
  }
  func.func @transform_14(%arg0: i32, %arg1: i32) -> (i32, i32) {
    %c0_i32 = arith.constant 0 : i32
    %c0_i32_0 = arith.constant 0 : i32
    %c0_i32_1 = arith.constant 0 : i32
    return %c0_i32, %c0_i32_0 : i32, i32
  }
  func.func @transform_15(%arg0: i32, %arg1: i32) -> (i32, i32) {
    %c0_i32 = arith.constant 0 : i32
    %c0_i32_0 = arith.constant 0 : i32
    return %arg0, %c0_i32 : i32, i32
  }
}

</mosaic_0001>

<bundles_post_ra>
// kernel: mae_vit_forward.4
= control target key start
LH: loop header
LB: loop body
LE: loop exit
PB: predicated region body
PF: predicated region fallthrough
CT: control target
= control target key end

     0   :  { %s339_s1 = inlined_call_operand.vmem [shape: bf16[128,128], index: 1, kind: input, shape index: {}]   ;;  %s340_s0 = inlined_call_operand.vmem [shape: f32[64,128], index: 0, kind: input, shape index: {}]   ;;  %s341_s2 = inlined_call_operand.vmem [shape: f32[1,128], index: 2, kind: input, shape index: {}]   ;;  %s342_s3 = inlined_call_operand.vmem [shape: f32[64,128], index: 3, kind: output, shape index: {}]  }
   0x1   :  { %v236_v0 = vld [vmem:[%s339_s1] sm:$0xff]   ;;  %v237_v1 = vld [vmem:[%s339_s1 + $0x8] sm:$0xff]   ;;  %v238_v2 = vld [vmem:[%s339_s1 + $0x10] sm:$0xff]  }
   0x2   :  { %196 = vmatprep.subr.bf16.mxu0 %v236_v0  ;;  %220 = vmatprep.subr.bf16.mxu1 %v236_v0  ;;  %v239_v3 = vld [vmem:[%s339_s1 + $0x18] sm:$0xff]   ;;  %v15_v4 = vld [vmem:[%s340_s0] sm:$0xff]  ;;  %v16_v5 = vld [vmem:[%s340_s0 + $0x8] sm:$0xff] }
   0x3   :  { %197 = vmatpush3.bf16.msra.mxu0 %v236_v0  ;;  %228 = vmatpush3.bf16.msra.mxu1 %v236_v0  ;;  %v19_v6 = vld [vmem:[%s340_s0 + $0x20] sm:$0xff]  ;;  %v23_v7 = vpack.c.bf16 %v16_v5, %v15_v4  ;;  %v20_v8 = vld [vmem:[%s340_s0 + $0x28] sm:$0xff]  ;;  %v242_v12 = vld [vmem:[%s339_s1 + $0x30] sm:$0xff]  }
   0x4   :  { %198 = vmatprep.subr.bf16.mxu0 %v237_v1  ;;  %221 = vmatprep.subr.bf16.mxu1 %v237_v1  ;;  %v25_v9 = vpack.c.bf16 %v20_v8, %v19_v6  ;;  %v240_v10 = vld [vmem:[%s339_s1 + $0x20] sm:$0xff]   ;;  %v241_v11 = vld [vmem:[%s339_s1 + $0x28] sm:$0xff]   ;;  %v243_v13 = vld [vmem:[%s339_s1 + $0x38] sm:$0xff]  }
   0x5   :  { %212 = vmatprep.mubr.bf16.mxu0 %v23_v7  ;;  %v17_v14 = vld [vmem:[%s340_s0 + $0x10] sm:$0xff]  ;;  %v18_v15 = vld [vmem:[%s340_s0 + $0x18] sm:$0xff]  ;;  %v175_v20 = vld [vmem:[%s341_s2] ss:$0 sm:$0xff] }
   0x6   :  { %216 = vmatprep.mubr.bf16.mxu1 %v25_v9  ;;  %v21_v16 = vld [vmem:[%s340_s0 + $0x30] sm:$0xff]  ;;  %v22_v17 = vld [vmem:[%s340_s0 + $0x38] sm:$0xff]  ;;  %v24_v18 = vpack.c.bf16 %v18_v15, %v17_v14 }
   0x7   :  { %199 = vmatpush3.bf16.msra.mxu0 %v237_v1  ;;  %229 = vmatpush3.bf16.msra.mxu1 %v237_v1  ;;  %v26_v19 = vpack.c.bf16 %v22_v17, %v21_v16 }
   0x8   :  { %200 = vmatprep.subr.bf16.mxu0 %v238_v2  ;;  %222 = vmatprep.subr.bf16.mxu1 %v238_v2 }
   0xb   :  { %201 = vmatpush3.bf16.msra.mxu0 %v238_v2  ;;  %230 = vmatpush3.bf16.msra.mxu1 %v238_v2 }
   0xc   :  { %202 = vmatprep.subr.bf16.mxu0 %v239_v3  ;;  %223 = vmatprep.subr.bf16.mxu1 %v239_v3 }
   0xf   :  { %203 = vmatpush3.bf16.msra.mxu0 %v239_v3  ;;  %231 = vmatpush3.bf16.msra.mxu1 %v239_v3 }
  0x10   :  { %204 = vmatprep.subr.bf16.mxu0 %v240_v10  ;;  %224 = vmatprep.subr.bf16.mxu1 %v240_v10 }
  0x13   :  { %205 = vmatpush3.bf16.msra.mxu0 %v240_v10  ;;  %232 = vmatpush3.bf16.msra.mxu1 %v240_v10 }
  0x14   :  { %206 = vmatprep.subr.bf16.mxu0 %v241_v11  ;;  %225 = vmatprep.subr.bf16.mxu1 %v241_v11 }
  0x17   :  { %207 = vmatpush3.bf16.msra.mxu0 %v241_v11  ;;  %233 = vmatpush3.bf16.msra.mxu1 %v241_v11 }
  0x18   :  { %208 = vmatprep.subr.bf16.mxu0 %v242_v12  ;;  %226 = vmatprep.subr.bf16.mxu1 %v242_v12 }
  0x1b   :  { %209 = vmatpush3.bf16.msra.mxu0 %v242_v12  ;;  %234 = vmatpush3.bf16.msra.mxu1 %v242_v12 }
  0x1c   :  { %210 = vmatprep.subr.bf16.mxu0 %v243_v13  ;;  %227 = vmatprep.subr.bf16.mxu1 %v243_v13 }
  0x1f   :  { %211 = vmatpush3.bf16.msra.mxu0 %v243_v13  ;;  %235 = vmatpush3.bf16.msra.mxu1 %v243_v13 }
  0x22   :  { %213 = vmatmul.mubr.bf16.vlgmr.msra.gmra.mrb[0].mxu0 %v24_v18  ;;  %217 = vmatmul.mubr.bf16.vlgmr.msra.gmra.mrb[0].mxu1 %v26_v19 }
  0xf5   :  { %v214_v21 = vpop.f32.mrb[0].mxu0  ;;  %v218_v22 = vpop.f32.mrb[0].mxu1 }
  0xf6   :  { %v141_v23 = vadd.f32 %v214_v21, %v175_v20  ;;  %v157_v24 = vadd.f32 %v218_v22, %v175_v20  ;;  %v132_v25 = vpop.f32.mrb[1].mxu0  ;;  %v148_v26 = vpop.f32.mrb[1].mxu1 }
  0xf7   :  { %v133_v27 = vadd.f32 %v175_v20, %v132_v25  ;;  %v149_v28 = vadd.f32 %v175_v20, %v148_v26  ;;  %v215_v29 = vpop.f32.mrb[2].mxu0  ;;  %v219_v30 = vpop.f32.mrb[2].mxu1 }
  0xf8   :  { %165 = vst [vmem:[%s342_s3 + $0x10] sm:$0xff] %v141_v23  ;;  %169 = vst [vmem:[%s342_s3 + $0x30] sm:$0xff] %v157_v24  ;;  %v144_v31 = vadd.f32 %v215_v29, %v175_v20  ;;  %v160_v32 = vadd.f32 %v219_v30, %v175_v20  ;;  %v135_v33 = vpop.f32.mrb[3].mxu0  ;;  %v151_v34 = vpop.f32.mrb[3].mxu1 }
  0xf9   :  { %163 = vst [vmem:[%s342_s3] sm:$0xff] %v133_v27  ;;  %167 = vst [vmem:[%s342_s3 + $0x20] sm:$0xff] %v149_v28  ;;  %v136_v35 = vadd.f32 %v175_v20, %v135_v33  ;;  %v152_v36 = vadd.f32 %v175_v20, %v151_v34 }
  0xfa   :  { %166 = vst [vmem:[%s342_s3 + $0x18] sm:$0xff] %v144_v31  ;;  %170 = vst [vmem:[%s342_s3 + $0x38] sm:$0xff] %v160_v32 }
  0xfb   :  { %164 = vst [vmem:[%s342_s3 + $0x8] sm:$0xff] %v136_v35  ;;  %168 = vst [vmem:[%s342_s3 + $0x28] sm:$0xff] %v152_v36 }

// kernel: mae_vit_forward.5
= control target key start
LH: loop header
LB: loop body
LE: loop exit
PB: predicated region body
PF: predicated region fallthrough
CT: control target
= control target key end

     0   :  { %s4150_s18 = smov 0   ;;  %s4152_s19 = smov 0   ;;  %s4791_s0 = inlined_call_operand.vmem [shape: f32[32,128], index: 0, kind: input, shape index: {}]   ;;  %s4792_s1 = inlined_call_operand.vmem [shape: f32[2,1,128], index: 1, kind: input, shape index: {}]   ;;  %s4793_s2 = inlined_call_operand.vmem [shape: f32[2,1,128], index: 2, kind: input, shape index: {}]   ;;  %s4794_s3 = inlined_call_operand.vmem [shape: bf16[2,128,384], index: 3, kind: input, shape index: {}]   ;;  %s4795_s4 = inlined_call_operand.vmem [shape: f32[2,1,384], index: 4, kind: input, shape index: {}]   ;;  %s4796_s5 = inlined_call_operand.vmem [shape: bf16[2,128,128], index: 5, kind: input, shape index: {}]   ;;  %s4797_s6 = inlined_call_operand.vmem [shape: f32[2,1,128], index: 6, kind: input, shape index: {}]   ;;  %s4798_s7 = inlined_call_operand.vmem [shape: f32[2,1,128], index: 7, kind: input, shape index: {}]   ;;  %s4799_s8 = inlined_call_operand.vmem [shape: f32[2,1,128], index: 8, kind: input, shape index: {}]   ;;  %s4800_s9 = inlined_call_operand.vmem [shape: bf16[2,128,512], index: 9, kind: input, shape index: {}]   ;;  %s4801_s10 = inlined_call_operand.vmem [shape: f32[2,1,512], index: 10, kind: input, shape index: {}]   ;;  %s4802_s11 = inlined_call_operand.vmem [shape: bf16[2,512,128], index: 11, kind: input, shape index: {}]   ;;  %s4803_s12 = inlined_call_operand.vmem [shape: f32[2,1,128], index: 12, kind: input, shape index: {}]   ;;  %s4804_s13 = inlined_call_operand.vmem [shape: f32[1,128], index: 13, kind: input, shape index: {}]   ;;  %s4805_s14 = inlined_call_operand.vmem [shape: f32[1,128], index: 14, kind: input, shape index: {}]   ;;  %s4806_s15 = inlined_call_operand.vmem [shape: f32[32,128], index: 15, kind: output, shape index: {}]  }
   0x1   :  { %4811 = sst [smem:[#allocation8_spill]] %s4791_s0  ;;  %s4154_s20 = smov 0  }
   0x2   :  { %4812 = sst [smem:[#allocation9_spill]] %s4792_s1  ;;  %s4156_s21 = smov 0  }
   0x3   :  { %4813 = sst [smem:[#allocation10_spill]] %s4793_s2  ;;  %s4158_s22 = smov 0  }
   0x4   :  { %4814 = sst [smem:[#allocation11_spill]] %s4794_s3 }
   0x5   :  { %4815 = sst [smem:[#allocation12_spill]] %s4795_s4 }
   0x6   :  { %4816 = sst [smem:[#allocation13_spill]] %s4804_s13 }
   0x7   :  { %4817 = sst [smem:[#allocation14_spill]] %s4805_s14 }
   0x8 LB: > { %4818 = sst [smem:[#allocation2_spill]] %s4046_s18  ;;  %s34_s23 = sadd.s32 1, %s4054_s20  ;;  %s4062_s22 = sphi %s4158_s22, %s25_s22   ;;  %s4058_s21 = sphi %s4156_s21, %s4844_s21   ;;  %s4054_s20 = sphi %s4154_s20, %s4843_s20   ;;  %s4050_s19 = sphi %s4152_s19, %s4842_s19   ;;  %s4046_s18 = sphi %s4150_s18, %s4841_s18  }
   0x9   : > { %4819 = sst [smem:[#allocation3_spill]] %s4054_s20  ;;  %s37_s24 = sadd.s32 1, %s4058_s21 }
   0xa   : > { %4820 = sst [smem:[#allocation4_spill]] %s4058_s21  ;;  %p35_p0 = scmp.ge.s32.totalorder %s34_s23, 2 }
   0xb   : > { %4821 = sst [smem:[#allocation5_spill]] %s4062_s22  ;;  %p3357_p1 = scmp.ge.s32.totalorder %s4062_s22, 1 }
   0xc   : > { %p556_p2 = scmp.lt.s32.totalorder %s4062_s22, 5  ;;  %s4846_s23 = smov (%p35_p0, %s34_s23), 0 }
   0xd   : > { %4822 = sst [smem:[#allocation6_spill]] %s4846_s23  ;;  %s4848_s24 = smov (!%p35_p0, %s37_s24), %s4058_s21 }
   0xe   : > { %p557_p3 = pnand %p3357_p1, %p556_p2  ;;  %p39_p4 = scmp.ge.s32.totalorder %s4848_s24, 2 }
   0xf   : > { %s3358_s25 = sshll.u32 (!%p557_p3), %s4050_s19, 1  ;;  %p656_p5 = scmp.lt.s32.totalorder (!%p557_p3), %s4046_s18, 1 }
  0x10   : > { %s4850_s24 = smov (%p39_p4, %s4848_s24), 0  ;;  %560 = sbr.rel (%p557_p3) target bundleno = 5881 (0x16f9), region = 80 }
  0x11   : > { %4823 = sst [smem:[#allocation7_spill]] %s4850_s24  ;;  %p651_p6 = scmp.lt.s32.totalorder (!%p557_p3), %s3358_s25, 3 }
  0x12   : > { %s4826_s0 = sld [smem:[#allocation8_spill]] (!%p557_p3)  ;;  %s4827_s3 = sld [smem:[#allocation11_spill]] (!%p557_p3) }
  0x13   : > { %s4828_s4 = sld [smem:[#allocation12_spill]] (!%p557_p3)  ;;  %s4829_s28 = sld [smem:[#allocation2_spill]] (!%p557_p3) }
  0x17   : > { %s4184_s26 = scalar_select %p656_p5, %s4046_s18, 1 }
  0x18   : > { %s4852_s25 = smov (!%p651_p6, %s3358_s25), 3 }
  0x19   : > { %s3359_s19 = sshll.u32 %s4852_s25, 3  ;;  %s3794_s24 = smul.u32 192, %s4184_s26 }
  0x1a   : > { %s654_s20 = scalar_lea.vmem %s4826_s0, %s3359_s19  ;;  %s3795_s22 = smul.u32 3, %s4184_s26 }
  0x1b   : > { %s4202_s18 = scalar_lea.vmem %s4827_s3, %s3794_s24  ;;  %s3502_s27 = sshll.u32 %s4184_s26, 6 }
  0x1c   : > { %s4208_s1 = scalar_lea.vmem %s4828_s4, %s3795_s22  ;;  %s4213_s16 = scalar_lea.vmem %s4796_s5, %s3502_s27 }
  0x1d   : > { %s3503_s29 = sshll.u32 %s4184_s26, 8  ;;  %s3365_s27 = sshll.u32 %s4184_s26, 2 }
  0x1e   : > { %s4231_s4 = scalar_lea.vmem %s4800_s9, %s3503_s29  ;;  %s4237_s17 = scalar_lea.vmem %s4801_s10, %s3365_s27 }
  0x1f   : > { %s4242_s0 = scalar_lea.vmem %s4802_s11, %s3503_s29  ;;  %s701_s24 = scalar_lea.vmem %s4803_s12, %s4184_s26 }
  0x20   : > { %s4251_s22 = scalar_lea.vmem %s4806_s15, %s3359_s19  ;;  %p3370_p7 = scmp.ne.s32.totalorder %s4829_s28, 0 }
  0x21   : > { %v713_v0 = vld [vmem:[%s654_s20] sm:$0xff] (!%p3370_p7)  ;;  %v714_v1 = vld [vmem:[%s654_s20 + $0x8] sm:$0xff] (!%p3370_p7) }
  0x22   : > { %712 = sbr.rel (%p3370_p7) target bundleno = 41 (0x29), region = 84  ;;  %715 = vst [vmem:[%s4251_s22] sm:$0xff] (!%p3370_p7), %v713_v0  ;;  %716 = vst [vmem:[%s4251_s22 + $0x8] sm:$0xff] (!%p3370_p7), %v714_v1 }
  0x29 PF: > { %v717_v2 = vld [vmem:[%s4251_s22] sm:$0xff]  ;;  %v718_v3 = vld [vmem:[%s4251_s22 + $0x8] sm:$0xff]  ;;  %v4064_v6 = vmov 0.0   ;;  %v3852_v20 = vld [vmem:[%s4202_s18 + $0x30] ss:$12 sps:$4 sm:$0xff]   ;;  %v4065_v32 = vmov 0   ;;  %v795_v55 = vlaneseq  ;;  %s4834_s2 = scalar_lea.vmem %s4797_s6, %s4184_s26  ;;  %s4835_s28 = scalar_lea.vmem %s4798_s7, %s4184_s26 }
  0x2a   : > { %721 = vadd.xlane.f32.xlu0 %v717_v2  ;;  %v3842_v4 = vld [vmem:[%s4202_s18 + $0x4] ss:$12 sps:$4 sm:$0xff]   ;;  %v3844_v5 = vld [vmem:[%s4202_s18] ss:$12 sps:$4 sm:$0xff]   ;;  %3614 = vmatprep.subr.bf16.mxu1 %v4064_v6  ;;  %v3845_v7 = vld [vmem:[%s4202_s18 + $0x8] ss:$12 sps:$4 sm:$0xff]  }
  0x2b   : > { %v3846_v8 = vld [vmem:[%s4202_s18 + $0x1c] ss:$12 sps:$4 sm:$0xff]   ;;  %938 = vmatprep.subr.bf16.mxu0 %v3842_v4  ;;  %3615 = vmatpush3.bf16.msra.mxu1 %v3845_v7  ;;  %v3848_v17 = vld [vmem:[%s4202_s18 + $0x18] ss:$12 sps:$4 sm:$0xff]   ;;  %v3849_v18 = vld [vmem:[%s4202_s18 + $0x20] ss:$12 sps:$4 sm:$0xff]  }
  0x2c   : > { %939 = vmatpush1.bf16.msra.mxu0 %v3844_v5  ;;  %3616 = vmatprep.subr.bf16.mxu1 %v4064_v6  ;;  %v3850_v19 = vld [vmem:[%s4202_s18 + $0x34] ss:$12 sps:$4 sm:$0xff]   ;;  %v3853_v21 = vld [vmem:[%s4202_s18 + $0x38] ss:$12 sps:$4 sm:$0xff]   ;;  %v3857_v24 = vld [vmem:[%s4202_s18 + $0x50] ss:$12 sps:$4 sm:$0xff]  }
  0x2d   : > { %940 = vmatprep.subr.bf16.mxu0 %v3846_v8  ;;  %v3854_v22 = vld [vmem:[%s4202_s18 + $0x4c] ss:$12 sps:$4 sm:$0xff]   ;;  %v3856_v23 = vld [vmem:[%s4202_s18 + $0x48] ss:$12 sps:$4 sm:$0xff]   ;;  %v3858_v25 = vld [vmem:[%s4202_s18 + $0x64] ss:$12 sps:$4 sm:$0xff]   ;;  %970 = vmatprep.mubr.bf16.mxu0 %v4065_v32 }
  0x2e   : > { %723 = vadd.xlane.f32.xlu0 %v718_v3  ;;  %v3860_v26 = vld [vmem:[%s4202_s18 + $0x60] ss:$12 sps:$4 sm:$0xff]   ;;  %v3861_v27 = vld [vmem:[%s4202_s18 + $0x68] ss:$12 sps:$4 sm:$0xff]   ;;  %v3864_v29 = vld [vmem:[%s4202_s18 + $0x78] ss:$12 sps:$4 sm:$0xff]  }
  0x2f   : > { %3617 = vmatpush3.bf16.msra.mxu1 %v3849_v18  ;;  %v3862_v28 = vld [vmem:[%s4202_s18 + $0x7c] ss:$12 sps:$4 sm:$0xff]   ;;  %v3865_v30 = vld [vmem:[%s4202_s18 + $0x80] ss:$12 sps:$4 sm:$0xff]   ;;  %vm4066_vm0 = vmmov 0   ;;  %s4830_s20 = sld [smem:[#allocation9_spill]] }
  0x30   : > { %941 = vmatpush1.bf16.msra.mxu0 %v3848_v17  ;;  %3618 = vmatprep.subr.bf16.mxu1 %v4064_v6  ;;  %v3866_v31 = vld [vmem:[%s4202_s18 + $0x94] ss:$12 sps:$4 sm:$0xff]   ;;  %v3868_v33 = vld [vmem:[%s4202_s18 + $0x90] ss:$12 sps:$4 sm:$0xff]   ;;  %v3869_v34 = vld [vmem:[%s4202_s18 + $0x98] ss:$12 sps:$4 sm:$0xff]  }
  0x31   : > { %942 = vmatprep.subr.bf16.mxu0 %v3850_v19  ;;  %3630 = vmatprep.mubr.msk.bf16.mxu1 %vm4066_vm0, %v4064_v6  ;;  %v3870_v35 = vld [vmem:[%s4202_s18 + $0xac] ss:$12 sps:$4 sm:$0xff]   ;;  %v3872_v36 = vld [vmem:[%s4202_s18 + $0xa8] ss:$12 sps:$4 sm:$0xff]   ;;  %v3873_v37 = vld [vmem:[%s4202_s18 + $0xb0] ss:$12 sps:$4 sm:$0xff]  }
  0x32   : > { %s4832_s29 = sld [smem:[#allocation10_spill]]  ;;  %v4319_v56 = vshrl.u32 %v795_v55, 7  ;;  %v793_v59 = vld [vmem:[%s4208_s1] sm:$0x7]  ;;  %vm1108_vm1 = vcmask 1043456   ;;  %vm1043_vm2 = vcmask 261120  }
  0x33   : > { %3619 = vmatpush3.bf16.msra.mxu1 %v3853_v21  ;;  %s4067_s1 = smov 96   ;;  %vm1091_vm4 = vcmask 64512   ;;  %s4068_s30 = smov 64  }
  0x34   : > { %943 = vmatpush1.bf16.msra.mxu0 %v3852_v20  ;;  %3620 = vmatprep.subr.bf16.mxu1 %v4064_v6  ;;  %v797_v57 = vsub.s32 0, %v4319_v56  ;;  %v805_v58 = vsub.s32 2, %v4319_v56  ;;  %v801_v60 = vsub.s32 1, %v4319_v56  ;;  %s4069_s25 = smov 32  }
  0x35   : > { %944 = vmatprep.subr.bf16.mxu0 %v3854_v22  ;;  %s4831_s19 = scalar_lea.vmem %s4830_s20, %s4184_s26  ;;  %s4836_s20 = scalar_lea.vmem %s4799_s8, %s4184_s26 }
  0x36   : > { %v3371_v46 = vld [vmem:[%s4831_s19] ss:$0 sm:$0xff]  ;;  %v798_v61 = vrot.slane %v793_v59, %v797_v57  ;;  %v806_v62 = vrot.slane %v793_v59, %v805_v58  ;;  %v802_v63 = vrot.slane %v793_v59, %v801_v60 }
  0x37   : > { %3621 = vmatpush3.bf16.msra.mxu1 %v3857_v24 }
  0x38   : > { %945 = vmatpush1.bf16.msra.mxu0 %v3856_v23  ;;  %3622 = vmatprep.subr.bf16.mxu1 %v4064_v6  ;;  %s4833_s27 = scalar_lea.vmem %s4832_s29, %s4184_s26  ;;  %v4362_v23 = vand.u32 127, %v795_v55  ;;  %s4837_s26 = sld [smem:[#allocation2_spill]] }
  0x39   : > { %946 = vmatprep.subr.bf16.mxu0 %v3858_v25  ;;  %v3372_v50 = vld [vmem:[%s4833_s27] ss:$0 sm:$0xff] }
  0x3a   : > { %vm1024_vm3 = vcmp.lt.s32.totalorder %v4362_v23, 5 }
  0x3b   : > { %3623 = vmatpush3.bf16.msra.mxu1 %v3861_v27 }
  0x3c   : > { %947 = vmatpush1.bf16.msra.mxu0 %v3860_v26  ;;  %3624 = vmatprep.subr.bf16.mxu1 %v4064_v6 }
  0x3d   : > { %948 = vmatprep.subr.bf16.mxu0 %v3862_v28 }
  0x3e   : > { %p3497_p8 = scmp.ne.s32.totalorder %s4837_s26, 1 }
  0x3f   : > { %3625 = vmatpush3.bf16.msra.mxu1 %v3865_v30  ;;  %s4838_s23 = sld [smem:[#allocation13_spill]] (!%p3497_p8)  ;;  %s4839_s27 = sld [smem:[#allocation14_spill]] (!%p3497_p8) }
  0x40   : > { %949 = vmatpush1.bf16.msra.mxu0 %v3864_v29  ;;  %3626 = vmatprep.subr.bf16.mxu1 %v4064_v6 }
  0x41   : > { %950 = vmatprep.subr.bf16.mxu0 %v3866_v31 }
  0x43   : > { %3627 = vmatpush3.bf16.msra.mxu1 %v3869_v34 }
  0x44   : > { %951 = vmatpush1.bf16.msra.mxu0 %v3868_v33  ;;  %3628 = vmatprep.subr.bf16.mxu1 %v4064_v6 }
  0x45   : > { %952 = vmatprep.subr.bf16.mxu0 %v3870_v35 }
  0x47   : > { %3629 = vmatpush3.bf16.msra.mxu1 %v3873_v37 }
  0x48   : > { %953 = vmatpush1.bf16.msra.mxu0 %v3872_v36  ;;  %3640 = vmatprep.subr.bf16.mxu1 %v4064_v6 }
  0x49   : > { %3634 = vmatprep.subr.bf16.mxu0 %v4064_v6 }
  0xb7   : > { %v722_v9 = vpop.xlane.xlu0 %721 }
  0xb8   : > { %v726_v10 = vmul.f32 0.0078125, %v722_v9 }
  0xba   : > { %v4264_v11 = vsub.f32 %v717_v2, %v726_v10 }
  0xbb   : > { %v724_v12 = vpop.xlane.xlu0 %723 }
  0xbc   : > { %v727_v13 = vmul.f32 0.0078125, %v724_v12  ;;  %v730_v14 = vmul.f32 %v4264_v11, %v4264_v11 }
  0xbe   : > { %v4268_v15 = vsub.f32 %v718_v3, %v727_v13  ;;  %732 = vadd.xlane.f32.xlu1 %v730_v14 }
  0xc0   : > { %v731_v16 = vmul.f32 %v4268_v15, %v4268_v15 }
  0xc2   : > { %734 = vadd.xlane.f32.xlu1 %v731_v16 }
 0x14b   : > { %v733_v38 = vpop.xlane.xlu1 %732 }
 0x14c   : > { %v736_v39 = vmul.f32 0.0078125, %v733_v38 }
 0x14e   : > { %v738_v40 = vadd.f32 1e-05, %v736_v39 }
 0x14f   : > { %v735_v41 = vpop.xlane.xlu1 %734 }
 0x150   : > { %3962 = vrsqrt.f32 %v738_v40  ;;  %v737_v42 = vmul.f32 0.0078125, %v735_v41 }
 0x152   : > { %v739_v43 = vadd.f32 1e-05, %v737_v42 }
 0x154   : > { %3964 = vrsqrt.f32 %v739_v43 }
 0x15a   : > { %v3963_v44 = vpop.eup %3962 }
 0x15b   : > { %v742_v45 = vmul.f32 %v3963_v44, %v4264_v11 }
 0x15d   : > { %v750_v49 = vmul.f32 %v3371_v46, %v742_v45 }
 0x15e   : > { %v3965_v47 = vpop.eup %3964 }
 0x15f   : > { %v743_v48 = vmul.f32 %v3965_v47, %v4268_v15  ;;  %v758_v52 = vadd.f32 %v3372_v50, %v750_v49 }
 0x161   : > { %v751_v51 = vmul.f32 %v3371_v46, %v743_v48 }
 0x163   : > { %v759_v53 = vadd.f32 %v3372_v50, %v751_v51 }
 0x165   : > { %v760_v54 = vpack.c.bf16 %v759_v53, %v758_v52  ;;  %v4385_v53 = vld [vmem:[%s4213_s16 + $0x10] sm:$0xff]  }
 0x167   : > { %971 = vmatmul.mubr.bf16.vlgmr.msra.gmra.mrb[0].mxu0 %v760_v54  ;;  %3631 = vmatmul.mubr.bf16.vlgmr.msra.gmra.mrb[0].mxu1 %v760_v54  ;;  %v4389_v54 = vld [vmem:[%s4213_s16 + $0x18] sm:$0xff]  }
 0x168   : > { %3636 = vmatprep.mubr.msk.bf16.mxu0 %vm4066_vm0, %v4064_v6  ;;  %3642 = vmatprep.mubr.msk.bf16.mxu1 %vm4066_vm0, %v4064_v6 }
 0x23a   : > { %v972_v0 = vpop.f32.mrb[0].mxu0  ;;  %v1015_v1 = vpop.f32.mrb[0].mxu1 }
 0x23b   : > { %v973_v2 = vadd.f32 %v972_v0, %v798_v61  ;;  %v1016_v3 = vadd.f32 %v1015_v1, %v806_v62  ;;  %v974_v4 = vpop.f32.mrb[1].mxu0  ;;  %v3632_v5 = vpop.f32.mrb[1].mxu1  ;;  %v4400_v0 = vld [vmem:[%s4213_s16 + $0x8] sm:$0xff]  }
 0x23c   : > { %v975_v7 = vadd.f32 %v974_v4, %v802_v63  ;;  %v976_v8 = vpop.f32.mrb[2].mxu0  ;;  %v1018_v9 = vpop.f32.mrb[2].mxu1 }
 0x23d   : > { %v4331_v10 = vpack.c.bf16 %v973_v2, %v973_v2  ;;  %v4333_v11 = vpack.c.bf16 %v1016_v3, %v1016_v3  ;;  %v4335_v12 = vadd.f32 %v976_v8, %v798_v61  ;;  %v4337_v13 = vadd.f32 %v1018_v9, %v806_v62  ;;  %v978_v14 = vpop.f32.mrb[3].mxu0  ;;  %v3633_v15 = vpop.f32.mrb[3].mxu1  ;;  %v4395_v62 = vld [vmem:[%s4213_s16] sm:$0xff]  }
 0x23e   : > { %v4339_v16 = vpack.c.bf16 %v975_v7, %v975_v7  ;;  %v4341_v17 = vadd.f32 %v978_v14, %v802_v63 }
 0x23f   : > { %1154 = vrot.lane.b32.xlu1 %v4331_v10, %s4067_s1  ;;  %v1110_v18 = vsel %vm1108_vm1, %v4333_v11, 0 }
 0x240   : > { %3641 = vmatpush3.bf16.msra.mxu1 %v1110_v18  ;;  %1157 = vrot.lane.b32.xlu0 %v4339_v16, %s4067_s1  ;;  %v1048_v19 = vsel %vm1043_vm2, %v4339_v16, 0 }
 0x241   : > { %3635 = vmatpush3.bf16.xpose.msra.mxu0 %v1048_v19  ;;  %3652 = vmatprep.subr.bf16.mxu1 %v4064_v6 }
 0x242   : > { %3646 = vmatprep.subr.bf16.mxu0 %v4064_v6 }
 0x248   : > { %3637 = vmatmul.mubr.msk.bf16.vlgmr.msra.gmra.mrb[4].mxu0 %vm1043_vm2, %v4331_v10 }
 0x249   : > { %3648 = vmatprep.mubr.msk.bf16.mxu0 %vm4066_vm0, %v4064_v6 }
 0x2b1   : > { %v1155_v22 = vpop.permute.xlu1 %1154 }
 0x2b2   : > { %v1158_v20 = vpop.permute.xlu0 %1157 }
 0x2b3   : > { %v1163_v21 = vsel %vm1043_vm2, %v1158_v20, 0 }
 0x2b4   : > { %3647 = vmatpush3.bf16.xpose.msra.mxu0 %v1163_v21 }
 0x2b5   : > { %3658 = vmatprep.subr.bf16.mxu0 %v4064_v6 }
 0x2bb   : > { %3649 = vmatmul.mubr.msk.bf16.vlgmr.msra.gmra.mrb[8].mxu0 %vm1043_vm2, %v1155_v22 }
 0x2bc   : > { %3662 = vmatprep.mubr.msk.bf16.mxu0 %vm4066_vm0, %v4064_v6  ;;  %3659 = vmatpush3.bf16.msra.mxu0 %v4385_v53 }
 0x2bd   : > { %3660 = vmatprep.subr.bf16.mxu0 %v4064_v6 }
 0x2c0   : > { %3661 = vmatpush3.bf16.msra.mxu0 %v4389_v54 }
 0x2c1   : > { %3674 = vmatprep.subr.bf16.mxu0 %v4064_v6 }
 0x31b   : > { %v1084_v24 = vpop.f32.mrb[4].mxu0 }
 0x31c   : > { %v1090_v25 = vsel %vm1024_vm3, %v1084_v24, -1e+30  ;;  %v3638_v26 = vpop.f32.mrb[5].mxu0 }
 0x31d   : > { %v1087_v27 = vpop.f32.mrb[6].mxu0  ;;  %v1092_v28 = vsel %vm1091_vm4, %v1090_v25, -inf }
 0x31e   : > { %1093 = vmax.xlane.f32.xlu1 %v1092_v28  ;;  %v3639_v29 = vpop.f32.mrb[7].mxu0 }
 0x38e   : > { %v1199_v30 = vpop.f32.mrb[8].mxu0 }
 0x38f   : > { %v1205_v31 = vsel %vm1024_vm3, %v1199_v30, -1e+30  ;;  %v3650_v33 = vpop.f32.mrb[9].mxu0 }
 0x390   : > { %v1202_v34 = vpop.f32.mrb[10].mxu0  ;;  %v1206_v35 = vsel %vm1091_vm4, %v1205_v31, -inf }
 0x391   : > { %1207 = vmax.xlane.f32.xlu0 %v1206_v35  ;;  %v3651_v36 = vpop.f32.mrb[11].mxu0 }
 0x3ab   : > { %v1094_v37 = vpop.xlane.xlu1 %1093 }
 0x3ac   : > { %v1095_v38 = vsub.f32 %v1090_v25, %v1094_v37 }
 0x3ae   : > { %v1096_v39 = vmul.f32 1.442695, %v1095_v38 }
 0x3b0   : > { %3966 = vpow2.f32 %v1096_v39 }
 0x3ba   : > { %v3967_v40 = vpop.eup %3966 }
 0x3bb   : > { %v1098_v41 = vsel %vm1091_vm4, %v3967_v40, 0.0 }
 0x3bc   : > { %1099 = vadd.xlane.f32.xlu0 %v1098_v41 }
 0x3d2   : > { %1219 = vrot.lane.b32.xlu0 %v4333_v11, %s4067_s1 }
 0x41e   : > { %v1208_v42 = vpop.xlane.xlu0 %1207 }
 0x41f   : > { %v1209_v43 = vsub.f32 %v1205_v31, %v1208_v42 }
 0x421   : > { %v1210_v44 = vmul.f32 1.442695, %v1209_v43  ;;  %v4431_v43 = vld [vmem:[%s4213_s16 + $0x20] sm:$0xff]  }
 0x423   : > { %3968 = vpow2.f32 %v1210_v44 }
 0x42d   : > { %v3969_v45 = vpop.eup %3968 }
 0x42e   : > { %v1212_v46 = vsel %vm1091_vm4, %v3969_v45, 0.0 }
 0x42f   : > { %1213 = vadd.xlane.f32.xlu1 %v1212_v46 }
 0x440   : > { %1380 = vrot.lane.b32.xlu1 %v4339_v16, %s4068_s30 }
 0x444   : > { %1378 = vrot.lane.b32.xlu1 %v4331_v10, %s4068_s30 }
 0x449   : > { %v1100_v47 = vpop.xlane.xlu0 %1099 }
 0x44a   : > { %3970 = vrcp.f32 %v1100_v47 }
 0x44d   : > { %v1220_v50 = vpop.permute.xlu0 %1219 }
 0x44e   : > { %v1225_v52 = vsel %vm1108_vm1, %v1220_v50, 0 }
 0x454   : > { %v3971_v48 = vpop.eup %3970 }
 0x455   : > { %v1102_v49 = vmul.f32 %v3971_v48, %v3967_v40 }
 0x457   : > { %v1103_v51 = vpack.c.bf16 %v1102_v49, %v1102_v49 }
 0x459   : > { %3643 = vmatmul.mubr.msk.bf16.vlgmr.msra.gmra.mrb[4].mxu1 %vm1091_vm4, %v1103_v51  ;;  %v4446_v51 = vld [vmem:[%s4213_s16 + $0x28] sm:$0xff]  }
 0x45a   : > { %3653 = vmatpush3.bf16.msra.mxu1 %v1225_v52  ;;  %3654 = vmatprep.mubr.msk.bf16.mxu1 %vm4066_vm0, %v4064_v6 }
 0x45b   : > { %3666 = vmatprep.subr.bf16.mxu1 %v4064_v6 }
 0x4bc   : > { %v1214_v55 = vpop.xlane.xlu1 %1213 }
 0x4bd   : > { %3972 = vrcp.f32 %v1214_v55 }
 0x4c0   : > { %v1381_v7 = vpop.permute.xlu1 %1380 }
 0x4c1   : > { %v1386_v18 = vsel %vm1043_vm2, %v1381_v7, 0 }
 0x4c4   : > { %v1379_v20 = vpop.permute.xlu1 %1378 }
 0x4c7   : > { %v3973_v59 = vpop.eup %3972 }
 0x4c8   : > { %v1216_v61 = vmul.f32 %v3973_v59, %v3969_v45 }
 0x4ca   : > { %v1217_v63 = vpack.c.bf16 %v1216_v61, %v1216_v61 }
 0x4cc   : > { %3655 = vmatmul.mubr.msk.bf16.vlgmr.msra.gmra.mrb[8].mxu1 %vm1091_vm4, %v1217_v63 }
 0x4cd   : > { %3667 = vmatpush3.bf16.msra.mxu1 %v4395_v62  ;;  %3670 = vmatprep.mubr.msk.bf16.mxu1 %vm4066_vm0, %v4064_v6 }
 0x4ce   : > { %3668 = vmatprep.subr.bf16.mxu1 %v4064_v6 }
 0x4d1   : > { %3669 = vmatpush3.bf16.msra.mxu1 %v4400_v0 }
 0x4d2   : > { %3680 = vmatprep.subr.bf16.mxu1 %v4064_v6 }
 0x52c   : > { %v1146_v1 = vpop.f32.mrb[4].mxu1 }
 0x52d   : > { %v1152_v2 = vpack.c.bf16 %v1146_v1, %v1146_v1  ;;  %v3644_v3 = vpop.f32.mrb[5].mxu1 }
 0x52e   : > { %v1149_v4 = vpop.f32.mrb[6].mxu1 }
 0x52f   : > { %v3645_v5 = vpop.f32.mrb[7].mxu1  ;;  %3671 = vmatmul.mubr.msk.bf16.vlgmr.msra.gmra.mrb[12].mxu1 %vm1043_vm2, %v1152_v2 }
 0x530   : > { %3682 = vmatprep.mubr.msk.bf16.mxu1 %vm4066_vm0, %v4064_v6 }
 0x59f   : > { %v1261_v8 = vpop.f32.mrb[8].mxu1 }
 0x5a0   : > { %v1267_v9 = vpack.c.bf16 %v1261_v8, %v1261_v8  ;;  %v3656_v14 = vpop.f32.mrb[9].mxu1  ;;  %v4460_v8 = vpack.c.bf16 %v4335_v12, %v4335_v12  ;;  %v4469_v12 = vpack.c.bf16 %v4341_v17, %v4341_v17 }
 0x5a1   : > { %v1264_v15 = vpop.f32.mrb[10].mxu1 }
 0x5a2   : > { %v3657_v19 = vpop.f32.mrb[11].mxu1  ;;  %3663 = vmatmul.mubr.msk.bf16.vlgmr.msra.gmra.mrb[12].mxu0 %vm1043_vm2, %v1267_v9 }
 0x5a3   : > { %3675 = vmatpush3.bf16.xpose.msra.mxu0 %v1386_v18  ;;  %3676 = vmatprep.mubr.msk.bf16.mxu0 %vm4066_vm0, %v4064_v6 }
 0x5a4   : > { %3686 = vmatprep.subr.bf16.mxu0 %v4064_v6 }
 0x5aa   : > { %3677 = vmatmul.mubr.msk.bf16.vlgmr.msra.gmra.mrb[16].mxu0 %vm1043_vm2, %v1379_v20 }
 0x5ab   : > { %3690 = vmatprep.mubr.msk.bf16.mxu0 %vm4066_vm0, %v4064_v6  ;;  %3687 = vmatpush3.bf16.msra.mxu0 %v4431_v43 }
 0x5ac   : > { %3688 = vmatprep.subr.bf16.mxu0 %v4064_v6 }
 0x5af   : > { %3689 = vmatpush3.bf16.msra.mxu0 %v4446_v51 }
 0x5b0   : > { %3700 = vmatprep.subr.bf16.mxu0 %v4064_v6 }
 0x602   : > { %v1372_v21 = vpop.f32.mrb[12].mxu1 }
 0x603   : > { %v3672_v22 = vpop.f32.mrb[13].mxu1 }
 0x604   : > { %v1375_v24 = vpop.f32.mrb[14].mxu1  ;;  %v4474_v22 = vld [vmem:[%s4213_s16 + $0x30] sm:$0xff]  }
 0x605   : > { %v3673_v25 = vpop.f32.mrb[15].mxu1 }
 0x675   : > { %v1317_v26 = vpop.f32.mrb[12].mxu0 }
 0x676   : > { %v4418_v27 = vadd.f32 %v1372_v21, %v1317_v26  ;;  %v3664_v28 = vpop.f32.mrb[13].mxu0 }
 0x677   : > { %v1320_v29 = vpop.f32.mrb[14].mxu0  ;;  %v4481_v28 = vld [vmem:[%s4213_s16 + $0x38] sm:$0xff]  }
 0x678   : > { %v3665_v30 = vpop.f32.mrb[15].mxu0 }
 0x67d   : > { %v1422_v31 = vpop.f32.mrb[16].mxu0 }
 0x67e   : > { %v1428_v33 = vsel %vm1024_vm3, %v1422_v31, -1e+30  ;;  %v3678_v34 = vpop.f32.mrb[17].mxu0 }
 0x67f   : > { %v1425_v35 = vpop.f32.mrb[18].mxu0  ;;  %v1429_v36 = vsel %vm1091_vm4, %v1428_v33, -inf }
 0x680   : > { %1430 = vmax.xlane.f32.xlu1 %v1429_v36  ;;  %v3679_v37 = vpop.f32.mrb[19].mxu0 }
 0x681   : > { %v4507_v37 = vpack.c.bf16 %v4337_v13, %v4337_v13 }
 0x691   : > { %1548 = vrot.lane.b32.xlu1 %v4339_v16, %s4069_s25 }
 0x695   : > { %1546 = vrot.lane.b32.xlu1 %v4331_v10, %s4069_s25 }
 0x70d   : > { %v1431_v38 = vpop.xlane.xlu1 %1430 }
 0x70e   : > { %v1432_v39 = vsub.f32 %v1428_v33, %v1431_v38 }
 0x710   : > { %v1433_v40 = vmul.f32 1.442695, %v1432_v39 }
 0x711   : > { %v1549_v47 = vpop.permute.xlu1 %1548 }
 0x712   : > { %3974 = vpow2.f32 %v1433_v40  ;;  %v1554_v49 = vsel %vm1043_vm2, %v1549_v47, 0 }
 0x715   : > { %v1547_v50 = vpop.permute.xlu1 %1546 }
 0x71c   : > { %v3975_v41 = vpop.eup %3974 }
 0x71d   : > { %v1435_v42 = vsel %vm1091_vm4, %v3975_v41, 0.0 }
 0x71e   : > { %1436 = vadd.xlane.f32.xlu0 %v1435_v42 }
 0x734   : > { %1441 = vrot.lane.b32.xlu0 %v4333_v11, %s4068_s30 }
 0x7ab   : > { %v1437_v16 = vpop.xlane.xlu0 %1436 }
 0x7ac   : > { %3976 = vrcp.f32 %v1437_v16 }
 0x7af   : > { %v1442_v10 = vpop.permute.xlu0 %1441 }
 0x7b0   : > { %v1447_v44 = vsel %vm1108_vm1, %v1442_v10, 0 }
 0x7b1   : > { %3681 = vmatpush3.bf16.msra.mxu1 %v1447_v44 }
 0x7b2   : > { %3694 = vmatprep.subr.bf16.mxu1 %v4064_v6 }
 0x7b6   : > { %v3977_v45 = vpop.eup %3976 }
 0x7b7   : > { %v1439_v46 = vmul.f32 %v3977_v45, %v3975_v41 }
 0x7b9   : > { %v1440_v48 = vpack.c.bf16 %v1439_v46, %v1439_v46 }
 0x7bb   : > { %3683 = vmatmul.mubr.msk.bf16.vlgmr.msra.gmra.mrb[16].mxu1 %vm1091_vm4, %v1440_v48 }
 0x7bc   : > { %3695 = vmatpush3.bf16.xpose.msra.mxu1 %v1554_v49  ;;  %3696 = vmatprep.mubr.msk.bf16.mxu1 %vm4066_vm0, %v4064_v6 }
 0x7bd   : > { %3706 = vmatprep.subr.bf16.mxu1 %v4064_v6 }
 0x7c3   : > { %3697 = vmatmul.mubr.msk.bf16.vlgmr.msra.gmra.mrb[20].mxu1 %vm1043_vm2, %v1547_v50 }
 0x7c4   : > { %3710 = vmatprep.mubr.msk.bf16.mxu1 %vm4066_vm0, %v4064_v6  ;;  %3707 = vmatpush3.bf16.msra.mxu1 %v4474_v22 }
 0x7c5   : > { %3708 = vmatprep.subr.bf16.mxu1 %v4064_v6 }
 0x7c8   : > { %3709 = vmatpush3.bf16.msra.mxu1 %v4481_v28 }
 0x7c9   : > { %3720 = vmatprep.subr.bf16.mxu1 %v4064_v6 }
 0x88e   : > { %v1483_v52 = vpop.f32.mrb[16].mxu1 }
 0x88f   : > { %v1489_v55 = vpack.c.bf16 %v1483_v52, %v1483_v52  ;;  %v3684_v59 = vpop.f32.mrb[17].mxu1 }
 0x890   : > { %v1486_v61 = vpop.f32.mrb[18].mxu1 }
 0x891   : > { %v3685_v63 = vpop.f32.mrb[19].mxu1  ;;  %3691 = vmatmul.mubr.msk.bf16.vlgmr.msra.gmra.mrb[20].mxu0 %vm1043_vm2, %v1489_v55 }
 0x892   : > { %3702 = vmatprep.mubr.msk.bf16.mxu0 %vm4066_vm0, %v4064_v6 }
 0x896   : > { %v1590_v1 = vpop.f32.mrb[20].mxu1 }
 0x897   : > { %v1596_v2 = vsel %vm1024_vm3, %v1590_v1, -1e+30  ;;  %v3698_v3 = vpop.f32.mrb[21].mxu1 }
 0x898   : > { %v1593_v4 = vpop.f32.mrb[22].mxu1  ;;  %v1597_v5 = vsel %vm1091_vm4, %v1596_v2, -inf }
 0x899   : > { %1598 = vmax.xlane.f32.xlu0 %v1597_v5  ;;  %v3699_v7 = vpop.f32.mrb[23].mxu1 }
 0x8af   : > { %1609 = vrot.lane.b32.xlu0 %v4333_v11, %s4069_s25 }
 0x8b3   : > { %1824 = vrot.lane.b32.xlu0 %v4460_v8, %s4067_s1 }
 0x926   : > { %v1599_v9 = vpop.xlane.xlu0 %1598 }
 0x927   : > { %v1600_v14 = vsub.f32 %v1596_v2, %v1599_v9 }
 0x929   : > { %v1601_v15 = vmul.f32 1.442695, %v1600_v14 }
 0x92a   : > { %v1610_v18 = vpop.permute.xlu0 %1609 }
 0x92b   : > { %3978 = vpow2.f32 %v1601_v15  ;;  %v1615_v19 = vsel %vm1108_vm1, %v1610_v18, 0 }
 0x92c   : > { %3701 = vmatpush3.bf16.msra.mxu0 %v1615_v19 }
 0x92d   : > { %3714 = vmatprep.subr.bf16.mxu0 %v4064_v6 }
 0x92e   : > { %v1825_v36 = vpop.permute.xlu0 %1824 }
 0x935   : > { %v3979_v11 = vpop.eup %3978 }
 0x936   : > { %v1603_v20 = vsel %vm1091_vm4, %v3979_v11, 0.0 }
 0x937   : > { %1604 = vadd.xlane.f32.xlu1 %v1603_v20 }
 0x948   : > { %1827 = vrot.lane.b32.xlu1 %v4469_v12, %s4067_s1 }
 0x964   : > { %v1539_v21 = vpop.f32.mrb[20].mxu0 }
 0x965   : > { %v4477_v24 = vadd.f32 %v1539_v21, %v4418_v27  ;;  %v3692_v25 = vpop.f32.mrb[21].mxu0  ;;  %v1720_v27 = vsel %vm1043_vm2, %v4469_v12, 0 }
 0x966   : > { %v1542_v26 = vpop.f32.mrb[22].mxu0 }
 0x967   : > { %v3693_v29 = vpop.f32.mrb[23].mxu0 }
 0x9c4   : > { %v1605_v17 = vpop.xlane.xlu1 %1604 }
 0x9c5   : > { %3980 = vrcp.f32 %v1605_v17 }
 0x9c8   : > { %v1828_v34 = vpop.permute.xlu1 %1827 }
 0x9c9   : > { %v1833_v35 = vsel %vm1043_vm2, %v1828_v34, 0 }
 0x9cf   : > { %v3981_v30 = vpop.eup %3980 }
 0x9d0   : > { %v1607_v31 = vmul.f32 %v3981_v30, %v3979_v11 }
 0x9d2   : > { %v1608_v33 = vpack.c.bf16 %v1607_v31, %v1607_v31 }
 0x9d4   : > { %3703 = vmatmul.mubr.msk.bf16.vlgmr.msra.gmra.mrb[24].mxu0 %vm1091_vm4, %v1608_v33 }
 0x9d5   : > { %3715 = vmatpush3.bf16.xpose.msra.mxu0 %v1720_v27  ;;  %3716 = vmatprep.mubr.msk.bf16.mxu0 %vm4066_vm0, %v4064_v6 }
 0x9d6   : > { %3726 = vmatprep.subr.bf16.mxu0 %v4064_v6 }
 0x9dc   : > { %3717 = vmatmul.mubr.msk.bf16.vlgmr.msra.gmra.mrb[28].mxu0 %vm1043_vm2, %v4460_v8 }
 0x9dd   : > { %3727 = vmatpush3.bf16.xpose.msra.mxu0 %v1833_v35  ;;  %3728 = vmatprep.mubr.msk.bf16.mxu0 %vm4066_vm0, %v4064_v6 }
 0x9de   : > { %3738 = vmatprep.subr.bf16.mxu0 %v4064_v6 }
 0x9e4   : > { %3729 = vmatmul.mubr.msk.bf16.vlgmr.msra.gmra.mrb[32].mxu0 %vm1043_vm2, %v1825_v36 }
 0x9e5   : > { %3739 = vmatpush3.bf16.msra.mxu0 %v4385_v53  ;;  %3742 = vmatprep.mubr.msk.bf16.mxu0 %vm4066_vm0, %v4064_v6  ;;  %v1780_v53 = vsel %vm1108_vm1, %v4507_v37, 0 }
 0x9e6   : > { %3740 = vmatprep.subr.bf16.mxu0 %v4064_v6 }
 0x9e9   : > { %3741 = vmatpush3.bf16.msra.mxu0 %v4389_v54 }
 0x9ea   : > { %3754 = vmatprep.subr.bf16.mxu0 %v4064_v6 }
 0xaa7   : > { %v1651_v38 = vpop.f32.mrb[24].mxu0 }
 0xaa8   : > { %v1657_v39 = vpack.c.bf16 %v1651_v38, %v1651_v38  ;;  %v3704_v40 = vpop.f32.mrb[25].mxu0 }
 0xaa9   : > { %v1654_v41 = vpop.f32.mrb[26].mxu0 }
 0xaaa   : > { %v3705_v42 = vpop.f32.mrb[27].mxu0  ;;  %3711 = vmatmul.mubr.msk.bf16.vlgmr.msra.gmra.mrb[24].mxu1 %vm1043_vm2, %v1657_v39 }
 0xaab   : > { %3721 = vmatpush3.bf16.msra.mxu1 %v1780_v53  ;;  %3722 = vmatprep.mubr.msk.bf16.mxu1 %vm4066_vm0, %v4064_v6 }
 0xaac   : > { %3732 = vmatprep.subr.bf16.mxu1 %v4064_v6 }
 0xaaf   : > { %v1756_v54 = vpop.f32.mrb[28].mxu0 }
 0xab0   : > { %v1762_v13 = vsel %vm1024_vm3, %v1756_v54, -1e+30  ;;  %v3718_v16 = vpop.f32.mrb[29].mxu0 }
 0xab1   : > { %v1759_v10 = vpop.f32.mrb[30].mxu0  ;;  %v1763_v44 = vsel %vm1091_vm4, %v1762_v13, -inf }
 0xab2   : > { %1764 = vmax.xlane.f32.xlu1 %v1763_v44  ;;  %v3719_v45 = vpop.f32.mrb[31].mxu0 }
 0xab7   : > { %v1869_v46 = vpop.f32.mrb[32].mxu0 }
 0xab8   : > { %v1875_v47 = vsel %vm1024_vm3, %v1869_v46, -1e+30  ;;  %v3730_v48 = vpop.f32.mrb[33].mxu0 }
 0xab9   : > { %v1872_v49 = vpop.f32.mrb[34].mxu0  ;;  %v1876_v50 = vsel %vm1091_vm4, %v1875_v47, -inf }
 0xaba   : > { %1877 = vmax.xlane.f32.xlu0 %v1876_v50  ;;  %v3731_v52 = vpop.f32.mrb[35].mxu0 }
 0xac3   : > { %1889 = vrot.lane.b32.xlu1 %v4507_v37, %s4067_s1 }
 0xac7   : > { %2024 = vrot.lane.b32.xlu1 %v4460_v8, %s4068_s30 }
 0xb3f   : > { %v1765_v55 = vpop.xlane.xlu1 %1764 }
 0xb40   : > { %v1766_v59 = vsub.f32 %v1762_v13, %v1765_v55 }
 0xb42   : > { %v1767_v61 = vmul.f32 1.442695, %v1766_v59 }
 0xb43   : > { %v1890_v26 = vpop.permute.xlu1 %1889 }
 0xb44   : > { %3982 = vpow2.f32 %v1767_v61  ;;  %v1895_v17 = vsel %vm1108_vm1, %v1890_v26, 0 }
 0xb47   : > { %v1878_v63 = vpop.xlane.xlu0 %1877  ;;  %v2025_v53 = vpop.permute.xlu1 %2024 }
 0xb48   : > { %v1879_v1 = vsub.f32 %v1875_v47, %v1878_v63 }
 0xb4a   : > { %v1880_v2 = vmul.f32 1.442695, %v1879_v1 }
 0xb4c   : > { %3984 = vpow2.f32 %v1880_v2 }
 0xb4e   : > { %v3983_v3 = vpop.eup %3982 }
 0xb4f   : > { %v1769_v4 = vsel %vm1091_vm4, %v3983_v3, 0.0 }
 0xb50   : > { %1770 = vadd.xlane.f32.xlu0 %v1769_v4 }
 0xb56   : > { %v3985_v5 = vpop.eup %3984 }
 0xb57   : > { %v1882_v7 = vsel %vm1091_vm4, %v3985_v5, 0.0 }
 0xb58   : > { %1883 = vadd.xlane.f32.xlu0 %v1882_v7 }
 0xb6e   : > { %2026 = vrot.lane.b32.xlu0 %v4469_v12, %s4068_s30 }
 0xb7d   : > { %v1707_v9 = vpop.f32.mrb[24].mxu1 }
 0xb7e   : > { %v4530_v14 = vadd.f32 %v1707_v9, %v4477_v24  ;;  %v3712_v15 = vpop.f32.mrb[25].mxu1 }
 0xb7f   : > { %v1710_v18 = vpop.f32.mrb[26].mxu1 }
 0xb80   : > { %v3713_v19 = vpop.f32.mrb[27].mxu1 }
 0xbdd   : > { %v1771_v11 = vpop.xlane.xlu0 %1770 }
 0xbde   : > { %3986 = vrcp.f32 %v1771_v11 }
 0xbe5   : > { %v1884_v20 = vpop.xlane.xlu0 %1883 }
 0xbe6   : > { %3988 = vrcp.f32 %v1884_v20 }
 0xbe8   : > { %v3987_v21 = vpop.eup %3986 }
 0xbe9   : > { %v1773_v25 = vmul.f32 %v3987_v21, %v3983_v3 }
 0xbeb   : > { %v1774_v29 = vpack.c.bf16 %v1773_v25, %v1773_v25 }
 0xbed   : > { %3723 = vmatmul.mubr.msk.bf16.vlgmr.msra.gmra.mrb[28].mxu1 %vm1091_vm4, %v1774_v29 }
 0xbee   : > { %3733 = vmatpush3.bf16.msra.mxu1 %v1895_v17  ;;  %3734 = vmatprep.mubr.msk.bf16.mxu1 %vm4066_vm0, %v4064_v6 }
 0xbef   : > { %3746 = vmatprep.subr.bf16.mxu1 %v4064_v6 }
 0xbf0   : > { %v3989_v24 = vpop.eup %3988 }
 0xbf1   : > { %v1886_v30 = vmul.f32 %v3989_v24, %v3985_v5 }
 0xbf3   : > { %v1887_v31 = vpack.c.bf16 %v1886_v30, %v1886_v30 }
 0xbf5   : > { %3735 = vmatmul.mubr.msk.bf16.vlgmr.msra.gmra.mrb[32].mxu1 %vm1091_vm4, %v1887_v31  ;;  %v3429_v31 = vld [vmem:[%s4834_s2] ss:$0 sm:$0xff] }
 0xbf6   : > { %3747 = vmatpush3.bf16.msra.mxu1 %v4395_v62  ;;  %3750 = vmatprep.mubr.msk.bf16.mxu1 %vm4066_vm0, %v4064_v6  ;;  %v2027_v62 = vpop.permute.xlu0 %2026 }
 0xbf7   : > { %3748 = vmatprep.subr.bf16.mxu1 %v4064_v6  ;;  %v2032_v42 = vsel %vm1043_vm2, %v2027_v62, 0 }
 0xbfa   : > { %3749 = vmatpush3.bf16.msra.mxu1 %v4400_v0 }
 0xbfb   : > { %3760 = vmatprep.subr.bf16.mxu1 %v4064_v6 }
 0xcc0   : > { %v1816_v33 = vpop.f32.mrb[28].mxu1 }
 0xcc1   : > { %v1822_v27 = vpack.c.bf16 %v1816_v33, %v1816_v33  ;;  %v3724_v34 = vpop.f32.mrb[29].mxu1 }
 0xcc2   : > { %v1819_v35 = vpop.f32.mrb[30].mxu1 }
 0xcc3   : > { %v3725_v36 = vpop.f32.mrb[31].mxu1  ;;  %3751 = vmatmul.mubr.msk.bf16.vlgmr.msra.gmra.mrb[36].mxu1 %vm1043_vm2, %v1822_v27 }
 0xcc4   : > { %3762 = vmatprep.mubr.msk.bf16.mxu1 %vm4066_vm0, %v4064_v6 }
 0xcc8   : > { %v1931_v38 = vpop.f32.mrb[32].mxu1 }
 0xcc9   : > { %v1937_v39 = vpack.c.bf16 %v1931_v38, %v1931_v38  ;;  %v3736_v40 = vpop.f32.mrb[33].mxu1 }
 0xcca   : > { %v1934_v41 = vpop.f32.mrb[34].mxu1 }
 0xccb   : > { %v3737_v0 = vpop.f32.mrb[35].mxu1  ;;  %3743 = vmatmul.mubr.msk.bf16.vlgmr.msra.gmra.mrb[36].mxu0 %vm1043_vm2, %v1937_v39 }
 0xccc   : > { %3755 = vmatpush3.bf16.xpose.msra.mxu0 %v2032_v42  ;;  %3756 = vmatprep.mubr.msk.bf16.mxu0 %vm4066_vm0, %v4064_v6 }
 0xccd   : > { %3766 = vmatprep.subr.bf16.mxu0 %v4064_v6 }
 0xcd3   : > { %3757 = vmatmul.mubr.msk.bf16.vlgmr.msra.gmra.mrb[40].mxu0 %vm1043_vm2, %v2025_v53 }
 0xcd4   : > { %3767 = vmatpush3.bf16.msra.mxu0 %v4431_v43  ;;  %3770 = vmatprep.mubr.msk.bf16.mxu0 %vm4066_vm0, %v4064_v6 }
 0xcd5   : > { %3768 = vmatprep.subr.bf16.mxu0 %v4064_v6 }
 0xcd8   : > { %3769 = vmatpush3.bf16.msra.mxu0 %v4446_v51 }
 0xcd9   : > { %3780 = vmatprep.subr.bf16.mxu0 %v4064_v6 }
 0xd96   : > { %v2018_v54 = vpop.f32.mrb[36].mxu1 }
 0xd97   : > { %v3752_v13 = vpop.f32.mrb[37].mxu1 }
 0xd98   : > { %v2021_v16 = vpop.f32.mrb[38].mxu1 }
 0xd99   : > { %v3753_v10 = vpop.f32.mrb[39].mxu1 }
 0xd9e   : > { %v1975_v44 = vpop.f32.mrb[36].mxu0 }
 0xd9f   : > { %v4559_v45 = vadd.f32 %v2018_v54, %v1975_v44  ;;  %v3744_v46 = vpop.f32.mrb[37].mxu0 }
 0xda0   : > { %v1978_v47 = vpop.f32.mrb[38].mxu0 }
 0xda1   : > { %v3745_v48 = vpop.f32.mrb[39].mxu0 }
 0xda6   : > { %v2068_v43 = vpop.f32.mrb[40].mxu0 }
 0xda7   : > { %v2074_v49 = vsel %vm1024_vm3, %v2068_v43, -1e+30  ;;  %v3758_v50 = vpop.f32.mrb[41].mxu0 }
 0xda8   : > { %v2071_v52 = vpop.f32.mrb[42].mxu0  ;;  %v2075_v51 = vsel %vm1091_vm4, %v2074_v49, -inf }
 0xda9   : > { %2076 = vmax.xlane.f32.xlu1 %v2075_v51  ;;  %v3759_v55 = vpop.f32.mrb[43].mxu0  ;;  %v4019_v52 = vld [vmem:[%s4251_s22 + $0x8] sm:$0xff] }
 0xdba   : > { %2182 = vrot.lane.b32.xlu1 %v4469_v12, %s4069_s25 }
 0xdbe   : > { %2180 = vrot.lane.b32.xlu1 %v4460_v8, %s4069_s25 }
 0xe36   : > { %v2077_v59 = vpop.xlane.xlu1 %2076 }
 0xe37   : > { %v2078_v61 = vsub.f32 %v2074_v49, %v2077_v59 }
 0xe39   : > { %v2079_v63 = vmul.f32 1.442695, %v2078_v61 }
 0xe3a   : > { %v2183_v7 = vpop.permute.xlu1 %2182 }
 0xe3b   : > { %3990 = vpow2.f32 %v2079_v63  ;;  %v2188_v15 = vsel %vm1043_vm2, %v2183_v7, 0  ;;  %v3882_v63 = vld [vmem:[%s4231_s4] ss:$16 sps:$4 sm:$0xff]   ;;  %v3896_v7 = vld [vmem:[%s4231_s4 + $0x44] ss:$16 sps:$4 sm:$0xff]  }
 0xe3e   : > { %v2181_v18 = vpop.permute.xlu1 %2180 }
 0xe45   : > { %v3991_v1 = vpop.eup %3990 }
 0xe46   : > { %v2081_v2 = vsel %vm1091_vm4, %v3991_v1, 0.0 }
 0xe47   : > { %2082 = vadd.xlane.f32.xlu0 %v2081_v2  ;;  %v3885_v2 = vld [vmem:[%s4231_s4 + $0x8] ss:$16 sps:$4 sm:$0xff]  }
 0xe5d   : > { %2087 = vrot.lane.b32.xlu0 %v4507_v37, %s4068_s30 }
 0xed4   : > { %v2083_v3 = vpop.xlane.xlu0 %2082 }
 0xed5   : > { %3992 = vrcp.f32 %v2083_v3  ;;  %v3887_v3 = vld [vmem:[%s4231_s4 + $0xc] ss:$16 sps:$4 sm:$0xff]  }
 0xed8   : > { %v2088_v4 = vpop.permute.xlu0 %2087 }
 0xed9   : > { %v2093_v5 = vsel %vm1108_vm1, %v2088_v4, 0  ;;  %v3890_v4 = vld [vmem:[%s4231_s4 + $0x24] ss:$16 sps:$4 sm:$0xff]  }
 0xeda   : > { %3761 = vmatpush3.bf16.msra.mxu1 %v2093_v5  ;;  %v3893_v5 = vld [vmem:[%s4231_s4 + $0x2c] ss:$16 sps:$4 sm:$0xff]  }
 0xedb   : > { %3774 = vmatprep.subr.bf16.mxu1 %v4064_v6 }
 0xedf   : > { %v3993_v8 = vpop.eup %3992 }
 0xee0   : > { %v2085_v12 = vmul.f32 %v3993_v8, %v3991_v1  ;;  %v3884_v1 = vld [vmem:[%s4231_s4 + $0x4] ss:$16 sps:$4 sm:$0xff]   ;;  %v3888_v8 = vld [vmem:[%s4231_s4 + $0x20] ss:$16 sps:$4 sm:$0xff]  }
 0xee2   : > { %v2086_v9 = vpack.c.bf16 %v2085_v12, %v2085_v12  ;;  %v3891_v12 = vld [vmem:[%s4231_s4 + $0x28] ss:$16 sps:$4 sm:$0xff]  }
 0xee4   : > { %3763 = vmatmul.mubr.msk.bf16.vlgmr.msra.gmra.mrb[40].mxu1 %vm1091_vm4, %v2086_v9  ;;  %v3899_v9 = vld [vmem:[%s4231_s4 + $0x4c] ss:$16 sps:$4 sm:$0xff]  }
 0xee5   : > { %3775 = vmatpush3.bf16.xpose.msra.mxu1 %v2188_v15  ;;  %3776 = vmatprep.mubr.msk.bf16.mxu1 %vm4066_vm0, %v4064_v6  ;;  %v3894_v15 = vld [vmem:[%s4231_s4 + $0x40] ss:$16 sps:$4 sm:$0xff]  }
 0xee6   : > { %3786 = vmatprep.subr.bf16.mxu1 %v4064_v6 }
 0xeec   : > { %3777 = vmatmul.mubr.msk.bf16.vlgmr.msra.gmra.mrb[44].mxu1 %vm1043_vm2, %v2181_v18  ;;  %v3897_v18 = vld [vmem:[%s4231_s4 + $0x48] ss:$16 sps:$4 sm:$0xff]  }
 0xeed   : > { %3787 = vmatpush3.bf16.msra.mxu1 %v4474_v22  ;;  %3790 = vmatprep.mubr.msk.bf16.mxu1 %vm4066_vm0, %v4064_v6  ;;  %v4018_v22 = vld [vmem:[%s4251_s22] sm:$0xff] }
 0xeee   : > { %3788 = vmatprep.subr.bf16.mxu1 %v4064_v6  ;;  %v2336_v29 = vadd.f32 %v4018_v22, %v4530_v14  ;;  %v3900_v22 = vld [vmem:[%s4231_s4 + $0x60] ss:$16 sps:$4 sm:$0xff]  }
 0xef0   : > { %v4597_v27 = vadd.f32 %v3429_v31, %v2336_v29  ;;  %v3903_v29 = vld [vmem:[%s4231_s4 + $0x68] ss:$16 sps:$4 sm:$0xff]  }
 0xef1   : > { %3789 = vmatpush3.bf16.msra.mxu1 %v4481_v28 }
 0xef2   : > { %2645 = vmatprep.subr.bf16.mxu1 %v3887_v3  ;;  %v3938_v3 = vld [vmem:[%s4242_s0 + $0x50] sm:$0xff]  }
 0xfb7   : > { %v2129_v19 = vpop.f32.mrb[40].mxu1 }
 0xfb8   : > { %v2135_v11 = vpack.c.bf16 %v2129_v19, %v2129_v19  ;;  %v3764_v20 = vpop.f32.mrb[41].mxu1 }
 0xfb9   : > { %v2132_v21 = vpop.f32.mrb[42].mxu1 }
 0xfba   : > { %v3765_v25 = vpop.f32.mrb[43].mxu1  ;;  %3771 = vmatmul.mubr.msk.bf16.vlgmr.msra.gmra.mrb[44].mxu0 %vm1043_vm2, %v2135_v11 }
 0xfbb   : > { %3782 = vmatprep.mubr.msk.bf16.mxu0 %vm4066_vm0, %v4064_v6  ;;  %v3902_v25 = vld [vmem:[%s4231_s4 + $0x64] ss:$16 sps:$4 sm:$0xff]  }
 0xfbf   : > { %v2224_v26 = vpop.f32.mrb[44].mxu1 }
 0xfc0   : > { %v2230_v17 = vsel %vm1024_vm3, %v2224_v26, -1e+30  ;;  %v3778_v24 = vpop.f32.mrb[45].mxu1  ;;  %v3905_v26 = vld [vmem:[%s4231_s4 + $0x6c] ss:$16 sps:$4 sm:$0xff]  }
 0xfc1   : > { %v2227_v30 = vpop.f32.mrb[46].mxu1  ;;  %v2231_v28 = vsel %vm1091_vm4, %v2230_v17, -inf  ;;  %v3911_v24 = vld [vmem:[%s4231_s4 + $0x8c] ss:$16 sps:$4 sm:$0xff]  }
 0xfc2   : > { %2232 = vmax.xlane.f32.xlu1 %v2231_v28  ;;  %v3779_v33 = vpop.f32.mrb[47].mxu1  ;;  %v3906_v30 = vld [vmem:[%s4231_s4 + $0x80] ss:$16 sps:$4 sm:$0xff]   ;;  %v3909_v28 = vld [vmem:[%s4231_s4 + $0x88] ss:$16 sps:$4 sm:$0xff]  }
 0xfc3   : > { %v3917_v33 = vld [vmem:[%s4231_s4 + $0xac] ss:$16 sps:$4 sm:$0xff]  }
 0xfc6   : > { %2349 = vadd.xlane.f32.xlu1 %v4597_v27 }
0x104f   : > { %v2233_v6 = vpop.xlane.xlu1 %2232 }
0x1050   : > { %v2234_v14 = vsub.f32 %v2230_v17, %v2233_v6  ;;  %v3908_v17 = vld [vmem:[%s4231_s4 + $0x84] ss:$16 sps:$4 sm:$0xff]   ;;  %v3912_v6 = vld [vmem:[%s4231_s4 + $0xa0] ss:$16 sps:$4 sm:$0xff]  }
0x1052   : > { %v2235_v34 = vmul.f32 1.442695, %v2234_v14  ;;  %v3915_v14 = vld [vmem:[%s4231_s4 + $0xa8] ss:$16 sps:$4 sm:$0xff]  }
0x1053   : > { %v2350_v46 = vpop.xlane.xlu1 %2349 }
0x1054   : > { %3994 = vpow2.f32 %v2235_v34  ;;  %v2353_v48 = vmul.f32 0.0078125, %v2350_v46  ;;  %v3920_v34 = vld [vmem:[%s4231_s4 + $0xc4] ss:$16 sps:$4 sm:$0xff]  }
0x1056   : > { %v4611_v59 = vsub.f32 %v4597_v27, %v2353_v48 }
0x105e   : > { %v3995_v23 = vpop.eup %3994 }
0x105f   : > { %v2237_v35 = vsel %vm1091_vm4, %v3995_v23, 0.0 }
0x1060   : > { %2238 = vadd.xlane.f32.xlu0 %v2237_v35  ;;  %v3918_v35 = vld [vmem:[%s4231_s4 + $0xc0] ss:$16 sps:$4 sm:$0xff]  }
0x1076   : > { %2243 = vrot.lane.b32.xlu0 %v4507_v37, %s4069_s25 }
0x108d   : > { %v2173_v36 = vpop.f32.mrb[44].mxu0 }
0x108e   : > { %v2179_v62 = vadd.f32 %v2173_v36, %v4559_v45  ;;  %v3772_v38 = vpop.f32.mrb[45].mxu0  ;;  %v3921_v36 = vld [vmem:[%s4231_s4 + $0xc8] ss:$16 sps:$4 sm:$0xff]  }
0x108f   : > { %v2176_v39 = vpop.f32.mrb[46].mxu0  ;;  %v3929_v38 = vld [vmem:[%s4231_s4 + $0xec] ss:$16 sps:$4 sm:$0xff]  }
0x1090   : > { %v3773_v40 = vpop.f32.mrb[47].mxu0  ;;  %v3924_v39 = vld [vmem:[%s4231_s4 + $0xe0] ss:$16 sps:$4 sm:$0xff]  }
0x1091   : > { %v3927_v40 = vld [vmem:[%s4231_s4 + $0xe8] ss:$16 sps:$4 sm:$0xff]  }
0x10ed   : > { %v2239_v41 = vpop.xlane.xlu0 %2238 }
0x10ee   : > { %3996 = vrcp.f32 %v2239_v41 }
0x10f1   : > { %v2244_v42 = vpop.permute.xlu0 %2243 }
0x10f2   : > { %v2249_v0 = vsel %vm1108_vm1, %v2244_v42, 0 }
0x10f3   : > { %3781 = vmatpush3.bf16.msra.mxu0 %v2249_v0 }
0x10f4   : > { %2602 = vmatprep.subr.bf16.mxu0 %v3884_v1  ;;  %v3936_v1 = vld [vmem:[%s4242_s0 + $0x8] sm:$0xff]  }
0x10f8   : > { %v3997_v53 = vpop.eup %3996 }
0x10f9   : > { %v2241_v54 = vmul.f32 %v3997_v53, %v3995_v23  ;;  %v3923_v23 = vld [vmem:[%s4231_s4 + $0xcc] ss:$16 sps:$4 sm:$0xff]  }
0x10fb   : > { %v2242_v13 = vpack.c.bf16 %v2241_v54, %v2241_v54 }
0x10fd   : > { %3783 = vmatmul.mubr.msk.bf16.vlgmr.msra.gmra.mrb[48].mxu0 %vm1091_vm4, %v2242_v13 }
0x10fe   : > { %2634 = vmatprep.mubr.bf16.mxu0 %v4065_v32  ;;  %2603 = vmatpush1.bf16.msra.mxu0 %v3882_v63  ;;  %v3935_v63 = vld [vmem:[%s4242_s0 + $0xc8] sm:$0xff]  }
0x10ff   : > { %2604 = vmatprep.subr.bf16.mxu0 %v3890_v4  ;;  %v3939_v4 = vld [vmem:[%s4242_s0 + $0xd0] sm:$0xff]  }
0x1102   : > { %2605 = vmatpush1.bf16.msra.mxu0 %v3888_v8  ;;  %v3941_v8 = vld [vmem:[%s4242_s0 + $0x90] sm:$0xff]  }
0x1103   : > { %2606 = vmatprep.subr.bf16.mxu0 %v3896_v7  ;;  %v3943_v7 = vld [vmem:[%s4242_s0 + $0xd8] sm:$0xff]  }
0x1106   : > { %2607 = vmatpush1.bf16.msra.mxu0 %v3894_v15  ;;  %v3945_v15 = vld [vmem:[%s4242_s0 + $0x98] sm:$0xff]  }
0x1107   : > { %2608 = vmatprep.subr.bf16.mxu0 %v3902_v25  ;;  %v3951_v25 = vld [vmem:[%s4242_s0 + $0xe8] sm:$0xff]  }
0x110a   : > { %2609 = vmatpush1.bf16.msra.mxu0 %v3900_v22  ;;  %v3953_v22 = vld [vmem:[%s4242_s0 + $0xa8] sm:$0xff]  }
0x110b   : > { %2610 = vmatprep.subr.bf16.mxu0 %v3908_v17  ;;  %v3955_v17 = vld [vmem:[%s4242_s0 + $0xf0] sm:$0xff]  }
0x110e   : > { %2611 = vmatpush1.bf16.msra.mxu0 %v3906_v30  ;;  %v3957_v30 = vld [vmem:[%s4242_s0 + $0xb0] sm:$0xff]  }
0x11d0   : > { %v2285_v37 = vpop.f32.mrb[48].mxu0 }
0x11d1   : > { %v2291_v16 = vpack.c.bf16 %v2285_v37, %v2285_v37  ;;  %v3784_v10 = vpop.f32.mrb[49].mxu0 }
0x11d2   : > { %v2288_v44 = vpop.f32.mrb[50].mxu0  ;;  %v3430_v10 = vld [vmem:[%s4835_s28] ss:$0 sm:$0xff] }
0x11d3   : > { %v3785_v45 = vpop.f32.mrb[51].mxu0  ;;  %3791 = vmatmul.mubr.msk.bf16.vlgmr.msra.gmra.mrb[48].mxu1 %vm1043_vm2, %v2291_v16 }
0x11d4   : > { %2677 = vmatprep.mubr.bf16.mxu1 %v4065_v32  ;;  %v2357_v32 = vmul.f32 %v4611_v59, %v4611_v59  ;;  %2646 = vmatpush1.bf16.msra.mxu1 %v3885_v2  ;;  %v3937_v2 = vld [vmem:[%s4242_s0 + $0x88] sm:$0xff]  }
0x11d5   : > { %2647 = vmatprep.subr.bf16.mxu1 %v3893_v5  ;;  %v3940_v5 = vld [vmem:[%s4242_s0 + $0x10] sm:$0xff]  }
0x11d8   : > { %2648 = vmatpush1.bf16.msra.mxu1 %v3891_v12  ;;  %v3942_v12 = vld [vmem:[%s4242_s0 + $0x58] sm:$0xff]  }
0x11d9   : > { %2649 = vmatprep.subr.bf16.mxu1 %v3899_v9  ;;  %v3944_v9 = vld [vmem:[%s4242_s0 + $0x18] sm:$0xff]  }
0x11dc   : > { %2650 = vmatpush1.bf16.msra.mxu1 %v3897_v18  ;;  %v3946_v18 = vld [vmem:[%s4242_s0 + $0x60] sm:$0xff]  }
0x11dd   : > { %2651 = vmatprep.subr.bf16.mxu1 %v3905_v26  ;;  %v3952_v26 = vld [vmem:[%s4242_s0 + $0x28] sm:$0xff]  }
0x11e0   : > { %2652 = vmatpush1.bf16.msra.mxu1 %v3903_v29  ;;  %v3954_v29 = vld [vmem:[%s4242_s0 + $0x70] sm:$0xff]  }
0x11e1   : > { %2653 = vmatprep.subr.bf16.mxu1 %v3911_v24  ;;  %v3956_v24 = vld [vmem:[%s4242_s0 + $0x30] sm:$0xff]  }
0x11e4   : > { %2654 = vmatpush1.bf16.msra.mxu1 %v3909_v28  ;;  %v3958_v28 = vld [vmem:[%s4242_s0 + $0x78] sm:$0xff]  }
0x11e5   : > { %2655 = vmatprep.subr.bf16.mxu1 %v3917_v33  ;;  %v3960_v33 = vld [vmem:[%s4242_s0 + $0x38] sm:$0xff]  }
0x11e8   : > { %2656 = vmatpush1.bf16.msra.mxu1 %v3915_v14  ;;  %v2420_v14 = vld [vmem:[%s4237_s17] sm:$0xf] }
0x11e9   : > { %2657 = vmatprep.subr.bf16.mxu1 %v3923_v23  ;;  %v2425_v23 = vrot.slane %v2420_v14, %v797_v57 }
0x11ec   : > { %2658 = vmatpush1.bf16.msra.mxu1 %v3921_v36  ;;  %v2429_v36 = vrot.slane %v2420_v14, %v801_v60 }
0x11ed   : > { %2659 = vmatprep.subr.bf16.mxu1 %v3929_v38 }
0x11f0   : > { %2660 = vmatpush1.bf16.msra.mxu1 %v3927_v40 }
0x12a6   : > { %v2329_v47 = vpop.f32.mrb[48].mxu1 }
0x12a7   : > { %v2335_v43 = vadd.f32 %v2329_v47, %v2179_v62  ;;  %v3792_v49 = vpop.f32.mrb[49].mxu1  ;;  %v3926_v62 = vld [vmem:[%s4231_s4 + $0xe4] ss:$16 sps:$4 sm:$0xff]   ;;  %v3431_v47 = vld [vmem:[%s4836_s20] ss:$0 sm:$0xff] }
0x12a8   : > { %v2332_v50 = vpop.f32.mrb[50].mxu1 }
0x12a9   : > { %v2337_v51 = vadd.f32 %v4019_v52, %v2335_v43  ;;  %v3793_v55 = vpop.f32.mrb[51].mxu1  ;;  %v3930_v52 = vld [vmem:[%s4242_s0 + $0x40] sm:$0xff]  }
0x12aa   : > { %v3932_v55 = vld [vmem:[%s4242_s0] sm:$0xff]  }
0x12ab   : > { %v4613_v61 = vadd.f32 %v3429_v31, %v2337_v51  ;;  %v3914_v31 = vld [vmem:[%s4231_s4 + $0xa4] ss:$16 sps:$4 sm:$0xff]  }
0x12ac   : > { %2612 = vmatprep.subr.bf16.mxu0 %v3914_v31  ;;  %v3931_v51 = vld [vmem:[%s4242_s0 + $0xc0] sm:$0xff]   ;;  %v3959_v31 = vld [vmem:[%s4242_s0 + $0xf8] sm:$0xff]  }
0x12ad   : > { %2351 = vadd.xlane.f32.xlu1 %v4613_v61  ;;  %2613 = vmatpush1.bf16.msra.mxu0 %v3912_v6  ;;  %v3961_v6 = vld [vmem:[%s4242_s0 + $0xb8] sm:$0xff]  }
0x12ae   : > { %2614 = vmatprep.subr.bf16.mxu0 %v3920_v34  ;;  %3592 = vmatprep.subr.bf16.mxu1 %v3931_v51  ;;  %v2436_v34 = vsub.s32 3, %v4319_v56 }
0x12b1   : > { %2359 = vadd.xlane.f32.xlu1 %v2357_v32  ;;  %2615 = vmatpush1.bf16.msra.mxu0 %v3918_v35  ;;  %v3934_v32 = vld [vmem:[%s4242_s0 + $0x48] sm:$0xff]   ;;  %v2433_v35 = vrot.slane %v2420_v14, %v805_v58 }
0x12b2   : > { %2616 = vmatprep.subr.bf16.mxu0 %v3926_v62  ;;  %v2437_v62 = vrot.slane %v2420_v14, %v2436_v34 }
0x12b5   : > { %2617 = vmatpush1.bf16.msra.mxu0 %v3924_v39 }
0x12b6   : > { %3570 = vmatprep.subr.bf16.mxu0 %v3930_v52 }
0x133a   : > { %v2352_v19 = vpop.xlane.xlu1 %2351 }
0x133b   : > { %v2354_v11 = vmul.f32 0.0078125, %v2352_v19  ;;  %v3947_v19 = vld [vmem:[%s4242_s0 + $0xe0] sm:$0xff]  }
0x133d   : > { %v2356_v20 = vsub.f32 %v4613_v61, %v2354_v11  ;;  %v3948_v11 = vld [vmem:[%s4242_s0 + $0x20] sm:$0xff]  }
0x133e   : > { %v2360_v41 = vpop.xlane.xlu1 %2359 }
0x133f   : > { %v2358_v21 = vmul.f32 %v2356_v20, %v2356_v20  ;;  %v2363_v42 = vmul.f32 0.0078125, %v2360_v41 }
0x1341   : > { %2361 = vadd.xlane.f32.xlu1 %v2358_v21  ;;  %v2365_v0 = vadd.f32 1e-05, %v2363_v42  ;;  %v3950_v21 = vld [vmem:[%s4242_s0 + $0x68] sm:$0xff]  }
0x1343   : > { %3998 = vrsqrt.f32 %v2365_v0 }
0x134d   : > { %v3999_v37 = vpop.eup %3998 }
0x134e   : > { %v2369_v16 = vmul.f32 %v3999_v37, %v4611_v59  ;;  %v3933_v59 = vld [vmem:[%s4242_s0 + $0x80] sm:$0xff]  }
0x1350   : > { %v2377_v46 = vmul.f32 %v3430_v10, %v2369_v16 }
0x1352   : > { %v2385_v43 = vadd.f32 %v3431_v47, %v2377_v46 }
0x13ce   : > { %v2362_v53 = vpop.xlane.xlu1 %2361 }
0x13cf   : > { %v2364_v54 = vmul.f32 0.0078125, %v2362_v53 }
0x13d1   : > { %v2366_v13 = vadd.f32 1e-05, %v2364_v54 }
0x13d3   : > { %4000 = vrsqrt.f32 %v2366_v13 }
0x13dd   : > { %v4001_v44 = vpop.eup %4000 }
0x13de   : > { %v2370_v45 = vmul.f32 %v4001_v44, %v2356_v20  ;;  %v3949_v20 = vld [vmem:[%s4242_s0 + $0xa0] sm:$0xff]  }
0x13e0   : > { %v2378_v48 = vmul.f32 %v3430_v10, %v2370_v45 }
0x13e2   : > { %v2386_v49 = vadd.f32 %v3431_v47, %v2378_v48 }
0x13e4   : > { %v2387_v50 = vpack.c.bf16 %v2386_v49, %v2385_v43 }
0x13e6   : > { %2635 = vmatmul.mubr.bf16.vlgmr.msra.gmra.mrb[52].mxu0 %v2387_v50  ;;  %2678 = vmatmul.mubr.bf16.vlgmr.msra.gmra.mrb[52].mxu1 %v2387_v50 }
0x13e7   : > { %3571 = vmatpush3.bf16.msra.mxu0 %v3932_v55  ;;  %3593 = vmatpush3.bf16.msra.mxu1 %v3933_v59 }
0x13e8   : > { %3572 = vmatprep.subr.bf16.mxu0 %v3934_v32  ;;  %3594 = vmatprep.subr.bf16.mxu1 %v3935_v63 }
0x13eb   : > { %3573 = vmatpush3.bf16.msra.mxu0 %v3936_v1  ;;  %3595 = vmatpush3.bf16.msra.mxu1 %v3937_v2 }
0x13ec   : > { %3574 = vmatprep.subr.bf16.mxu0 %v3938_v3  ;;  %3596 = vmatprep.subr.bf16.mxu1 %v3939_v4 }
0x13ef   : > { %3575 = vmatpush3.bf16.msra.mxu0 %v3940_v5  ;;  %3597 = vmatpush3.bf16.msra.mxu1 %v3941_v8 }
0x13f0   : > { %3576 = vmatprep.subr.bf16.mxu0 %v3942_v12  ;;  %3598 = vmatprep.subr.bf16.mxu1 %v3943_v7 }
0x13f3   : > { %3577 = vmatpush3.bf16.msra.mxu0 %v3944_v9  ;;  %3599 = vmatpush3.bf16.msra.mxu1 %v3945_v15 }
0x13f4   : > { %3578 = vmatprep.subr.bf16.mxu0 %v3946_v18  ;;  %3600 = vmatprep.subr.bf16.mxu1 %v3947_v19 }
0x13f7   : > { %3579 = vmatpush3.bf16.msra.mxu0 %v3948_v11  ;;  %3601 = vmatpush3.bf16.msra.mxu1 %v3949_v20 }
0x13f8   : > { %3580 = vmatprep.subr.bf16.mxu0 %v3950_v21  ;;  %3602 = vmatprep.subr.bf16.mxu1 %v3951_v25 }
0x13fb   : > { %3581 = vmatpush3.bf16.msra.mxu0 %v3952_v26  ;;  %3603 = vmatpush3.bf16.msra.mxu1 %v3953_v22 }
0x13fc   : > { %3582 = vmatprep.subr.bf16.mxu0 %v3954_v29  ;;  %3604 = vmatprep.subr.bf16.mxu1 %v3955_v17 }
0x13ff   : > { %3583 = vmatpush3.bf16.msra.mxu0 %v3956_v24  ;;  %3605 = vmatpush3.bf16.msra.mxu1 %v3957_v30 }
0x1400   : > { %3584 = vmatprep.subr.bf16.mxu0 %v3958_v28  ;;  %3606 = vmatprep.subr.bf16.mxu1 %v3959_v31 }
0x1403   : > { %3585 = vmatpush3.bf16.msra.mxu0 %v3960_v33  ;;  %3607 = vmatpush3.bf16.msra.mxu1 %v3961_v6 }
0x14b9   : > { %v2636_v38 = vpop.f32.mrb[52].mxu0  ;;  %v2679_v39 = vpop.f32.mrb[52].mxu1 }
0x14ba   : > { %v4702_v40 = vadd.f32 %v2636_v38, %v2425_v23  ;;  %v4704_v41 = vadd.f32 %v2679_v39, %v2433_v35  ;;  %v2638_v42 = vpop.f32.mrb[53].mxu0  ;;  %v2681_v0 = vpop.f32.mrb[53].mxu1 }
0x14bb   : > { %v4706_v53 = vadd.f32 %v2638_v42, %v2429_v36  ;;  %v4708_v54 = vadd.f32 %v2681_v0, %v2437_v62  ;;  %v2640_v57 = vpop.f32.mrb[54].mxu0  ;;  %v2683_v13 = vpop.f32.mrb[54].mxu1 }
0x14bc   : > { %v2688_v58 = vmul.f32 %v4702_v40, %v4702_v40  ;;  %v2690_v56 = vmul.f32 %v4704_v41, %v4704_v41  ;;  %v4714_v60 = vadd.f32 %v2640_v57, %v2425_v23  ;;  %v4716_v37 = vadd.f32 %v2683_v13, %v2433_v35  ;;  %v2642_v16 = vpop.f32.mrb[55].mxu0  ;;  %v2685_v10 = vpop.f32.mrb[55].mxu1 }
0x14bd   : > { %v2689_v44 = vmul.f32 %v4706_v53, %v4706_v53  ;;  %v2691_v45 = vmul.f32 %v4708_v54, %v4708_v54  ;;  %v4722_v46 = vadd.f32 %v2642_v16, %v2429_v36  ;;  %v4724_v47 = vadd.f32 %v2685_v10, %v2437_v62 }
0x14be   : > { %v2696_v48 = vmul.f32 %v2688_v58, %v4702_v40  ;;  %v2698_v43 = vmul.f32 %v2690_v56, %v4704_v41  ;;  %v2692_v49 = vmul.f32 %v4714_v60, %v4714_v60  ;;  %v2694_v50 = vmul.f32 %v4716_v37, %v4716_v37 }
0x14bf   : > { %v2697_v52 = vmul.f32 %v2689_v44, %v4706_v53  ;;  %v2699_v51 = vmul.f32 %v2691_v45, %v4708_v54  ;;  %v2693_v55 = vmul.f32 %v4722_v46, %v4722_v46  ;;  %v2695_v59 = vmul.f32 %v4724_v47, %v4724_v47 }
0x14c0   : > { %v2704_v32 = vmul.f32 0.044715, %v2696_v48  ;;  %v2706_v63 = vmul.f32 0.044715, %v2698_v43  ;;  %v2700_v1 = vmul.f32 %v2692_v49, %v4714_v60  ;;  %v2702_v2 = vmul.f32 %v2694_v50, %v4716_v37 }
0x14c1   : > { %v2705_v3 = vmul.f32 0.044715, %v2697_v52  ;;  %v2707_v4 = vmul.f32 0.044715, %v2699_v51  ;;  %v2701_v5 = vmul.f32 %v2693_v55, %v4722_v46  ;;  %v2703_v8 = vmul.f32 %v2695_v59, %v4724_v47 }
0x14c2   : > { %v2712_v12 = vadd.f32 %v2704_v32, %v4702_v40  ;;  %v2714_v7 = vadd.f32 %v2706_v63, %v4704_v41  ;;  %v2708_v9 = vmul.f32 0.044715, %v2700_v1  ;;  %v2710_v15 = vmul.f32 0.044715, %v2702_v2 }
0x14c3   : > { %v2713_v18 = vadd.f32 %v2705_v3, %v4706_v53  ;;  %v2715_v19 = vadd.f32 %v2707_v4, %v4708_v54  ;;  %v2709_v11 = vmul.f32 0.044715, %v2701_v5  ;;  %v2711_v20 = vmul.f32 0.044715, %v2703_v8 }
0x14c4   : > { %v2720_v21 = vmul.f32 0.7978846, %v2712_v12  ;;  %v2722_v25 = vmul.f32 0.7978846, %v2714_v7  ;;  %v2716_v26 = vadd.f32 %v2708_v9, %v4714_v60  ;;  %v2718_v22 = vadd.f32 %v2710_v15, %v4716_v37 }
0x14c5   : > { %v2721_v29 = vmul.f32 0.7978846, %v2713_v18  ;;  %v2723_v17 = vmul.f32 0.7978846, %v2715_v19  ;;  %v2717_v24 = vadd.f32 %v2709_v11, %v4722_v46  ;;  %v2719_v30 = vadd.f32 %v2711_v20, %v4724_v47 }
0x14c6   : > { %4002 = vtanh.f32 %v2720_v21  ;;  %v2724_v28 = vmul.f32 0.7978846, %v2716_v26  ;;  %v2726_v31 = vmul.f32 0.7978846, %v2718_v22 }
0x14c7   : > { %4004 = vtanh.f32 %v2722_v25  ;;  %v2725_v33 = vmul.f32 0.7978846, %v2717_v24  ;;  %v2727_v6 = vmul.f32 0.7978846, %v2719_v30 }
0x14c8   : > { %4006 = vtanh.f32 %v2721_v29 }
0x14c9   : > { %4008 = vtanh.f32 %v2723_v17 }
0x14ca   : > { %4010 = vtanh.f32 %v2724_v28 }
0x14cb   : > { %4012 = vtanh.f32 %v2726_v31 }
0x14cc   : > { %4014 = vtanh.f32 %v2725_v33 }
0x14cd   : > { %4016 = vtanh.f32 %v2727_v6 }
0x14d0   : > { %v4003_v14 = vpop.eup %4002 }
0x14d1   : > { %v4005_v34 = vpop.eup %4004  ;;  %v2736_v23 = vadd.f32 1.0, %v4003_v14 }
0x14d2   : > { %v4007_v35 = vpop.eup %4006  ;;  %v2738_v36 = vadd.f32 1.0, %v4005_v34 }
0x14d3   : > { %v4009_v62 = vpop.eup %4008  ;;  %v2737_v38 = vadd.f32 1.0, %v4007_v35  ;;  %v2744_v57 = vmul.f32 0.5, %v2736_v23 }
0x14d4   : > { %v4011_v39 = vpop.eup %4010  ;;  %v2739_v42 = vadd.f32 1.0, %v4009_v62  ;;  %v2746_v56 = vmul.f32 0.5, %v2738_v36 }
0x14d5   : > { %v4013_v0 = vpop.eup %4012  ;;  %v2740_v13 = vadd.f32 1.0, %v4011_v39  ;;  %v2745_v48 = vmul.f32 0.5, %v2737_v38  ;;  %v2752_v52 = vmul.f32 %v2744_v57, %v4702_v40  ;;  %v3498_v38 = vld [vmem:[%s4838_s23] ss:$0 sm:$0xff] (!%p3497_p8) }
0x14d6   : > { %v4015_v58 = vpop.eup %4014  ;;  %v2742_v16 = vadd.f32 1.0, %v4013_v0  ;;  %v2747_v50 = vmul.f32 0.5, %v2739_v42  ;;  %v2754_v59 = vmul.f32 %v2746_v56, %v4704_v41  ;;  %v3499_v42 = vld [vmem:[%s4839_s27] ss:$0 sm:$0xff] (!%p3497_p8) }
0x14d7   : > { %v4017_v10 = vpop.eup %4016  ;;  %v2748_v44 = vmul.f32 0.5, %v2740_v13  ;;  %v2741_v45 = vadd.f32 1.0, %v4015_v58  ;;  %v2753_v1 = vmul.f32 %v2745_v48, %v4706_v53  ;;  %v3464_v53 = vld [vmem:[%s701_s24] ss:$0 sm:$0xff] }
0x14d8   : > { %v2750_v43 = vmul.f32 0.5, %v2742_v16  ;;  %v2743_v49 = vadd.f32 1.0, %v4017_v10  ;;  %v2755_v4 = vmul.f32 %v2747_v50, %v4708_v54 }
0x14d9   : > { %v2756_v51 = vmul.f32 %v2748_v44, %v4714_v60  ;;  %v2749_v55 = vmul.f32 0.5, %v2741_v45 }
0x14da   : > { %v2758_v32 = vmul.f32 %v2750_v43, %v4716_v37  ;;  %v2751_v63 = vmul.f32 0.5, %v2743_v49 }
0x14db   : > { %v2757_v2 = vmul.f32 %v2749_v55, %v4722_v46  ;;  %v2760_v3 = vpack.c.bf16 %v2756_v51, %v2752_v52 }
0x14dc   : > { %v2759_v5 = vmul.f32 %v2751_v63, %v4724_v47  ;;  %v2762_v8 = vpack.c.bf16 %v2758_v32, %v2754_v59 }
0x14dd   : > { %v2761_v40 = vpack.c.bf16 %v2757_v2, %v2753_v1 }
0x14de   : > { %v2763_v12 = vpack.c.bf16 %v2759_v5, %v2755_v4 }
0x14df   : > { %3059 = vmatprep.mubr.bf16.mxu0 %v2761_v40 }
0x14e0   : > { %3100 = vmatprep.mubr.bf16.mxu1 %v2763_v12  ;;  %3060 = vmatmul.mubr.bf16.vlgmr.msra.gmra.mrb[56].mxu0 %v2760_v3 }
0x14e1   : > { %3101 = vmatmul.mubr.bf16.vlgmr.msra.gmra.mrb[56].mxu1 %v2762_v8 }
0x15b3   : > { %v3586_v41 = vpop.f32.mrb[56].mxu0 }
0x15b4   : > { %v3608_v60 = vpop.f32.mrb[56].mxu1  ;;  %v3587_v37 = vpop.f32.mrb[57].mxu0 }
0x15b5   : > { %v3588_v46 = vadd.f32 %v3587_v37, %v3586_v41  ;;  %v3609_v54 = vpop.f32.mrb[57].mxu1  ;;  %v3589_v47 = vpop.f32.mrb[58].mxu0 }
0x15b6   : > { %v3610_v7 = vadd.f32 %v3609_v54, %v3608_v60  ;;  %v3611_v9 = vpop.f32.mrb[58].mxu1  ;;  %v3590_v15 = vpop.f32.mrb[59].mxu0 }
0x15b7   : > { %v3062_v18 = vadd.f32 %v3588_v46, %v3464_v53  ;;  %v3591_v19 = vadd.f32 %v3590_v15, %v3589_v47  ;;  %v3612_v11 = vpop.f32.mrb[59].mxu1 }
0x15b8   : > { %v3613_v20 = vadd.f32 %v3612_v11, %v3611_v9 }
0x15b9   : > { %v3103_v21 = vadd.f32 %v3610_v7, %v3062_v18  ;;  %v3065_v25 = vadd.f32 %v3591_v19, %v3464_v53  ;;  %3116 = sbr.rel (%p3497_p8) target bundleno = 5881 (0x16f9), region = 88 }
0x15bb   : > { %v3109_v26 = vadd.f32 %v3103_v21, %v4597_v27  ;;  %v3106_v22 = vadd.f32 %v3613_v20, %v3065_v25 }
0x15bd   : > { %3111 = vst [vmem:[%s4251_s22] sm:$0xff] %v3109_v26  ;;  %v3110_v29 = vadd.f32 %v3106_v22, %v4613_v61  ;;  %3119 = vadd.xlane.f32.xlu0 (!%p3497_p8), %v3109_v26 }
0x15bf   : > { %3112 = vst [vmem:[%s4251_s22 + $0x8] sm:$0xff] %v3110_v29 }
0x15c1   : > { %3121 = vadd.xlane.f32.xlu0 %v3110_v29 }
0x164a   : > { %v3120_v17 = vpop.xlane.xlu0 %3119 }
0x164b   : > { %v3123_v24 = vmul.f32 0.0078125, %v3120_v17 }
0x164d   : > { %v3125_v30 = vsub.f32 %v3109_v26, %v3123_v24 }
0x164e   : > { %v3122_v28 = vpop.xlane.xlu0 %3121 }
0x164f   : > { %v3124_v31 = vmul.f32 0.0078125, %v3122_v28  ;;  %v3127_v33 = vmul.f32 %v3125_v30, %v3125_v30 }
0x1651   : > { %v3126_v6 = vsub.f32 %v3110_v29, %v3124_v31  ;;  %3129 = vadd.xlane.f32.xlu1 %v3127_v33 }
0x1653   : > { %v3128_v14 = vmul.f32 %v3126_v6, %v3126_v6 }
0x1655   : > { %3131 = vadd.xlane.f32.xlu1 %v3128_v14 }
0x16de   : > { %v3130_v27 = vpop.xlane.xlu1 %3129 }
0x16df   : > { %v3133_v34 = vmul.f32 0.0078125, %v3130_v27 }
0x16e1   : > { %v3135_v61 = vadd.f32 1e-05, %v3133_v34 }
0x16e2   : > { %v3132_v23 = vpop.xlane.xlu1 %3131 }
0x16e3   : > { %4020 = vrsqrt.f32 %v3135_v61  ;;  %v3134_v35 = vmul.f32 0.0078125, %v3132_v23 }
0x16e5   : > { %v3136_v36 = vadd.f32 1e-05, %v3134_v35 }
0x16e7   : > { %4022 = vrsqrt.f32 %v3136_v36 }
0x16ed   : > { %v4021_v62 = vpop.eup %4020 }
0x16ee   : > { %v3139_v39 = vmul.f32 %v4021_v62, %v3125_v30 }
0x16f0   : > { %v3147_v0 = vmul.f32 %v3498_v38, %v3139_v39 }
0x16f1   : > { %v4023_v57 = vpop.eup %4022 }
0x16f2   : > { %v3155_v13 = vadd.f32 %v3499_v42, %v3147_v0  ;;  %v3140_v58 = vmul.f32 %v4023_v57, %v3126_v6 }
0x16f4   : > { %3157 = vst [vmem:[%s4251_s22] sm:$0xff] %v3155_v13  ;;  %v3148_v56 = vmul.f32 %v3498_v38, %v3140_v58 }
0x16f6   : > { %v3156_v16 = vadd.f32 %v3499_v42, %v3148_v56 }
0x16f8   : > { %3158 = vst [vmem:[%s4251_s22 + $0x8] sm:$0xff] %v3156_v16 }
0x16f9 PF: > { %s4840_s1 = sld [smem:[#allocation5_spill]]  ;;  %s4841_s18 = sld [smem:[#allocation3_spill]] }
0x16fa   : > { %s4842_s19 = sld [smem:[#allocation4_spill]]  ;;  %s4843_s20 = sld [smem:[#allocation6_spill]] }
0x16fb   : > { %s4844_s21 = sld [smem:[#allocation7_spill]] }
0x16ff   : > { %s25_s22 = sadd.s32 1, %s4840_s1  }
0x1700   : > { %p22_p9 = scmp.ge.s32.totalorder %s25_s22, 6  }
0x1702   :  { %24 = sbr.rel (!%p22_p9) target bundleno = 8 (0x8), region = 154 }

// kernel: mae_vit_forward.6
= control target key start
LH: loop header
LB: loop body
LE: loop exit
PB: predicated region body
PF: predicated region fallthrough
CT: control target
= control target key end

     0   :  { %s4452_s18 = smov 0   ;;  %s4454_s19 = smov 0   ;;  %s5196_s0 = inlined_call_operand.vmem [shape: f32[64,128], index: 0, kind: input, shape index: {}]   ;;  %s5197_s1 = inlined_call_operand.vmem [shape: f32[2,1,128], index: 1, kind: input, shape index: {}]   ;;  %s5198_s2 = inlined_call_operand.vmem [shape: f32[2,1,128], index: 2, kind: input, shape index: {}]   ;;  %s5199_s3 = inlined_call_operand.vmem [shape: bf16[2,128,384], index: 3, kind: input, shape index: {}]   ;;  %s5200_s4 = inlined_call_operand.vmem [shape: f32[2,1,384], index: 4, kind: input, shape index: {}]   ;;  %s5201_s5 = inlined_call_operand.vmem [shape: bf16[2,128,128], index: 5, kind: input, shape index: {}]   ;;  %s5202_s6 = inlined_call_operand.vmem [shape: f32[2,1,128], index: 6, kind: input, shape index: {}]   ;;  %s5203_s7 = inlined_call_operand.vmem [shape: f32[2,1,128], index: 7, kind: input, shape index: {}]   ;;  %s5204_s8 = inlined_call_operand.vmem [shape: f32[2,1,128], index: 8, kind: input, shape index: {}]   ;;  %s5205_s9 = inlined_call_operand.vmem [shape: bf16[2,128,512], index: 9, kind: input, shape index: {}]   ;;  %s5206_s10 = inlined_call_operand.vmem [shape: f32[2,1,512], index: 10, kind: input, shape index: {}]   ;;  %s5207_s11 = inlined_call_operand.vmem [shape: bf16[2,512,128], index: 11, kind: input, shape index: {}]   ;;  %s5208_s12 = inlined_call_operand.vmem [shape: f32[2,1,128], index: 12, kind: input, shape index: {}]   ;;  %s5209_s13 = inlined_call_operand.vmem [shape: f32[1,128], index: 13, kind: input, shape index: {}]   ;;  %s5210_s14 = inlined_call_operand.vmem [shape: f32[1,128], index: 14, kind: input, shape index: {}]   ;;  %s5211_s15 = inlined_call_operand.vmem [shape: f32[64,128], index: 15, kind: output, shape index: {}]  }
   0x1   :  { %5216 = sst [smem:[#allocation8_spill]] %s5196_s0  ;;  %s4456_s20 = smov 0  }
   0x2   :  { %5217 = sst [smem:[#allocation9_spill]] %s5197_s1  ;;  %s4458_s21 = smov 0  }
   0x3   :  { %5218 = sst [smem:[#allocation10_spill]] %s5198_s2  ;;  %s4460_s22 = smov 0  }
   0x4   :  { %5219 = sst [smem:[#allocation11_spill]] %s5199_s3 }
   0x5   :  { %5220 = sst [smem:[#allocation12_spill]] %s5200_s4 }
   0x6 LB: > { %5221 = sst [smem:[#allocation2_spill]] %s4348_s18  ;;  %s34_s13 = sadd.s32 1, %s4356_s20  ;;  %s4364_s22 = sphi %s4460_s22, %s25_s22   ;;  %s4360_s21 = sphi %s4458_s21, %s5244_s21   ;;  %s4356_s20 = sphi %s4456_s20, %s5243_s20   ;;  %s4352_s19 = sphi %s4454_s19, %s5242_s19   ;;  %s4348_s18 = sphi %s4452_s18, %s5241_s18  }
   0x7   : > { %5222 = sst [smem:[#allocation3_spill]] %s4356_s20  ;;  %s37_s14 = sadd.s32 1, %s4360_s21 }
   0x8   : > { %5223 = sst [smem:[#allocation4_spill]] %s4360_s21  ;;  %p35_p0 = scmp.ge.s32.totalorder %s34_s13, 2 }
   0x9   : > { %5224 = sst [smem:[#allocation5_spill]] %s4364_s22  ;;  %p3595_p1 = scmp.ge.s32.totalorder %s4364_s22, 1 }
   0xa   : > { %p556_p2 = scmp.lt.s32.totalorder %s4364_s22, 5  ;;  %s5246_s13 = smov (%p35_p0, %s34_s13), 0 }
   0xb   : > { %5225 = sst [smem:[#allocation6_spill]] %s5246_s13  ;;  %s5248_s14 = smov (!%p35_p0, %s37_s14), %s4360_s21 }
   0xc   : > { %p557_p3 = pnand %p3595_p1, %p556_p2  ;;  %p39_p4 = scmp.ge.s32.totalorder %s5248_s14, 2 }
   0xd   : > { %s3596_s23 = sshll.u32 (!%p557_p3), %s4352_s19, 2  ;;  %p656_p5 = scmp.lt.s32.totalorder (!%p557_p3), %s4348_s18, 1 }
   0xe   : > { %s5250_s14 = smov (%p39_p4, %s5248_s14), 0  ;;  %560 = sbr.rel (%p557_p3) target bundleno = 5590 (0x15d6), region = 80 }
   0xf   : > { %5226 = sst [smem:[#allocation7_spill]] %s5250_s14  ;;  %p651_p6 = scmp.lt.s32.totalorder (!%p557_p3), %s3596_s23, 7 }
  0x10   : > { %s5229_s0 = sld [smem:[#allocation8_spill]] (!%p557_p3)  ;;  %s5230_s3 = sld [smem:[#allocation11_spill]] (!%p557_p3) }
  0x11   : > { %s5231_s4 = sld [smem:[#allocation12_spill]] (!%p557_p3)  ;;  %s5232_s26 = sld [smem:[#allocation2_spill]] (!%p557_p3) }
  0x15   : > { %s4486_s24 = scalar_select %p656_p5, %s4348_s18, 1 }
  0x16   : > { %s5252_s23 = smov (!%p651_p6, %s3596_s23), 7 }
  0x17   : > { %s3597_s16 = sshll.u32 %s5252_s23, 3  ;;  %s4042_s17 = smul.u32 192, %s4486_s24 }
  0x18   : > { %s654_s13 = scalar_lea.vmem %s5229_s0, %s3597_s16  ;;  %s4043_s21 = smul.u32 3, %s4486_s24 }
  0x19   : > { %s4504_s18 = scalar_lea.vmem %s5230_s3, %s4042_s17  ;;  %s3737_s25 = sshll.u32 %s4486_s24, 6 }
  0x1a   : > { %s4510_s1 = scalar_lea.vmem %s5231_s4, %s4043_s21  ;;  %s4515_s29 = scalar_lea.vmem %s5201_s5, %s3737_s25 }
  0x1b   : > { %s3738_s27 = sshll.u32 %s4486_s24, 8  ;;  %s3603_s25 = sshll.u32 %s4486_s24, 2 }
  0x1c   : > { %s4533_s4 = scalar_lea.vmem %s5205_s9, %s3738_s27  ;;  %s4539_s30 = scalar_lea.vmem %s5206_s10, %s3603_s25 }
  0x1d   : > { %s4544_s0 = scalar_lea.vmem %s5207_s11, %s3738_s27  ;;  %s701_s17 = scalar_lea.vmem %s5208_s12, %s4486_s24 }
  0x1e   : > { %s4553_s21 = scalar_lea.vmem %s5211_s15, %s3597_s16  ;;  %p3608_p7 = scmp.ne.s32.totalorder %s5232_s26, 0 }
  0x1f   : > { %v713_v0 = vld [vmem:[%s654_s13] sm:$0xff] (!%p3608_p7)  ;;  %v714_v1 = vld [vmem:[%s654_s13 + $0x8] sm:$0xff] (!%p3608_p7)  ;;  %v715_v2 = vld [vmem:[%s654_s13 + $0x10] sm:$0xff] (!%p3608_p7) }
  0x20   : > { %712 = sbr.rel (%p3608_p7) target bundleno = 39 (0x27), region = 84  ;;  %717 = vst [vmem:[%s4553_s21] sm:$0xff] (!%p3608_p7), %v713_v0  ;;  %v716_v3 = vld [vmem:[%s654_s13 + $0x18] sm:$0xff] (!%p3608_p7)  ;;  %718 = vst [vmem:[%s4553_s21 + $0x8] sm:$0xff] (!%p3608_p7), %v714_v1 }
  0x21   : > { %719 = vst [vmem:[%s4553_s21 + $0x10] sm:$0xff] (!%p3608_p7), %v715_v2  ;;  %720 = vst [vmem:[%s4553_s21 + $0x18] sm:$0xff] (!%p3608_p7), %v716_v3 }
  0x27 PF: > { %v721_v4 = vld [vmem:[%s4553_s21] sm:$0xff]  ;;  %v722_v5 = vld [vmem:[%s4553_s21 + $0x8] sm:$0xff]  ;;  %v4098_v21 = vld [vmem:[%s4504_s18 + $0x30] ss:$12 sps:$4 sm:$0xff]   ;;  %v4366_v27 = vmov 0   ;;  %s5233_s16 = sld [smem:[#allocation9_spill]]  ;;  %s5237_s2 = scalar_lea.vmem %s5202_s6, %s4486_s24 }
  0x28   : > { %727 = vadd.xlane.f32.xlu0 %v721_v4  ;;  %v723_v6 = vld [vmem:[%s4553_s21 + $0x10] sm:$0xff]  ;;  %v4092_v8 = vld [vmem:[%s4504_s18] ss:$12 sps:$4 sm:$0xff]   ;;  %v4093_v9 = vld [vmem:[%s4504_s18 + $0x1c] ss:$12 sps:$4 sm:$0xff]   ;;  %1003 = vmatprep.mubr.bf16.mxu0 %v4366_v27  ;;  %s5235_s25 = sld [smem:[#allocation10_spill]]  ;;  %s5238_s26 = scalar_lea.vmem %s5203_s7, %s4486_s24 }
  0x29   : > { %v4090_v7 = vld [vmem:[%s4504_s18 + $0x4] ss:$12 sps:$4 sm:$0xff]   ;;  %v724_v18 = vld [vmem:[%s4553_s21 + $0x18] sm:$0xff]  ;;  %v4096_v20 = vld [vmem:[%s4504_s18 + $0x34] ss:$12 sps:$4 sm:$0xff]   ;;  %v4367_v2 = vmov 0.0  }
  0x2a   : > { %971 = vmatprep.subr.bf16.mxu0 %v4090_v7  ;;  %v4095_v19 = vld [vmem:[%s4504_s18 + $0x18] ss:$12 sps:$4 sm:$0xff]   ;;  %v4101_v23 = vld [vmem:[%s4504_s18 + $0x48] ss:$12 sps:$4 sm:$0xff]   ;;  %v4104_v25 = vld [vmem:[%s4504_s18 + $0x60] ss:$12 sps:$4 sm:$0xff]  }
  0x2b   : > { %972 = vmatpush1.bf16.msra.mxu0 %v4092_v8  ;;  %v4099_v22 = vld [vmem:[%s4504_s18 + $0x4c] ss:$12 sps:$4 sm:$0xff]   ;;  %v4102_v24 = vld [vmem:[%s4504_s18 + $0x64] ss:$12 sps:$4 sm:$0xff]   ;;  %v4105_v26 = vld [vmem:[%s4504_s18 + $0x7c] ss:$12 sps:$4 sm:$0xff]  }
  0x2c   : > { %729 = vadd.xlane.f32.xlu0 %v722_v5  ;;  %973 = vmatprep.subr.bf16.mxu0 %v4093_v9  ;;  %v4107_v28 = vld [vmem:[%s4504_s18 + $0x78] ss:$12 sps:$4 sm:$0xff]   ;;  %v4108_v29 = vld [vmem:[%s4504_s18 + $0x94] ss:$12 sps:$4 sm:$0xff]   ;;  %v4110_v31 = vld [vmem:[%s4504_s18 + $0x90] ss:$12 sps:$4 sm:$0xff]  }
  0x2d   : > { %v4111_v33 = vld [vmem:[%s4504_s18 + $0xac] ss:$12 sps:$4 sm:$0xff]   ;;  %v4113_v35 = vld [vmem:[%s4504_s18 + $0xa8] ss:$12 sps:$4 sm:$0xff]   ;;  %s5234_s19 = scalar_lea.vmem %s5233_s16, %s4486_s24  ;;  %v4117_v61 = vld [vmem:[%s4504_s18 + $0x50] ss:$12 sps:$4 sm:$0xff]   ;;  %s5239_s16 = scalar_lea.vmem %s5204_s8, %s4486_s24 }
  0x2e   : > { %v4114_v37 = vld [vmem:[%s4504_s18 + $0x8] ss:$12 sps:$4 sm:$0xff]   ;;  %v4115_v38 = vld [vmem:[%s4504_s18 + $0x20] ss:$12 sps:$4 sm:$0xff]   ;;  %v4116_v39 = vld [vmem:[%s4504_s18 + $0x38] ss:$12 sps:$4 sm:$0xff]   ;;  %s5236_s28 = scalar_lea.vmem %s5235_s25, %s4486_s24 }
  0x2f   : > { %974 = vmatpush1.bf16.msra.mxu0 %v4095_v19  ;;  %3862 = vmatprep.subr.bf16.mxu1 %v4114_v37  ;;  %v3609_v52 = vld [vmem:[%s5234_s19] ss:$0 sm:$0xff]  ;;  %v4118_v62 = vld [vmem:[%s4504_s18 + $0x68] ss:$12 sps:$4 sm:$0xff]   ;;  %v4120_v0 = vld [vmem:[%s4504_s18 + $0x98] ss:$12 sps:$4 sm:$0xff]  }
  0x30   : > { %731 = vadd.xlane.f32.xlu0 %v723_v6  ;;  %975 = vmatprep.subr.bf16.mxu0 %v4096_v20  ;;  %v3610_v56 = vld [vmem:[%s5236_s28] ss:$0 sm:$0xff]  ;;  %v4121_v1 = vld [vmem:[%s4504_s18 + $0xb0] ss:$12 sps:$4 sm:$0xff]   ;;  %vm4368_vm0 = vmmov 0   ;;  %vm1091_vm1 = vcmask 261120  }
  0x31   : > { %3863 = vmatpush3.bf16.msra.mxu1 %v4114_v37  ;;  %v4119_v63 = vld [vmem:[%s4504_s18 + $0x80] ss:$12 sps:$4 sm:$0xff]   ;;  %vm1139_vm2 = vcmask 130048   ;;  %s4370_s18 = smov 64   ;;  %s4371_s23 = smov 32  }
  0x32   : > { %3864 = vmatprep.subr.bf16.mxu1 %v4115_v38 }
  0x33   : > { %976 = vmatpush1.bf16.msra.mxu0 %v4098_v21  ;;  %v826_v21 = vld [vmem:[%s4510_s1] sm:$0x7]  ;;  %s4369_s1 = smov 96  }
  0x34   : > { %977 = vmatprep.subr.bf16.mxu0 %v4099_v22 }
  0x35   : > { %3865 = vmatpush3.bf16.msra.mxu1 %v4115_v38 }
  0x36   : > { %3866 = vmatprep.subr.bf16.mxu1 %v4116_v39 }
  0x37   : > { %978 = vmatpush1.bf16.msra.mxu0 %v4101_v23 }
  0x38   : > { %979 = vmatprep.subr.bf16.mxu0 %v4102_v24 }
  0x39   : > { %3867 = vmatpush3.bf16.msra.mxu1 %v4116_v39 }
  0x3a   : > { %3868 = vmatprep.subr.bf16.mxu1 %v4117_v61 }
  0x3b   : > { %980 = vmatpush1.bf16.msra.mxu0 %v4104_v25 }
  0x3c   : > { %981 = vmatprep.subr.bf16.mxu0 %v4105_v26 }
  0x3d   : > { %3869 = vmatpush3.bf16.msra.mxu1 %v4117_v61 }
  0x3e   : > { %3870 = vmatprep.subr.bf16.mxu1 %v4118_v62 }
  0x3f   : > { %982 = vmatpush1.bf16.msra.mxu0 %v4107_v28 }
  0x40   : > { %983 = vmatprep.subr.bf16.mxu0 %v4108_v29 }
  0x41   : > { %3871 = vmatpush3.bf16.msra.mxu1 %v4118_v62 }
  0x42   : > { %3872 = vmatprep.subr.bf16.mxu1 %v4119_v63 }
  0x43   : > { %984 = vmatpush1.bf16.msra.mxu0 %v4110_v31 }
  0x44   : > { %985 = vmatprep.subr.bf16.mxu0 %v4111_v33 }
  0x45   : > { %3873 = vmatpush3.bf16.msra.mxu1 %v4119_v63 }
  0x46   : > { %3874 = vmatprep.subr.bf16.mxu1 %v4120_v0 }
  0x47   : > { %986 = vmatpush1.bf16.msra.mxu0 %v4113_v35 }
  0x48   : > { %3888 = vmatprep.subr.bf16.mxu0 %v4367_v2 }
  0x49   : > { %3875 = vmatpush3.bf16.msra.mxu1 %v4120_v0 }
  0x4a   : > { %3876 = vmatprep.subr.bf16.mxu1 %v4121_v1 }
  0x4d   : > { %3877 = vmatpush3.bf16.msra.mxu1 %v4121_v1 }
  0x4e   : > { %3882 = vmatprep.subr.bf16.mxu1 %v4367_v2 }
  0xb5   : > { %v728_v10 = vpop.xlane.xlu0 %727 }
  0xb6   : > { %v736_v11 = vmul.f32 0.0078125, %v728_v10 }
  0xb8   : > { %v4566_v12 = vsub.f32 %v721_v4, %v736_v11 }
  0xb9   : > { %v730_v13 = vpop.xlane.xlu0 %729 }
  0xba   : > { %v737_v14 = vmul.f32 0.0078125, %v730_v13  ;;  %v744_v15 = vmul.f32 %v4566_v12, %v4566_v12 }
  0xbc   : > { %v4570_v16 = vsub.f32 %v722_v5, %v737_v14  ;;  %748 = vadd.xlane.f32.xlu1 %v744_v15 }
  0xbd   : > { %v732_v30 = vpop.xlane.xlu0 %731 }
  0xbe   : > { %v745_v17 = vmul.f32 %v4570_v16, %v4570_v16  ;;  %v738_v32 = vmul.f32 0.0078125, %v732_v30 }
  0xc0   : > { %750 = vadd.xlane.f32.xlu1 %v745_v17  ;;  %v4588_v34 = vsub.f32 %v723_v6, %v738_v32 }
  0xc2   : > { %v746_v36 = vmul.f32 %v4588_v34, %v4588_v34 }
  0xc4   : > { %733 = vadd.xlane.f32.xlu1 %v724_v18  ;;  %752 = vadd.xlane.f32.xlu0 %v746_v36 }
 0x149   : > { %v749_v40 = vpop.xlane.xlu1 %748 }
 0x14a   : > { %v756_v41 = vmul.f32 0.0078125, %v749_v40 }
 0x14c   : > { %v760_v42 = vadd.f32 1e-05, %v756_v41 }
 0x14d   : > { %v751_v43 = vpop.xlane.xlu1 %750 }
 0x14e   : > { %4210 = vrsqrt.f32 %v760_v42  ;;  %v757_v44 = vmul.f32 0.0078125, %v751_v43 }
 0x150   : > { %v761_v45 = vadd.f32 1e-05, %v757_v44 }
 0x151   : > { %v734_v46 = vpop.xlane.xlu1 %733  ;;  %v753_v3 = vpop.xlane.xlu0 %752 }
 0x152   : > { %4212 = vrsqrt.f32 %v761_v45  ;;  %v739_v47 = vmul.f32 0.0078125, %v734_v46  ;;  %v758_v4 = vmul.f32 0.0078125, %v753_v3 }
 0x154   : > { %v743_v48 = vsub.f32 %v724_v18, %v739_v47  ;;  %v762_v5 = vadd.f32 1e-05, %v758_v4  ;;  %v828_v18 = vlaneseq }
 0x156   : > { %v747_v49 = vmul.f32 %v743_v48, %v743_v48  ;;  %4214 = vrsqrt.f32 %v762_v5  ;;  %v4621_v19 = vshrl.u32 %v828_v18, 7 }
 0x158   : > { %v4211_v50 = vpop.eup %4210  ;;  %754 = vadd.xlane.f32.xlu1 %v747_v49  ;;  %v830_v20 = vsub.s32 0, %v4621_v19  ;;  %v834_v22 = vsub.s32 1, %v4621_v19  ;;  %v838_v40 = vsub.s32 2, %v4621_v19 }
 0x159   : > { %v768_v51 = vmul.f32 %v4211_v50, %v4566_v12 }
 0x15a   : > { %v831_v23 = vrot.slane %v826_v21, %v830_v20  ;;  %v835_v25 = vrot.slane %v826_v21, %v834_v22  ;;  %v839_v41 = vrot.slane %v826_v21, %v838_v40 }
 0x15b   : > { %v778_v55 = vmul.f32 %v3609_v52, %v768_v51 }
 0x15c   : > { %v4213_v53 = vpop.eup %4212 }
 0x15d   : > { %v769_v54 = vmul.f32 %v4213_v53, %v4570_v16  ;;  %v788_v58 = vadd.f32 %v3610_v56, %v778_v55 }
 0x15f   : > { %v779_v57 = vmul.f32 %v3609_v52, %v769_v54 }
 0x160   : > { %v4215_v9 = vpop.eup %4214 }
 0x161   : > { %v789_v59 = vadd.f32 %v3610_v56, %v779_v57  ;;  %v770_v10 = vmul.f32 %v4215_v9, %v4588_v34 }
 0x163   : > { %v792_v60 = vpack.c.bf16 %v789_v59, %v788_v58  ;;  %v780_v11 = vmul.f32 %v3609_v52, %v770_v10 }
 0x165   : > { %1004 = vmatmul.mubr.bf16.vlgmr.msra.gmra.mrb[0].mxu0 %v792_v60  ;;  %3878 = vmatprep.mubr.bf16.mxu1 %v792_v60  ;;  %v790_v15 = vadd.f32 %v3610_v56, %v780_v11 }
 0x166   : > { %1013 = vmatprep.mubr.bf16.mxu0 %v4366_v27 }
 0x1e5   : > { %v755_v6 = vpop.xlane.xlu1 %754 }
 0x1e6   : > { %v759_v7 = vmul.f32 0.0078125, %v755_v6 }
 0x1e8   : > { %v763_v8 = vadd.f32 1e-05, %v759_v7 }
 0x1ea   : > { %4216 = vrsqrt.f32 %v763_v8 }
 0x1f4   : > { %v4217_v12 = vpop.eup %4216 }
 0x1f5   : > { %v771_v13 = vmul.f32 %v4217_v12, %v743_v48 }
 0x1f7   : > { %v781_v14 = vmul.f32 %v3609_v52, %v771_v13 }
 0x1f9   : > { %v791_v16 = vadd.f32 %v3610_v56, %v781_v14 }
 0x1fb   : > { %v793_v17 = vpack.c.bf16 %v791_v16, %v790_v15 }
 0x1fd   : > { %1014 = vmatmul.mubr.bf16.gmra.mrb[4].mxu0 %v793_v17  ;;  %3879 = vmatmul.mubr.bf16.vlgmr.msra.gmra.mrb[0].mxu1 %v793_v17 }
 0x1fe   : > { %3884 = vmatprep.mubr.msk.bf16.mxu1 %vm4368_vm0, %v4367_v2  ;;  %3890 = vmatprep.mubr.msk.bf16.mxu0 %vm4368_vm0, %v4367_v2 }
 0x238   : > { %v1005_v24 = vpop.f32.mrb[0].mxu0 }
 0x239   : > { %v1007_v26 = vpop.f32.mrb[1].mxu0  ;;  %v1006_v29 = vadd.f32 %v1005_v24, %v831_v23 }
 0x23a   : > { %v1009_v28 = vpop.f32.mrb[2].mxu0  ;;  %v1008_v32 = vadd.f32 %v1007_v26, %v835_v25 }
 0x23b   : > { %v1010_v30 = vadd.f32 %v1009_v28, %v831_v23  ;;  %v1011_v31 = vpop.f32.mrb[3].mxu0 }
 0x23c   : > { %v1012_v33 = vadd.f32 %v1011_v31, %v835_v25 }
 0x23d   : > { %v4630_v34 = vpack.c.bf16 %v1010_v30, %v1006_v29 }
 0x23e   : > { %v4632_v35 = vpack.c.bf16 %v1012_v33, %v1008_v32 }
 0x23f   : > { %1210 = vrot.lane.b32.xlu1 %v4630_v34, %s4369_s1 }
 0x240   : > { %1213 = vrot.lane.b32.xlu0 %v4632_v35, %s4369_s1  ;;  %v1096_v36 = vsel %vm1091_vm1, %v4632_v35, 0 }
 0x241   : > { %3883 = vmatpush3.bf16.xpose.msra.mxu1 %v1096_v36 }
 0x242   : > { %3894 = vmatprep.subr.bf16.mxu1 %v4367_v2 }
 0x248   : > { %3885 = vmatmul.mubr.msk.bf16.vlgmr.msra.gmra.mrb[4].mxu1 %vm1091_vm1, %v4630_v34 }
 0x249   : > { %3896 = vmatprep.mubr.msk.bf16.mxu1 %vm4368_vm0, %v4367_v2 }
 0x2b1   : > { %v1211_v39 = vpop.permute.xlu1 %1210 }
 0x2b2   : > { %v1214_v37 = vpop.permute.xlu0 %1213 }
 0x2b3   : > { %v1219_v38 = vsel %vm1091_vm1, %v1214_v37, 0 }
 0x2b4   : > { %3895 = vmatpush3.bf16.xpose.msra.mxu1 %v1219_v38 }
 0x2b5   : > { %3906 = vmatprep.subr.bf16.mxu1 %v4367_v2 }
 0x2bb   : > { %3897 = vmatmul.mubr.msk.bf16.vlgmr.msra.gmra.mrb[8].mxu1 %vm1091_vm1, %v1211_v39 }
 0x2bc   : > { %3910 = vmatprep.mubr.msk.bf16.mxu1 %vm4368_vm0, %v4367_v2 }
 0x2d0   : > { %v1015_v42 = vpop.f32.mrb[4].mxu0  ;;  %v3880_v43 = vpop.f32.mrb[0].mxu1 }
 0x2d1   : > { %v1016_v44 = vadd.f32 %v1015_v42, %v831_v23  ;;  %v1067_v45 = vadd.f32 %v3880_v43, %v839_v41  ;;  %v1017_v46 = vpop.f32.mrb[5].mxu0  ;;  %v1058_v47 = vpop.f32.mrb[1].mxu1 }
 0x2d2   : > { %v1018_v48 = vadd.f32 %v1017_v46, %v835_v25  ;;  %v1059_v49 = vadd.f32 %v1058_v47, %v839_v41  ;;  %v1019_v50 = vpop.f32.mrb[6].mxu0  ;;  %v3881_v51 = vpop.f32.mrb[2].mxu1  ;;  %v4685_v46 = vld [vmem:[%s4515_s29 + $0x18] sm:$0xff]  }
 0x2d3   : > { %v1020_v52 = vadd.f32 %v1019_v50, %v831_v23  ;;  %v1070_v53 = vadd.f32 %v3881_v51, %v839_v41  ;;  %v1021_v54 = vpop.f32.mrb[7].mxu0  ;;  %v1061_v55 = vpop.f32.mrb[3].mxu1 }
 0x2d4   : > { %v1022_v56 = vadd.f32 %v1021_v54, %v835_v25  ;;  %v1062_v57 = vadd.f32 %v1061_v55, %v839_v41  ;;  %v4692_v54 = vld [vmem:[%s4515_s29] sm:$0xff]  }
 0x2d5   : > { %v4653_v58 = vpack.c.bf16 %v1020_v52, %v1016_v44  ;;  %v4655_v59 = vpack.c.bf16 %v1070_v53, %v1067_v45  ;;  %v4681_v45 = vld [vmem:[%s4515_s29 + $0x10] sm:$0xff]  }
 0x2d6   : > { %v4657_v60 = vpack.c.bf16 %v1022_v56, %v1018_v48  ;;  %v4659_v61 = vpack.c.bf16 %v1062_v57, %v1059_v49  ;;  %3907 = vmatpush3.bf16.msra.mxu1 %v4681_v45  ;;  %v4697_v56 = vld [vmem:[%s4515_s29 + $0x8] sm:$0xff]  }
 0x2d7   : > { %3908 = vmatprep.subr.bf16.mxu1 %v4367_v2 }
 0x2d8   : > { %3889 = vmatpush3.bf16.msra.mxu0 %v4659_v61 }
 0x2d9   : > { %3900 = vmatprep.subr.bf16.mxu0 %v4367_v2 }
 0x2da   : > { %3909 = vmatpush3.bf16.msra.mxu1 %v4685_v46 }
 0x2db   : > { %3922 = vmatprep.subr.bf16.mxu1 %v4367_v2 }
 0x31b   : > { %v1132_v62 = vpop.f32.mrb[4].mxu1 }
 0x31c   : > { %v3886_v63 = vpop.f32.mrb[5].mxu1  ;;  %v1140_v0 = vsel %vm1139_vm2, %v1132_v62, -inf }
 0x31d   : > { %1141 = vmax.xlane.f32.xlu1 %v1140_v0  ;;  %v1135_v1 = vpop.f32.mrb[6].mxu1 }
 0x31e   : > { %v3887_v3 = vpop.f32.mrb[7].mxu1  ;;  %v1143_v4 = vsel %vm1139_vm2, %v1135_v1, -inf }
 0x31f   : > { %1144 = vmax.xlane.f32.xlu0 %v1143_v4 }
 0x38e   : > { %v1255_v5 = vpop.f32.mrb[8].mxu1 }
 0x38f   : > { %v3898_v6 = vpop.f32.mrb[9].mxu1  ;;  %v1262_v7 = vsel %vm1139_vm2, %v1255_v5, -inf }
 0x390   : > { %1263 = vmax.xlane.f32.xlu0 %v1262_v7  ;;  %v1258_v8 = vpop.f32.mrb[10].mxu1 }
 0x391   : > { %v3899_v9 = vpop.f32.mrb[11].mxu1  ;;  %v1265_v10 = vsel %vm1139_vm2, %v1258_v8, -inf }
 0x392   : > { %1266 = vmax.xlane.f32.xlu1 %v1265_v10 }
 0x3aa   : > { %v1142_v11 = vpop.xlane.xlu1 %1141 }
 0x3ab   : > { %v1146_v12 = vsub.f32 %v1132_v62, %v1142_v11 }
 0x3ac   : > { %v1145_v13 = vpop.xlane.xlu0 %1144 }
 0x3ad   : > { %v1148_v14 = vmul.f32 1.442695, %v1146_v12  ;;  %v1147_v15 = vsub.f32 %v1135_v1, %v1145_v13 }
 0x3af   : > { %4218 = vpow2.f32 %v1148_v14  ;;  %v1150_v16 = vmul.f32 1.442695, %v1147_v15 }
 0x3b1   : > { %4220 = vpow2.f32 %v1150_v16 }
 0x3b9   : > { %v4219_v17 = vpop.eup %4218 }
 0x3ba   : > { %v1152_v18 = vsel %vm1139_vm2, %v4219_v17, 0.0 }
 0x3bb   : > { %v4221_v21 = vpop.eup %4220  ;;  %1153 = vadd.xlane.f32.xlu0 %v1152_v18 }
 0x3bc   : > { %v1155_v23 = vsel %vm1139_vm2, %v4221_v21, 0.0 }
 0x3bd   : > { %1156 = vadd.xlane.f32.xlu1 %v1155_v23 }
 0x41d   : > { %v1264_v24 = vpop.xlane.xlu0 %1263 }
 0x41e   : > { %v1268_v25 = vsub.f32 %v1255_v5, %v1264_v24 }
 0x41f   : > { %v1267_v26 = vpop.xlane.xlu1 %1266 }
 0x420   : > { %v1270_v28 = vmul.f32 1.442695, %v1268_v25  ;;  %v1269_v29 = vsub.f32 %v1258_v8, %v1267_v26 }
 0x422   : > { %4222 = vpow2.f32 %v1270_v28  ;;  %v1272_v30 = vmul.f32 1.442695, %v1269_v29 }
 0x424   : > { %4224 = vpow2.f32 %v1272_v30 }
 0x42c   : > { %v4223_v31 = vpop.eup %4222 }
 0x42d   : > { %v1274_v32 = vsel %vm1139_vm2, %v4223_v31, 0.0 }
 0x42e   : > { %v4225_v33 = vpop.eup %4224  ;;  %1275 = vadd.xlane.f32.xlu0 %v1274_v32 }
 0x42f   : > { %v1277_v36 = vsel %vm1139_vm2, %v4225_v33, 0.0 }
 0x430   : > { %1278 = vadd.xlane.f32.xlu1 %v1277_v36 }
 0x441   : > { %1448 = vrot.lane.b32.xlu1 %v4632_v35, %s4370_s18 }
 0x444   : > { %1286 = vrot.lane.b32.xlu0 %v4659_v61, %s4369_s1 }
 0x445   : > { %1446 = vrot.lane.b32.xlu1 %v4630_v34, %s4370_s18 }
 0x448   : > { %v1154_v37 = vpop.xlane.xlu0 %1153 }
 0x449   : > { %4226 = vrcp.f32 %v1154_v37 }
 0x44a   : > { %v1157_v38 = vpop.xlane.xlu1 %1156 }
 0x44b   : > { %4228 = vrcp.f32 %v1157_v38 }
 0x453   : > { %v4227_v39 = vpop.eup %4226 }
 0x454   : > { %v1160_v42 = vmul.f32 %v4227_v39, %v4219_v17 }
 0x455   : > { %v4229_v41 = vpop.eup %4228 }
 0x456   : > { %v1161_v43 = vmul.f32 %v4229_v41, %v4221_v21 }
 0x458   : > { %v1162_v44 = vpack.c.bf16 %v1161_v43, %v1160_v42 }
 0x45a   : > { %3891 = vmatmul.mubr.msk.bf16.vlgmr.msra.gmra.mrb[8].mxu0 %vm1139_vm2, %v1162_v44  ;;  %v4731_v44 = vld [vmem:[%s4515_s29 + $0x20] sm:$0xff]  }
 0x45b   : > { %3902 = vmatprep.mubr.msk.bf16.mxu0 %vm4368_vm0, %v4367_v2 }
 0x4bb   : > { %v1276_v47 = vpop.xlane.xlu0 %1275 }
 0x4bc   : > { %4230 = vrcp.f32 %v1276_v47 }
 0x4bd   : > { %v1279_v48 = vpop.xlane.xlu1 %1278 }
 0x4be   : > { %4232 = vrcp.f32 %v1279_v48 }
 0x4bf   : > { %v1287_v49 = vpop.permute.xlu0 %1286 }
 0x4c0   : > { %3901 = vmatpush3.bf16.msra.mxu0 %v1287_v49 }
 0x4c1   : > { %3914 = vmatprep.subr.bf16.mxu0 %v4367_v2  ;;  %v1449_v5 = vpop.permute.xlu1 %1448 }
 0x4c2   : > { %v1454_v9 = vsel %vm1091_vm1, %v1449_v5, 0 }
 0x4c5   : > { %v1447_v10 = vpop.permute.xlu1 %1446 }
 0x4c6   : > { %v4231_v50 = vpop.eup %4230 }
 0x4c7   : > { %v1282_v52 = vmul.f32 %v4231_v50, %v4223_v31 }
 0x4c8   : > { %v4233_v51 = vpop.eup %4232 }
 0x4c9   : > { %v1283_v53 = vmul.f32 %v4233_v51, %v4225_v33 }
 0x4cb   : > { %v1284_v55 = vpack.c.bf16 %v1283_v53, %v1282_v52 }
 0x4cd   : > { %3903 = vmatmul.mubr.msk.bf16.vlgmr.msra.gmra.mrb[12].mxu0 %vm1139_vm2, %v1284_v55 }
 0x4ce   : > { %3915 = vmatpush3.bf16.msra.mxu0 %v4692_v54  ;;  %3918 = vmatprep.mubr.msk.bf16.mxu0 %vm4368_vm0, %v4367_v2 }
 0x4cf   : > { %3916 = vmatprep.subr.bf16.mxu0 %v4367_v2 }
 0x4d2   : > { %3917 = vmatpush3.bf16.msra.mxu0 %v4697_v56 }
 0x4d3   : > { %3928 = vmatprep.subr.bf16.mxu0 %v4367_v2 }
 0x52d   : > { %v1201_v57 = vpop.f32.mrb[8].mxu0 }
 0x52e   : > { %v3892_v62 = vpop.f32.mrb[9].mxu0 }
 0x52f   : > { %v1204_v63 = vpop.f32.mrb[10].mxu0  ;;  %v4744_v62 = vld [vmem:[%s4515_s29 + $0x28] sm:$0xff]  }
 0x530   : > { %v1208_v0 = vpack.c.bf16 %v1204_v63, %v1201_v57  ;;  %v3893_v1 = vpop.f32.mrb[11].mxu0 }
 0x532   : > { %3919 = vmatmul.mubr.msk.bf16.vlgmr.msra.gmra.mrb[16].mxu0 %vm1091_vm1, %v1208_v0 }
 0x533   : > { %3930 = vmatprep.mubr.msk.bf16.mxu0 %vm4368_vm0, %v4367_v2 }
 0x5a0   : > { %v1326_v3 = vpop.f32.mrb[12].mxu0 }
 0x5a1   : > { %v3904_v4 = vpop.f32.mrb[13].mxu0 }
 0x5a2   : > { %v1329_v6 = vpop.f32.mrb[14].mxu0 }
 0x5a3   : > { %v1333_v7 = vpack.c.bf16 %v1329_v6, %v1326_v3  ;;  %v3905_v8 = vpop.f32.mrb[15].mxu0 }
 0x5a5   : > { %3911 = vmatmul.mubr.msk.bf16.vlgmr.msra.gmra.mrb[12].mxu1 %vm1091_vm1, %v1333_v7 }
 0x5a6   : > { %3923 = vmatpush3.bf16.xpose.msra.mxu1 %v1454_v9  ;;  %3924 = vmatprep.mubr.msk.bf16.mxu1 %vm4368_vm0, %v4367_v2 }
 0x5a7   : > { %3934 = vmatprep.subr.bf16.mxu1 %v4367_v2 }
 0x5ad   : > { %3925 = vmatmul.mubr.msk.bf16.vlgmr.msra.gmra.mrb[16].mxu1 %vm1091_vm1, %v1447_v10 }
 0x5ae   : > { %3938 = vmatprep.mubr.msk.bf16.mxu1 %vm4368_vm0, %v4367_v2  ;;  %3935 = vmatpush3.bf16.msra.mxu1 %v4731_v44 }
 0x5af   : > { %3936 = vmatprep.subr.bf16.mxu1 %v4367_v2 }
 0x5b2   : > { %3937 = vmatpush3.bf16.msra.mxu1 %v4744_v62 }
 0x5b3   : > { %3948 = vmatprep.subr.bf16.mxu1 %v4367_v2 }
 0x605   : > { %v1439_v11 = vpop.f32.mrb[16].mxu0 }
 0x606   : > { %v3920_v12 = vpop.f32.mrb[17].mxu0 }
 0x607   : > { %v1442_v13 = vpop.f32.mrb[18].mxu0 }
 0x608   : > { %v3921_v14 = vpop.f32.mrb[19].mxu0 }
 0x678   : > { %v1383_v15 = vpop.f32.mrb[12].mxu1 }
 0x679   : > { %v4715_v16 = vadd.f32 %v1439_v11, %v1383_v15  ;;  %v3912_v17 = vpop.f32.mrb[13].mxu1 }
 0x67a   : > { %v1386_v18 = vpop.f32.mrb[14].mxu1 }
 0x67b   : > { %v4717_v21 = vadd.f32 %v1442_v13, %v1386_v18  ;;  %v3913_v23 = vpop.f32.mrb[15].mxu1 }
 0x680   : > { %v1490_v24 = vpop.f32.mrb[16].mxu1 }
 0x681   : > { %v3926_v25 = vpop.f32.mrb[17].mxu1  ;;  %v1497_v26 = vsel %vm1139_vm2, %v1490_v24, -inf }
 0x682   : > { %1498 = vmax.xlane.f32.xlu1 %v1497_v26  ;;  %v1493_v28 = vpop.f32.mrb[18].mxu1  ;;  %v4762_v26 = vld [vmem:[%s4515_s29 + $0x30] sm:$0xff]  }
 0x683   : > { %v3927_v29 = vpop.f32.mrb[19].mxu1  ;;  %v1500_v30 = vsel %vm1139_vm2, %v1493_v28, -inf }
 0x684   : > { %1501 = vmax.xlane.f32.xlu0 %v1500_v30 }
 0x693   : > { %1520 = vrot.lane.b32.xlu1 %v4659_v61, %s4370_s18 }
 0x697   : > { %1626 = vrot.lane.b32.xlu1 %v4630_v34, %s4371_s23 }
 0x70f   : > { %v1499_v31 = vpop.xlane.xlu1 %1498 }
 0x710   : > { %v1503_v32 = vsub.f32 %v1490_v24, %v1499_v31 }
 0x711   : > { %v1502_v33 = vpop.xlane.xlu0 %1501 }
 0x712   : > { %v1505_v36 = vmul.f32 1.442695, %v1503_v32  ;;  %v1504_v37 = vsub.f32 %v1493_v28, %v1502_v33 }
 0x713   : > { %v1521_v38 = vpop.permute.xlu1 %1520 }
 0x714   : > { %4234 = vpow2.f32 %v1505_v36  ;;  %v1507_v39 = vmul.f32 1.442695, %v1504_v37  ;;  %3929 = vmatpush3.bf16.msra.mxu0 %v1521_v38 }
 0x715   : > { %3942 = vmatprep.subr.bf16.mxu0 %v4367_v2 }
 0x716   : > { %4236 = vpow2.f32 %v1507_v39 }
 0x71e   : > { %v4235_v41 = vpop.eup %4234 }
 0x71f   : > { %v1509_v42 = vsel %vm1139_vm2, %v4235_v41, 0.0 }
 0x720   : > { %v4237_v43 = vpop.eup %4236  ;;  %1510 = vadd.xlane.f32.xlu0 %v1509_v42 }
 0x721   : > { %v1512_v34 = vsel %vm1139_vm2, %v4237_v43, 0.0 }
 0x724   : > { %1513 = vadd.xlane.f32.xlu0 %v1512_v34 }
 0x73a   : > { %1628 = vrot.lane.b32.xlu0 %v4632_v35, %s4371_s23  ;;  %v1627_v35 = vpop.permute.xlu1 %1626 }
 0x7ad   : > { %v1511_v47 = vpop.xlane.xlu0 %1510 }
 0x7ae   : > { %4238 = vrcp.f32 %v1511_v47 }
 0x7b1   : > { %v1514_v48 = vpop.xlane.xlu0 %1513 }
 0x7b2   : > { %4240 = vrcp.f32 %v1514_v48  ;;  %v4793_v48 = vld [vmem:[%s4515_s29 + $0x38] sm:$0xff]  }
 0x7b5   : > { %v1629_v53 = vpop.permute.xlu0 %1628 }
 0x7b6   : > { %v1634_v57 = vsel %vm1091_vm1, %v1629_v53, 0 }
 0x7b8   : > { %v4239_v49 = vpop.eup %4238 }
 0x7b9   : > { %v1517_v51 = vmul.f32 %v4239_v49, %v4235_v41 }
 0x7bc   : > { %v4241_v50 = vpop.eup %4240 }
 0x7bd   : > { %v1518_v52 = vmul.f32 %v4241_v50, %v4237_v43 }
 0x7bf   : > { %v1519_v55 = vpack.c.bf16 %v1518_v52, %v1517_v51 }
 0x7c1   : > { %3931 = vmatmul.mubr.msk.bf16.vlgmr.msra.gmra.mrb[20].mxu0 %vm1139_vm2, %v1519_v55 }
 0x7c2   : > { %3943 = vmatpush3.bf16.xpose.msra.mxu0 %v1634_v57  ;;  %3944 = vmatprep.mubr.msk.bf16.mxu0 %vm4368_vm0, %v4367_v2 }
 0x7c3   : > { %3954 = vmatprep.subr.bf16.mxu0 %v4367_v2 }
 0x7c9   : > { %3945 = vmatmul.mubr.msk.bf16.vlgmr.msra.gmra.mrb[24].mxu0 %vm1091_vm1, %v1627_v35 }
 0x7ca   : > { %3958 = vmatprep.mubr.msk.bf16.mxu0 %vm4368_vm0, %v4367_v2  ;;  %3955 = vmatpush3.bf16.msra.mxu0 %v4762_v26 }
 0x7cb   : > { %3956 = vmatprep.subr.bf16.mxu0 %v4367_v2 }
 0x7ce   : > { %3957 = vmatpush3.bf16.msra.mxu0 %v4793_v48 }
 0x7cf   : > { %3968 = vmatprep.subr.bf16.mxu0 %v4367_v2 }
 0x894   : > { %v1560_v63 = vpop.f32.mrb[20].mxu0 }
 0x895   : > { %v3932_v0 = vpop.f32.mrb[21].mxu0 }
 0x896   : > { %v1563_v1 = vpop.f32.mrb[22].mxu0 }
 0x897   : > { %v1567_v3 = vpack.c.bf16 %v1563_v1, %v1560_v63  ;;  %v3933_v4 = vpop.f32.mrb[23].mxu0 }
 0x899   : > { %3939 = vmatmul.mubr.msk.bf16.vlgmr.msra.gmra.mrb[20].mxu1 %vm1091_vm1, %v1567_v3 }
 0x89a   : > { %3950 = vmatprep.mubr.msk.bf16.mxu1 %vm4368_vm0, %v4367_v2 }
 0x89c   : > { %v1670_v5 = vpop.f32.mrb[24].mxu0 }
 0x89d   : > { %v3946_v6 = vpop.f32.mrb[25].mxu0  ;;  %v1677_v7 = vsel %vm1139_vm2, %v1670_v5, -inf }
 0x89e   : > { %1678 = vmax.xlane.f32.xlu1 %v1677_v7  ;;  %v1673_v8 = vpop.f32.mrb[26].mxu0 }
 0x89f   : > { %v3947_v9 = vpop.f32.mrb[27].mxu0  ;;  %v1680_v10 = vsel %vm1139_vm2, %v1673_v8, -inf }
 0x8a0   : > { %1681 = vmax.xlane.f32.xlu0 %v1680_v10 }
 0x92b   : > { %v1679_v11 = vpop.xlane.xlu1 %1678 }
 0x92c   : > { %v1683_v12 = vsub.f32 %v1670_v5, %v1679_v11 }
 0x92d   : > { %v1682_v13 = vpop.xlane.xlu0 %1681 }
 0x92e   : > { %v1685_v14 = vmul.f32 1.442695, %v1683_v12  ;;  %v1684_v15 = vsub.f32 %v1673_v8, %v1682_v13 }
 0x930   : > { %4242 = vpow2.f32 %v1685_v14  ;;  %v1687_v17 = vmul.f32 1.442695, %v1684_v15 }
 0x932   : > { %4244 = vpow2.f32 %v1687_v17 }
 0x93a   : > { %v4243_v18 = vpop.eup %4242 }
 0x93b   : > { %v1689_v23 = vsel %vm1139_vm2, %v4243_v18, 0.0 }
 0x93c   : > { %v4245_v24 = vpop.eup %4244  ;;  %1690 = vadd.xlane.f32.xlu0 %v1689_v23 }
 0x93d   : > { %v1692_v25 = vsel %vm1139_vm2, %v4245_v24, 0.0 }
 0x93e   : > { %1693 = vadd.xlane.f32.xlu1 %v1692_v25 }
 0x94f   : > { %1928 = vrot.lane.b32.xlu1 %v4657_v60, %s4369_s1 }
 0x952   : > { %1700 = vrot.lane.b32.xlu0 %v4659_v61, %s4371_s23 }
 0x953   : > { %1925 = vrot.lane.b32.xlu1 %v4653_v58, %s4369_s1 }
 0x96c   : > { %v1617_v28 = vpop.f32.mrb[20].mxu1 }
 0x96d   : > { %v4765_v29 = vadd.f32 %v1617_v28, %v4715_v16  ;;  %v3940_v30 = vpop.f32.mrb[21].mxu1 }
 0x96e   : > { %v1620_v31 = vpop.f32.mrb[22].mxu1 }
 0x96f   : > { %v4770_v32 = vadd.f32 %v1620_v31, %v4717_v21  ;;  %v3941_v33 = vpop.f32.mrb[23].mxu1  ;;  %v1812_v21 = vsel %vm1091_vm1, %v4657_v60, 0 }
 0x9c9   : > { %v1691_v61 = vpop.xlane.xlu0 %1690 }
 0x9ca   : > { %4246 = vrcp.f32 %v1691_v61 }
 0x9cb   : > { %v1694_v36 = vpop.xlane.xlu1 %1693 }
 0x9cc   : > { %4248 = vrcp.f32 %v1694_v36 }
 0x9cd   : > { %v1701_v37 = vpop.permute.xlu0 %1700 }
 0x9ce   : > { %3949 = vmatpush3.bf16.msra.mxu1 %v1701_v37 }
 0x9cf   : > { %3962 = vmatprep.subr.bf16.mxu1 %v4367_v2  ;;  %v1929_v43 = vpop.permute.xlu1 %1928 }
 0x9d0   : > { %v1934_v34 = vsel %vm1091_vm1, %v1929_v43, 0 }
 0x9d3   : > { %v1926_v47 = vpop.permute.xlu1 %1925 }
 0x9d4   : > { %v4247_v16 = vpop.eup %4246 }
 0x9d5   : > { %v1697_v39 = vmul.f32 %v4247_v16, %v4243_v18 }
 0x9d6   : > { %v4249_v38 = vpop.eup %4248 }
 0x9d7   : > { %v1698_v41 = vmul.f32 %v4249_v38, %v4245_v24 }
 0x9d9   : > { %v1699_v42 = vpack.c.bf16 %v1698_v41, %v1697_v39 }
 0x9db   : > { %3951 = vmatmul.mubr.msk.bf16.vlgmr.msra.gmra.mrb[24].mxu1 %vm1139_vm2, %v1699_v42 }
 0x9dc   : > { %3963 = vmatpush3.bf16.xpose.msra.mxu1 %v1812_v21  ;;  %3964 = vmatprep.mubr.msk.bf16.mxu1 %vm4368_vm0, %v4367_v2 }
 0x9dd   : > { %3974 = vmatprep.subr.bf16.mxu1 %v4367_v2 }
 0x9e3   : > { %3965 = vmatmul.mubr.msk.bf16.vlgmr.msra.gmra.mrb[28].mxu1 %vm1091_vm1, %v4653_v58 }
 0x9e4   : > { %3975 = vmatpush3.bf16.xpose.msra.mxu1 %v1934_v34  ;;  %3976 = vmatprep.mubr.msk.bf16.mxu1 %vm4368_vm0, %v4367_v2 }
 0x9e5   : > { %3986 = vmatprep.subr.bf16.mxu1 %v4367_v2 }
 0x9eb   : > { %3977 = vmatmul.mubr.msk.bf16.vlgmr.msra.gmra.mrb[32].mxu1 %vm1091_vm1, %v1926_v47 }
 0x9ec   : > { %3987 = vmatpush3.bf16.msra.mxu1 %v4681_v45  ;;  %3990 = vmatprep.mubr.msk.bf16.mxu1 %vm4368_vm0, %v4367_v2 }
 0x9ed   : > { %3988 = vmatprep.subr.bf16.mxu1 %v4367_v2 }
 0x9f0   : > { %3989 = vmatpush3.bf16.msra.mxu1 %v4685_v46 }
 0x9f1   : > { %4002 = vmatprep.subr.bf16.mxu1 %v4367_v2 }
 0xaae   : > { %v1740_v49 = vpop.f32.mrb[24].mxu1 }
 0xaaf   : > { %v3952_v50 = vpop.f32.mrb[25].mxu1 }
 0xab0   : > { %v1743_v51 = vpop.f32.mrb[26].mxu1 }
 0xab1   : > { %v1747_v52 = vpack.c.bf16 %v1743_v51, %v1740_v49  ;;  %v3953_v45 = vpop.f32.mrb[27].mxu1 }
 0xab3   : > { %3959 = vmatmul.mubr.msk.bf16.vlgmr.msra.gmra.mrb[28].mxu0 %vm1091_vm1, %v1747_v52 }
 0xab4   : > { %3969 = vmatpush3.bf16.msra.mxu0 %v4655_v59  ;;  %3970 = vmatprep.mubr.msk.bf16.mxu0 %vm4368_vm0, %v4367_v2 }
 0xab5   : > { %3980 = vmatprep.subr.bf16.mxu0 %v4367_v2 }
 0xab6   : > { %v1848_v46 = vpop.f32.mrb[28].mxu1 }
 0xab7   : > { %v3966_v53 = vpop.f32.mrb[29].mxu1  ;;  %v1855_v55 = vsel %vm1139_vm2, %v1848_v46, -inf }
 0xab8   : > { %1856 = vmax.xlane.f32.xlu1 %v1855_v55  ;;  %v1851_v57 = vpop.f32.mrb[30].mxu1 }
 0xab9   : > { %v3967_v35 = vpop.f32.mrb[31].mxu1  ;;  %v1858_v63 = vsel %vm1139_vm2, %v1851_v57, -inf }
 0xaba   : > { %1859 = vmax.xlane.f32.xlu0 %v1858_v63 }
 0xabe   : > { %v1970_v0 = vpop.f32.mrb[32].mxu1 }
 0xabf   : > { %v3978_v1 = vpop.f32.mrb[33].mxu1  ;;  %v1977_v3 = vsel %vm1139_vm2, %v1970_v0, -inf }
 0xac0   : > { %1978 = vmax.xlane.f32.xlu0 %v1977_v3  ;;  %v1973_v4 = vpop.f32.mrb[34].mxu1 }
 0xac1   : > { %v3979_v5 = vpop.f32.mrb[35].mxu1  ;;  %v1980_v6 = vsel %vm1139_vm2, %v1973_v4, -inf }
 0xac4   : > { %1981 = vmax.xlane.f32.xlu0 %v1980_v6 }
 0xb45   : > { %v1857_v7 = vpop.xlane.xlu1 %1856 }
 0xb46   : > { %v1861_v8 = vsub.f32 %v1848_v46, %v1857_v7 }
 0xb47   : > { %v1860_v9 = vpop.xlane.xlu0 %1859 }
 0xb48   : > { %v1863_v10 = vmul.f32 1.442695, %v1861_v8  ;;  %v1862_v11 = vsub.f32 %v1851_v57, %v1860_v9 }
 0xb4a   : > { %4250 = vpow2.f32 %v1863_v10  ;;  %v1865_v12 = vmul.f32 1.442695, %v1862_v11 }
 0xb4c   : > { %4252 = vpow2.f32 %v1865_v12 }
 0xb4d   : > { %v1979_v13 = vpop.xlane.xlu0 %1978 }
 0xb4e   : > { %v1983_v14 = vsub.f32 %v1970_v0, %v1979_v13 }
 0xb50   : > { %v1985_v15 = vmul.f32 1.442695, %v1983_v14 }
 0xb51   : > { %v1982_v17 = vpop.xlane.xlu0 %1981 }
 0xb52   : > { %4254 = vpow2.f32 %v1985_v15  ;;  %v1984_v18 = vsub.f32 %v1973_v4, %v1982_v17 }
 0xb54   : > { %v4251_v23 = vpop.eup %4250  ;;  %v1987_v24 = vmul.f32 1.442695, %v1984_v18 }
 0xb55   : > { %v1867_v25 = vsel %vm1139_vm2, %v4251_v23, 0.0 }
 0xb56   : > { %v4253_v28 = vpop.eup %4252  ;;  %4256 = vpow2.f32 %v1987_v24  ;;  %1868 = vadd.xlane.f32.xlu1 %v1867_v25 }
 0xb57   : > { %v1870_v30 = vsel %vm1139_vm2, %v4253_v28, 0.0 }
 0xb58   : > { %1871 = vadd.xlane.f32.xlu0 %v1870_v30 }
 0xb5c   : > { %v4255_v31 = vpop.eup %4254 }
 0xb5d   : > { %v1989_v33 = vsel %vm1139_vm2, %v4255_v31, 0.0 }
 0xb5e   : > { %1990 = vadd.xlane.f32.xlu1 %v1989_v33 }
 0xb60   : > { %v4257_v61 = vpop.eup %4256 }
 0xb61   : > { %v1992_v36 = vsel %vm1139_vm2, %v4257_v61, 0.0 }
 0xb62   : > { %1993 = vadd.xlane.f32.xlu0 %v1992_v36 }
 0xb6f   : > { %2001 = vrot.lane.b32.xlu1 %v4655_v59, %s4369_s1 }
 0xb73   : > { %2137 = vrot.lane.b32.xlu1 %v4653_v58, %s4370_s18 }
 0xb78   : > { %2139 = vrot.lane.b32.xlu0 %v4657_v60, %s4370_s18 }
 0xb86   : > { %v1797_v37 = vpop.f32.mrb[28].mxu0 }
 0xb87   : > { %v4817_v16 = vadd.f32 %v1797_v37, %v4765_v29  ;;  %v3960_v38 = vpop.f32.mrb[29].mxu0 }
 0xb88   : > { %v1800_v39 = vpop.f32.mrb[30].mxu0 }
 0xb89   : > { %v4820_v41 = vadd.f32 %v1800_v39, %v4770_v32  ;;  %v3961_v42 = vpop.f32.mrb[31].mxu0 }
 0xbe3   : > { %v1869_v21 = vpop.xlane.xlu1 %1868 }
 0xbe4   : > { %4258 = vrcp.f32 %v1869_v21 }
 0xbe5   : > { %v1872_v43 = vpop.xlane.xlu0 %1871 }
 0xbe6   : > { %4260 = vrcp.f32 %v1872_v43 }
 0xbeb   : > { %v1991_v34 = vpop.xlane.xlu1 %1990 }
 0xbec   : > { %4262 = vrcp.f32 %v1991_v34 }
 0xbee   : > { %v4259_v47 = vpop.eup %4258 }
 0xbef   : > { %v1994_v49 = vpop.xlane.xlu0 %1993  ;;  %v1875_v51 = vmul.f32 %v4259_v47, %v4251_v23  ;;  %v2002_v45 = vpop.permute.xlu1 %2001 }
 0xbf0   : > { %v4261_v50 = vpop.eup %4260  ;;  %4264 = vrcp.f32 %v1994_v49 }
 0xbf1   : > { %v1876_v52 = vmul.f32 %v4261_v50, %v4253_v28 }
 0xbf3   : > { %v1877_v29 = vpack.c.bf16 %v1876_v52, %v1875_v51  ;;  %v2140_v5 = vpop.permute.xlu0 %2139  ;;  %v2138_v9 = vpop.permute.xlu1 %2137 }
 0xbf5   : > { %3971 = vmatmul.mubr.msk.bf16.vlgmr.msra.gmra.mrb[32].mxu0 %vm1139_vm2, %v1877_v29 }
 0xbf6   : > { %3981 = vmatpush3.bf16.msra.mxu0 %v2002_v45  ;;  %3982 = vmatprep.mubr.msk.bf16.mxu0 %vm4368_vm0, %v4367_v2  ;;  %v4263_v32 = vpop.eup %4262 }
 0xbf7   : > { %3994 = vmatprep.subr.bf16.mxu0 %v4367_v2  ;;  %v1997_v53 = vmul.f32 %v4263_v32, %v4255_v31 }
 0xbfa   : > { %v4265_v46 = vpop.eup %4264 }
 0xbfb   : > { %v1998_v55 = vmul.f32 %v4265_v46, %v4257_v61 }
 0xbfd   : > { %v1999_v57 = vpack.c.bf16 %v1998_v55, %v1997_v53 }
 0xbff   : > { %3983 = vmatmul.mubr.msk.bf16.vlgmr.msra.gmra.mrb[36].mxu0 %vm1139_vm2, %v1999_v57 }
 0xc00   : > { %3995 = vmatpush3.bf16.msra.mxu0 %v4692_v54  ;;  %3998 = vmatprep.mubr.msk.bf16.mxu0 %vm4368_vm0, %v4367_v2 }
 0xc01   : > { %3996 = vmatprep.subr.bf16.mxu0 %v4367_v2 }
 0xc04   : > { %3997 = vmatpush3.bf16.msra.mxu0 %v4697_v56  ;;  %v2145_v56 = vsel %vm1091_vm1, %v2140_v5, 0 }
 0xc05   : > { %4008 = vmatprep.subr.bf16.mxu0 %v4367_v2 }
 0xcc8   : > { %v1916_v35 = vpop.f32.mrb[32].mxu0 }
 0xcc9   : > { %v3972_v63 = vpop.f32.mrb[33].mxu0 }
 0xcca   : > { %v1919_v0 = vpop.f32.mrb[34].mxu0 }
 0xccb   : > { %v1923_v1 = vpack.c.bf16 %v1919_v0, %v1916_v35  ;;  %v3973_v3 = vpop.f32.mrb[35].mxu0 }
 0xccd   : > { %3999 = vmatmul.mubr.msk.bf16.vlgmr.msra.gmra.mrb[40].mxu0 %vm1091_vm1, %v1923_v1 }
 0xcce   : > { %4010 = vmatprep.mubr.msk.bf16.mxu0 %vm4368_vm0, %v4367_v2 }
 0xcd2   : > { %v2041_v54 = vpop.f32.mrb[36].mxu0 }
 0xcd3   : > { %v3984_v4 = vpop.f32.mrb[37].mxu0 }
 0xcd4   : > { %v2044_v6 = vpop.f32.mrb[38].mxu0 }
 0xcd5   : > { %v2048_v7 = vpack.c.bf16 %v2044_v6, %v2041_v54  ;;  %v3985_v8 = vpop.f32.mrb[39].mxu0 }
 0xcd7   : > { %3991 = vmatmul.mubr.msk.bf16.vlgmr.msra.gmra.mrb[36].mxu1 %vm1091_vm1, %v2048_v7 }
 0xcd8   : > { %4003 = vmatpush3.bf16.xpose.msra.mxu1 %v2145_v56  ;;  %4004 = vmatprep.mubr.msk.bf16.mxu1 %vm4368_vm0, %v4367_v2 }
 0xcd9   : > { %4014 = vmatprep.subr.bf16.mxu1 %v4367_v2 }
 0xcdf   : > { %4005 = vmatmul.mubr.msk.bf16.vlgmr.msra.gmra.mrb[40].mxu1 %vm1091_vm1, %v2138_v9 }
 0xce0   : > { %4015 = vmatpush3.bf16.msra.mxu1 %v4731_v44  ;;  %4018 = vmatprep.mubr.msk.bf16.mxu1 %vm4368_vm0, %v4367_v2 }
 0xce1   : > { %4016 = vmatprep.subr.bf16.mxu1 %v4367_v2 }
 0xce4   : > { %4017 = vmatpush3.bf16.msra.mxu1 %v4744_v62 }
 0xce5   : > { %4028 = vmatprep.subr.bf16.mxu1 %v4367_v2 }
 0xda0   : > { %v2130_v10 = vpop.f32.mrb[40].mxu0 }
 0xda1   : > { %v4000_v11 = vpop.f32.mrb[41].mxu0 }
 0xda2   : > { %v2133_v12 = vpop.f32.mrb[42].mxu0 }
 0xda3   : > { %v4001_v13 = vpop.f32.mrb[43].mxu0 }
 0xdaa   : > { %v2086_v14 = vpop.f32.mrb[36].mxu1 }
 0xdab   : > { %v4848_v15 = vadd.f32 %v2130_v10, %v2086_v14  ;;  %v3992_v17 = vpop.f32.mrb[37].mxu1  ;;  %v3667_v14 = vld [vmem:[%s5237_s2] ss:$0 sm:$0xff] }
 0xdac   : > { %v2089_v18 = vpop.f32.mrb[38].mxu1  ;;  %v4323_v17 = vld [vmem:[%s4553_s21 + $0x8] sm:$0xff] }
 0xdad   : > { %v4850_v23 = vadd.f32 %v2133_v12, %v2089_v18  ;;  %v3993_v44 = vpop.f32.mrb[39].mxu1  ;;  %v4322_v12 = vld [vmem:[%s4553_s21] sm:$0xff]  ;;  %v2474_v18 = vadd.f32 %v4323_v17, %v4820_v41  ;;  %v4159_v17 = vld [vmem:[%s4533_s4 + $0x8c] ss:$16 sps:$4 sm:$0xff]  }
 0xdb2   : > { %v2181_v24 = vpop.f32.mrb[40].mxu1 }
 0xdb3   : > { %v4006_v25 = vpop.f32.mrb[41].mxu1  ;;  %v2188_v28 = vsel %vm1139_vm2, %v2181_v24, -inf }
 0xdb4   : > { %2189 = vmax.xlane.f32.xlu1 %v2188_v28  ;;  %v2184_v62 = vpop.f32.mrb[42].mxu1 }
 0xdb5   : > { %v4007_v30 = vpop.f32.mrb[43].mxu1  ;;  %v2191_v31 = vsel %vm1139_vm2, %v2184_v62, -inf }
 0xdb6   : > { %2192 = vmax.xlane.f32.xlu0 %v2191_v31 }
 0xe41   : > { %v2190_v33 = vpop.xlane.xlu1 %2189 }
 0xe42   : > { %v2194_v61 = vsub.f32 %v2181_v24, %v2190_v33  ;;  %v4895_v24 = vadd.f32 %v3667_v14, %v2474_v18  ;;  %v4154_v18 = vld [vmem:[%s4533_s4 + $0x80] ss:$16 sps:$4 sm:$0xff]  }
 0xe43   : > { %v2193_v36 = vpop.xlane.xlu0 %2192 }
 0xe44   : > { %v2196_v37 = vmul.f32 1.442695, %v2194_v61  ;;  %v2195_v38 = vsub.f32 %v2184_v62, %v2193_v36 }
 0xe46   : > { %4266 = vpow2.f32 %v2196_v37  ;;  %v2198_v39 = vmul.f32 1.442695, %v2195_v38 }
 0xe48   : > { %4268 = vpow2.f32 %v2198_v39 }
 0xe50   : > { %v4267_v42 = vpop.eup %4266 }
 0xe51   : > { %v2200_v21 = vsel %vm1139_vm2, %v4267_v42, 0.0 }
 0xe52   : > { %v4269_v43 = vpop.eup %4268  ;;  %2201 = vadd.xlane.f32.xlu0 %v2200_v21 }
 0xe53   : > { %v2203_v34 = vsel %vm1139_vm2, %v4269_v43, 0.0 }
 0xe54   : > { %2204 = vadd.xlane.f32.xlu1 %v2203_v34 }
 0xe65   : > { %2307 = vrot.lane.b32.xlu1 %v4657_v60, %s4371_s23 }
 0xe68   : > { %2211 = vrot.lane.b32.xlu0 %v4655_v59, %s4370_s18 }
 0xe69   : > { %2305 = vrot.lane.b32.xlu1 %v4653_v58, %s4371_s23 }
 0xedf   : > { %v2202_v47 = vpop.xlane.xlu0 %2201 }
 0xee0   : > { %4270 = vrcp.f32 %v2202_v47 }
 0xee1   : > { %v2205_v49 = vpop.xlane.xlu1 %2204 }
 0xee2   : > { %4272 = vrcp.f32 %v2205_v49 }
 0xee3   : > { %v2212_v50 = vpop.permute.xlu0 %2211 }
 0xee4   : > { %4009 = vmatpush3.bf16.msra.mxu0 %v2212_v50 }
 0xee5   : > { %4022 = vmatprep.subr.bf16.mxu0 %v4367_v2  ;;  %v2308_v32 = vpop.permute.xlu1 %2307 }
 0xee6   : > { %v2313_v46 = vsel %vm1091_vm1, %v2308_v32, 0 }
 0xee9   : > { %v2306_v58 = vpop.permute.xlu1 %2305 }
 0xeea   : > { %v4271_v51 = vpop.eup %4270 }
 0xeeb   : > { %v2208_v29 = vmul.f32 %v4271_v51, %v4267_v42  ;;  %v4130_v51 = vld [vmem:[%s4533_s4] ss:$16 sps:$4 sm:$0xff]  }
 0xeec   : > { %v4273_v52 = vpop.eup %4272 }
 0xeed   : > { %v2209_v45 = vmul.f32 %v4273_v52, %v4269_v43  ;;  %v4132_v52 = vld [vmem:[%s4533_s4 + $0x4] ss:$16 sps:$4 sm:$0xff]  }
 0xeef   : > { %v2210_v60 = vpack.c.bf16 %v2209_v45, %v2208_v29  ;;  %v4133_v29 = vld [vmem:[%s4533_s4 + $0x8] ss:$16 sps:$4 sm:$0xff]   ;;  %v4135_v45 = vld [vmem:[%s4533_s4 + $0xc] ss:$16 sps:$4 sm:$0xff]  }
 0xef1   : > { %4011 = vmatmul.mubr.msk.bf16.vlgmr.msra.gmra.mrb[44].mxu0 %vm1139_vm2, %v2210_v60 }
 0xef2   : > { %4023 = vmatpush3.bf16.xpose.msra.mxu0 %v2313_v46  ;;  %4024 = vmatprep.mubr.msk.bf16.mxu0 %vm4368_vm0, %v4367_v2 }
 0xef3   : > { %4034 = vmatprep.subr.bf16.mxu0 %v4367_v2 }
 0xef9   : > { %4025 = vmatmul.mubr.msk.bf16.vlgmr.msra.gmra.mrb[48].mxu0 %vm1091_vm1, %v2306_v58 }
 0xefa   : > { %4035 = vmatpush3.bf16.msra.mxu0 %v4762_v26  ;;  %4038 = vmatprep.mubr.msk.bf16.mxu0 %vm4368_vm0, %v4367_v2 }
 0xefb   : > { %4036 = vmatprep.subr.bf16.mxu0 %v4367_v2 }
 0xefe   : > { %4037 = vmatpush3.bf16.msra.mxu0 %v4793_v48 }
 0xeff   : > { %2823 = vmatprep.subr.bf16.mxu0 %v4135_v45 }
 0xfc4   : > { %v2251_v53 = vpop.f32.mrb[44].mxu0 }
 0xfc5   : > { %v4012_v55 = vpop.f32.mrb[45].mxu0 }
 0xfc6   : > { %v2254_v57 = vpop.f32.mrb[46].mxu0  ;;  %v4324_v55 = vld [vmem:[%s4553_s21 + $0x10] sm:$0xff] }
 0xfc7   : > { %v2258_v35 = vpack.c.bf16 %v2254_v57, %v2251_v53  ;;  %v4013_v63 = vpop.f32.mrb[47].mxu0 }
 0xfc9   : > { %4019 = vmatmul.mubr.msk.bf16.vlgmr.msra.gmra.mrb[44].mxu1 %vm1091_vm1, %v2258_v35 }
 0xfca   : > { %4030 = vmatprep.mubr.msk.bf16.mxu1 %vm4368_vm0, %v4367_v2 }
 0xfcc   : > { %v2349_v0 = vpop.f32.mrb[48].mxu0 }
 0xfcd   : > { %v4026_v1 = vpop.f32.mrb[49].mxu0  ;;  %v2356_v26 = vsel %vm1139_vm2, %v2349_v0, -inf }
 0xfce   : > { %2357 = vmax.xlane.f32.xlu1 %v2356_v26  ;;  %v2352_v3 = vpop.f32.mrb[50].mxu0  ;;  %v4325_v1 = vld [vmem:[%s4553_s21 + $0x18] sm:$0xff] }
 0xfcf   : > { %v4027_v54 = vpop.f32.mrb[51].mxu0  ;;  %v2359_v4 = vsel %vm1139_vm2, %v2352_v3, -inf }
 0xfd0   : > { %2360 = vmax.xlane.f32.xlu0 %v2359_v4 }
 0xfdf   : > { %2379 = vrot.lane.b32.xlu1 %v4655_v59, %s4371_s23  ;;  %v2473_v59 = vadd.f32 %v4322_v12, %v4817_v16  ;;  %v4153_v12 = vld [vmem:[%s4533_s4 + $0x6c] ss:$16 sps:$4 sm:$0xff]  }
 0xfe1   : > { %v4892_v44 = vadd.f32 %v3667_v14, %v2473_v59  ;;  %v4148_v59 = vld [vmem:[%s4533_s4 + $0x60] ss:$16 sps:$4 sm:$0xff]  }
0x105b   : > { %v2358_v48 = vpop.xlane.xlu1 %2357 }
0x105c   : > { %v2362_v5 = vsub.f32 %v2349_v0, %v2358_v48 }
0x105d   : > { %v2361_v6 = vpop.xlane.xlu0 %2360 }
0x105e   : > { %v2364_v7 = vmul.f32 1.442695, %v2362_v5  ;;  %v2363_v2 = vsub.f32 %v2352_v3, %v2361_v6  ;;  %v4136_v5 = vld [vmem:[%s4533_s4 + $0x20] ss:$16 sps:$4 sm:$0xff]   ;;  %v4138_v6 = vld [vmem:[%s4533_s4 + $0x24] ss:$16 sps:$4 sm:$0xff]  }
0x105f   : > { %v2380_v8 = vpop.permute.xlu1 %2379 }
0x1060   : > { %4274 = vpow2.f32 %v2364_v7  ;;  %v2366_v56 = vmul.f32 1.442695, %v2363_v2  ;;  %4029 = vmatpush3.bf16.msra.mxu1 %v2380_v8  ;;  %v4139_v7 = vld [vmem:[%s4533_s4 + $0x28] ss:$16 sps:$4 sm:$0xff]   ;;  %v4141_v2 = vld [vmem:[%s4533_s4 + $0x2c] ss:$16 sps:$4 sm:$0xff]  }
0x1061   : > { %2770 = vmatprep.subr.bf16.mxu1 %v4132_v52  ;;  %v4142_v8 = vld [vmem:[%s4533_s4 + $0x40] ss:$16 sps:$4 sm:$0xff]  }
0x1062   : > { %4276 = vpow2.f32 %v2366_v56  ;;  %v4144_v56 = vld [vmem:[%s4533_s4 + $0x44] ss:$16 sps:$4 sm:$0xff]  }
0x106a   : > { %v4275_v9 = vpop.eup %4274 }
0x106b   : > { %v2368_v10 = vsel %vm1139_vm2, %v4275_v9, 0.0 }
0x106c   : > { %v4277_v11 = vpop.eup %4276  ;;  %2369 = vadd.xlane.f32.xlu0 %v2368_v10  ;;  %v4147_v10 = vld [vmem:[%s4533_s4 + $0x4c] ss:$16 sps:$4 sm:$0xff]  }
0x106d   : > { %v2371_v13 = vsel %vm1139_vm2, %v4277_v11, 0.0 }
0x1070   : > { %2372 = vadd.xlane.f32.xlu0 %v2371_v13  ;;  %v4151_v13 = vld [vmem:[%s4533_s4 + $0x68] ss:$16 sps:$4 sm:$0xff]  }
0x1074   : > { %2490 = vadd.xlane.f32.xlu0 %v4892_v44 }
0x1078   : > { %2492 = vadd.xlane.f32.xlu0 %v4895_v24 }
0x109c   : > { %v2296_v16 = vpop.f32.mrb[44].mxu1 }
0x109d   : > { %v2303_v25 = vadd.f32 %v2296_v16, %v4848_v15  ;;  %v4020_v28 = vpop.f32.mrb[45].mxu1  ;;  %v4157_v16 = vld [vmem:[%s4533_s4 + $0x88] ss:$16 sps:$4 sm:$0xff]  }
0x109e   : > { %v2299_v62 = vpop.f32.mrb[46].mxu1  ;;  %v4165_v28 = vld [vmem:[%s4533_s4 + $0xac] ss:$16 sps:$4 sm:$0xff]  }
0x109f   : > { %v2304_v30 = vadd.f32 %v2299_v62, %v4850_v23  ;;  %v4021_v31 = vpop.f32.mrb[47].mxu1  ;;  %v4160_v62 = vld [vmem:[%s4533_s4 + $0xa0] ss:$16 sps:$4 sm:$0xff]  }
0x10a0   : > { %v4168_v31 = vld [vmem:[%s4533_s4 + $0xc4] ss:$16 sps:$4 sm:$0xff]  }
0x10f9   : > { %v2370_v33 = vpop.xlane.xlu0 %2369 }
0x10fa   : > { %4278 = vrcp.f32 %v2370_v33  ;;  %v4171_v33 = vld [vmem:[%s4533_s4 + $0xcc] ss:$16 sps:$4 sm:$0xff]  }
0x10fd   : > { %v2373_v61 = vpop.xlane.xlu0 %2372 }
0x10fe   : > { %4280 = vrcp.f32 %v2373_v61  ;;  %v4166_v61 = vld [vmem:[%s4533_s4 + $0xc0] ss:$16 sps:$4 sm:$0xff]  }
0x1101   : > { %v2491_v41 = vpop.xlane.xlu0 %2490 }
0x1102   : > { %v2498_v36 = vmul.f32 0.0078125, %v2491_v41  ;;  %v4169_v41 = vld [vmem:[%s4533_s4 + $0xc8] ss:$16 sps:$4 sm:$0xff]  }
0x1104   : > { %v4901_v37 = vsub.f32 %v4892_v44, %v2498_v36  ;;  %v4279_v38 = vpop.eup %4278  ;;  %v4174_v36 = vld [vmem:[%s4533_s4 + $0xe4] ss:$16 sps:$4 sm:$0xff]  }
0x1105   : > { %v2376_v23 = vmul.f32 %v4279_v38, %v4275_v9  ;;  %v2493_v58 = vpop.xlane.xlu0 %2492  ;;  %v4145_v9 = vld [vmem:[%s4533_s4 + $0x48] ss:$16 sps:$4 sm:$0xff]   ;;  %v4177_v38 = vld [vmem:[%s4533_s4 + $0xec] ss:$16 sps:$4 sm:$0xff]  }
0x1106   : > { %v2506_v39 = vmul.f32 %v4901_v37, %v4901_v37  ;;  %v2499_v0 = vmul.f32 0.0078125, %v2493_v58 }
0x1108   : > { %v4281_v15 = vpop.eup %4280  ;;  %2510 = vadd.xlane.f32.xlu1 %v2506_v39  ;;  %v4919_v54 = vsub.f32 %v4895_v24, %v2499_v0  ;;  %v4172_v39 = vld [vmem:[%s4533_s4 + $0xe0] ss:$16 sps:$4 sm:$0xff]  }
0x1109   : > { %v2377_v42 = vmul.f32 %v4281_v15, %v4277_v11  ;;  %v4150_v11 = vld [vmem:[%s4533_s4 + $0x64] ss:$16 sps:$4 sm:$0xff]   ;;  %v4175_v15 = vld [vmem:[%s4533_s4 + $0xe8] ss:$16 sps:$4 sm:$0xff]  }
0x110a   : > { %v2507_v48 = vmul.f32 %v4919_v54, %v4919_v54 }
0x110b   : > { %v2378_v21 = vpack.c.bf16 %v2377_v42, %v2376_v23 }
0x110d   : > { %4031 = vmatmul.mubr.msk.bf16.vlgmr.msra.gmra.mrb[48].mxu1 %vm1139_vm2, %v2378_v21 }
0x110e   : > { %2802 = vmatprep.mubr.bf16.mxu1 %v4366_v27  ;;  %2771 = vmatpush1.bf16.msra.mxu1 %v4130_v51 }
0x110f   : > { %2772 = vmatprep.subr.bf16.mxu1 %v4138_v6  ;;  %v4181_v6 = vld [vmem:[%s4544_s0 + $0x80] sm:$0xff]  }
0x1112   : > { %2773 = vmatpush1.bf16.msra.mxu1 %v4136_v5  ;;  %v4180_v5 = vld [vmem:[%s4544_s0] sm:$0xff]  }
0x1113   : > { %2774 = vmatprep.subr.bf16.mxu1 %v4144_v56  ;;  %v4185_v56 = vld [vmem:[%s4544_s0 + $0x88] sm:$0xff]  }
0x1116   : > { %2775 = vmatpush1.bf16.msra.mxu1 %v4142_v8  ;;  %v4184_v8 = vld [vmem:[%s4544_s0 + $0x8] sm:$0xff]  }
0x1117   : > { %2776 = vmatprep.subr.bf16.mxu1 %v4150_v11  ;;  %v4189_v11 = vld [vmem:[%s4544_s0 + $0x90] sm:$0xff]  }
0x111a   : > { %2777 = vmatpush1.bf16.msra.mxu1 %v4148_v59  ;;  %v4191_v59 = vld [vmem:[%s4544_s0 + $0xd8] sm:$0xff]  }
0x1195   : > { %v2511_v23 = vpop.xlane.xlu1 %2510 }
0x1196   : > { %v2518_v42 = vmul.f32 0.0078125, %v2511_v23  ;;  %v4207_v23 = vld [vmem:[%s4544_s0 + $0xf8] sm:$0xff]  }
0x11e0   : > { %v2419_v43 = vpop.f32.mrb[48].mxu1 }
0x11e1   : > { %v4032_v34 = vpop.f32.mrb[49].mxu1 }
0x11e2   : > { %v2422_v47 = vpop.f32.mrb[50].mxu1  ;;  %v2522_v34 = vadd.f32 1e-05, %v2518_v42  ;;  %v4208_v42 = vld [vmem:[%s4544_s0 + $0x38] sm:$0xff]  }
0x11e3   : > { %v2426_v49 = vpack.c.bf16 %v2422_v47, %v2419_v43  ;;  %v4033_v50 = vpop.f32.mrb[51].mxu1 }
0x11e4   : > { %4282 = vrsqrt.f32 %v2522_v34 }
0x11e5   : > { %4039 = vmatmul.mubr.msk.bf16.vlgmr.msra.gmra.mrb[52].mxu0 %vm1091_vm1, %v2426_v49 }
0x11e6   : > { %2855 = vmatprep.mubr.bf16.mxu0 %v4366_v27  ;;  %2824 = vmatpush1.bf16.msra.mxu0 %v4133_v29 }
0x11e7   : > { %2825 = vmatprep.subr.bf16.mxu0 %v4141_v2  ;;  %v4183_v2 = vld [vmem:[%s4544_s0 + $0xc8] sm:$0xff]  }
0x11ea   : > { %2826 = vmatpush1.bf16.msra.mxu0 %v4139_v7  ;;  %v4182_v7 = vld [vmem:[%s4544_s0 + $0x48] sm:$0xff]  }
0x11eb   : > { %2827 = vmatprep.subr.bf16.mxu0 %v4147_v10  ;;  %v4188_v10 = vld [vmem:[%s4544_s0 + $0x10] sm:$0xff]  }
0x11ee   : > { %2828 = vmatpush1.bf16.msra.mxu0 %v4145_v9  ;;  %v4187_v9 = vld [vmem:[%s4544_s0 + $0xd0] sm:$0xff]  }
0x11ef   : > { %2829 = vmatprep.subr.bf16.mxu0 %v4153_v12  ;;  %v4190_v12 = vld [vmem:[%s4544_s0 + $0x58] sm:$0xff]  }
0x11f2   : > { %2830 = vmatpush1.bf16.msra.mxu0 %v4151_v13  ;;  %v4192_v13 = vld [vmem:[%s4544_s0 + $0x18] sm:$0xff]  }
0x11f3   : > { %2831 = vmatprep.subr.bf16.mxu0 %v4159_v17  ;;  %v4194_v17 = vld [vmem:[%s4544_s0 + $0x60] sm:$0xff]  }
0x11f6   : > { %2832 = vmatpush1.bf16.msra.mxu0 %v4157_v16  ;;  %v4196_v16 = vld [vmem:[%s4544_s0 + $0x20] sm:$0xff]  }
0x11f7   : > { %2833 = vmatprep.subr.bf16.mxu0 %v4165_v28  ;;  %v4198_v28 = vld [vmem:[%s4544_s0 + $0x68] sm:$0xff]  }
0x12b8   : > { %v2464_v32 = vpop.f32.mrb[52].mxu0 }
0x12b9   : > { %v2471_v60 = vadd.f32 %v2464_v32, %v2303_v25  ;;  %v4040_v46 = vpop.f32.mrb[53].mxu0  ;;  %v4162_v25 = vld [vmem:[%s4533_s4 + $0xa4] ss:$16 sps:$4 sm:$0xff]  }
0x12ba   : > { %v2467_v53 = vpop.f32.mrb[54].mxu0  ;;  %v4283_v46 = vpop.eup %4282 }
0x12bb   : > { %v2475_v57 = vadd.f32 %v4324_v55, %v2471_v60  ;;  %v2472_v35 = vadd.f32 %v2467_v53, %v2304_v30  ;;  %v4041_v63 = vpop.f32.mrb[55].mxu0  ;;  %v4163_v30 = vld [vmem:[%s4533_s4 + $0xa8] ss:$16 sps:$4 sm:$0xff]   ;;  %v2530_v58 = vmul.f32 %v4283_v46, %v4901_v37  ;;  %v4970_v53 = vld [vmem:[%s5238_s26] ss:$0 sm:$0xff] }
0x12bc   : > { %2834 = vmatpush1.bf16.msra.mxu0 %v4163_v30  ;;  %v4979_v63 = vld [vmem:[%s5239_s16] ss:$0 sm:$0xff]  ;;  %v4200_v30 = vld [vmem:[%s4544_s0 + $0x28] sm:$0xff]  }
0x12bd   : > { %v2476_v26 = vadd.f32 %v4325_v1, %v2472_v35  ;;  %v4915_v3 = vadd.f32 %v3667_v14, %v2475_v57  ;;  %2835 = vmatprep.subr.bf16.mxu0 %v4171_v33  ;;  %v2540_v35 = vmul.f32 %v4970_v53, %v2530_v58  ;;  %v4202_v33 = vld [vmem:[%s4544_s0 + $0x70] sm:$0xff]  }
0x12bf   : > { %2494 = vadd.xlane.f32.xlu0 %v4915_v3  ;;  %v4921_v4 = vadd.f32 %v3667_v14, %v2476_v26  ;;  %v4156_v14 = vld [vmem:[%s4533_s4 + $0x84] ss:$16 sps:$4 sm:$0xff]   ;;  %v2550_v0 = vadd.f32 %v4979_v63, %v2540_v35  ;;  %v2588_v35 = vld [vmem:[%s4539_s30] sm:$0xf] }
0x12c0   : > { %2778 = vmatprep.subr.bf16.mxu1 %v4156_v14  ;;  %2836 = vmatpush1.bf16.msra.mxu0 %v4169_v41  ;;  %v4193_v14 = vld [vmem:[%s4544_s0 + $0x98] sm:$0xff]   ;;  %v4204_v41 = vld [vmem:[%s4544_s0 + $0x30] sm:$0xff]  }
0x12c1   : > { %2779 = vmatpush1.bf16.msra.mxu1 %v4154_v18  ;;  %2837 = vmatprep.subr.bf16.mxu0 %v4177_v38  ;;  %v4195_v18 = vld [vmem:[%s4544_s0 + $0xe0] sm:$0xff]  }
0x12c2   : > { %2780 = vmatprep.subr.bf16.mxu1 %v4162_v25  ;;  %v4197_v25 = vld [vmem:[%s4544_s0 + $0xa0] sm:$0xff]  }
0x12c3   : > { %2496 = vadd.xlane.f32.xlu0 %v4921_v4 }
0x12c4   : > { %2838 = vmatpush1.bf16.msra.mxu0 %v4175_v15  ;;  %v4206_v15 = vld [vmem:[%s4544_s0 + $0x78] sm:$0xff]  }
0x12c5   : > { %2781 = vmatpush1.bf16.msra.mxu1 %v4160_v62  ;;  %v4199_v62 = vld [vmem:[%s4544_s0 + $0xe8] sm:$0xff]  }
0x12c6   : > { %2782 = vmatprep.subr.bf16.mxu1 %v4168_v31  ;;  %v4201_v31 = vld [vmem:[%s4544_s0 + $0xa8] sm:$0xff]  }
0x12c7   : > { %2512 = vadd.xlane.f32.xlu0 %v2507_v48  ;;  %v4179_v48 = vld [vmem:[%s4544_s0 + $0xc0] sm:$0xff]  }
0x12c8   : > { %3834 = vmatprep.subr.bf16.mxu0 %v4179_v48 }
0x12c9   : > { %2783 = vmatpush1.bf16.msra.mxu1 %v4166_v61  ;;  %v4203_v61 = vld [vmem:[%s4544_s0 + $0xf0] sm:$0xff]  }
0x12ca   : > { %2784 = vmatprep.subr.bf16.mxu1 %v4174_v36  ;;  %v4205_v36 = vld [vmem:[%s4544_s0 + $0xb0] sm:$0xff]  }
0x12cd   : > { %2785 = vmatpush1.bf16.msra.mxu1 %v4172_v39 }
0x134c   : > { %v2495_v21 = vpop.xlane.xlu0 %2494 }
0x134d   : > { %v2500_v43 = vmul.f32 0.0078125, %v2495_v21  ;;  %v4209_v21 = vld [vmem:[%s4544_s0 + $0xb8] sm:$0xff]  }
0x134f   : > { %v4955_v47 = vsub.f32 %v4915_v3, %v2500_v43 }
0x1350   : > { %v2497_v49 = vpop.xlane.xlu0 %2496 }
0x1351   : > { %v2501_v50 = vmul.f32 0.0078125, %v2497_v49  ;;  %v2508_v51 = vmul.f32 %v4955_v47, %v4955_v47 }
0x1353   : > { %v4960_v52 = vsub.f32 %v4921_v4, %v2501_v50  ;;  %2514 = vadd.xlane.f32.xlu0 %v2508_v51 }
0x1354   : > { %v2513_v29 = vpop.xlane.xlu0 %2512 }
0x1355   : > { %v2519_v45 = vmul.f32 0.0078125, %v2513_v29  ;;  %v2509_v32 = vmul.f32 %v4960_v52, %v4960_v52 }
0x1357   : > { %v2523_v60 = vadd.f32 1e-05, %v2519_v45  ;;  %2516 = vadd.xlane.f32.xlu0 %v2509_v32 }
0x1359   : > { %4284 = vrsqrt.f32 %v2523_v60 }
0x1363   : > { %v4285_v55 = vpop.eup %4284 }
0x1364   : > { %v2531_v57 = vmul.f32 %v4285_v55, %v4919_v54  ;;  %v4178_v54 = vld [vmem:[%s4544_s0 + $0x40] sm:$0xff]  }
0x1365   : > { %3806 = vmatprep.subr.bf16.mxu1 %v4178_v54 }
0x1366   : > { %v2541_v37 = vmul.f32 %v4970_v53, %v2531_v57 }
0x1368   : > { %v2551_v1 = vadd.f32 %v4979_v63, %v2541_v37  ;;  %v2604_v37 = vsub.s32 3, %v4621_v19 }
0x136a   : > { %v2554_v26 = vpack.c.bf16 %v2551_v1, %v2550_v0  ;;  %v5038_v0 = vrot.slane %v2588_v35, %v2604_v37 }
0x136c   : > { %2803 = vmatmul.mubr.bf16.vlgmr.msra.gmra.mrb[52].mxu1 %v2554_v26  ;;  %2856 = vmatmul.mubr.bf16.vlgmr.msra.gmra.mrb[56].mxu0 %v2554_v26 }
0x136d   : > { %2812 = vmatprep.mubr.bf16.mxu1 %v4366_v27  ;;  %2865 = vmatprep.mubr.bf16.mxu0 %v4366_v27  ;;  %v4186_v27 = vld [vmem:[%s4544_s0 + $0x50] sm:$0xff]  }
0x136e   : > { %3807 = vmatpush3.bf16.msra.mxu1 %v4180_v5  ;;  %3835 = vmatpush3.bf16.msra.mxu0 %v4181_v6 }
0x136f   : > { %3808 = vmatprep.subr.bf16.mxu1 %v4182_v7  ;;  %3836 = vmatprep.subr.bf16.mxu0 %v4183_v2 }
0x1372   : > { %3809 = vmatpush3.bf16.msra.mxu1 %v4184_v8  ;;  %3837 = vmatpush3.bf16.msra.mxu0 %v4185_v56 }
0x1373   : > { %3810 = vmatprep.subr.bf16.mxu1 %v4186_v27  ;;  %3838 = vmatprep.subr.bf16.mxu0 %v4187_v9 }
0x1376   : > { %3811 = vmatpush3.bf16.msra.mxu1 %v4188_v10  ;;  %3839 = vmatpush3.bf16.msra.mxu0 %v4189_v11 }
0x1377   : > { %3812 = vmatprep.subr.bf16.mxu1 %v4190_v12  ;;  %3840 = vmatprep.subr.bf16.mxu0 %v4191_v59 }
0x137a   : > { %3813 = vmatpush3.bf16.msra.mxu1 %v4192_v13  ;;  %3841 = vmatpush3.bf16.msra.mxu0 %v4193_v14 }
0x137b   : > { %3814 = vmatprep.subr.bf16.mxu1 %v4194_v17  ;;  %3842 = vmatprep.subr.bf16.mxu0 %v4195_v18 }
0x137e   : > { %3815 = vmatpush3.bf16.msra.mxu1 %v4196_v16  ;;  %3843 = vmatpush3.bf16.msra.mxu0 %v4197_v25 }
0x137f   : > { %3816 = vmatprep.subr.bf16.mxu1 %v4198_v28  ;;  %3844 = vmatprep.subr.bf16.mxu0 %v4199_v62 }
0x1382   : > { %3817 = vmatpush3.bf16.msra.mxu1 %v4200_v30  ;;  %3845 = vmatpush3.bf16.msra.mxu0 %v4201_v31 }
0x1383   : > { %3818 = vmatprep.subr.bf16.mxu1 %v4202_v33  ;;  %3846 = vmatprep.subr.bf16.mxu0 %v4203_v61 }
0x1386   : > { %3819 = vmatpush3.bf16.msra.mxu1 %v4204_v41  ;;  %3847 = vmatpush3.bf16.msra.mxu0 %v4205_v36 }
0x1387   : > { %3820 = vmatprep.subr.bf16.mxu1 %v4206_v15  ;;  %3848 = vmatprep.subr.bf16.mxu0 %v4207_v23 }
0x138a   : > { %3821 = vmatpush3.bf16.msra.mxu1 %v4208_v42  ;;  %3849 = vmatpush3.bf16.msra.mxu0 %v4209_v21 }
0x13e0   : > { %v2515_v38 = vpop.xlane.xlu0 %2514 }
0x13e1   : > { %v2520_v39 = vmul.f32 0.0078125, %v2515_v38 }
0x13e3   : > { %v2524_v43 = vadd.f32 1e-05, %v2520_v39 }
0x13e4   : > { %v2517_v34 = vpop.xlane.xlu0 %2516 }
0x13e5   : > { %4286 = vrsqrt.f32 %v2524_v43  ;;  %v2521_v49 = vmul.f32 0.0078125, %v2517_v34 }
0x13e7   : > { %v2525_v50 = vadd.f32 1e-05, %v2521_v49 }
0x13e9   : > { %4288 = vrsqrt.f32 %v2525_v50 }
0x13ef   : > { %v4287_v51 = vpop.eup %4286 }
0x13f0   : > { %v2532_v29 = vmul.f32 %v4287_v51, %v4955_v47  ;;  %v5028_v47 = vrot.slane %v2588_v35, %v830_v20 }
0x13f2   : > { %v2542_v60 = vmul.f32 %v4970_v53, %v2532_v29 }
0x13f3   : > { %v4289_v45 = vpop.eup %4288 }
0x13f4   : > { %v2533_v32 = vmul.f32 %v4289_v45, %v4960_v52  ;;  %v2552_v58 = vadd.f32 %v4979_v63, %v2542_v60  ;;  %v5032_v52 = vrot.slane %v2588_v35, %v838_v40 }
0x13f6   : > { %v2543_v46 = vmul.f32 %v4970_v53, %v2533_v32  ;;  %v5036_v53 = vrot.slane %v2588_v35, %v834_v22 }
0x13f8   : > { %v2553_v55 = vadd.f32 %v4979_v63, %v2543_v46 }
0x13fa   : > { %v2555_v57 = vpack.c.bf16 %v2553_v55, %v2552_v58 }
0x13fc   : > { %2813 = vmatmul.mubr.bf16.gmra.mrb[56].mxu1 %v2555_v57  ;;  %2866 = vmatmul.mubr.bf16.gmra.mrb[60].mxu0 %v2555_v57 }
0x143f   : > { %v2804_v63 = vpop.f32.mrb[52].mxu1  ;;  %v2857_v1 = vpop.f32.mrb[56].mxu0 }
0x1440   : > { %v5041_v26 = vadd.f32 %v2804_v63, %v5028_v47  ;;  %v5044_v54 = vadd.f32 %v2857_v1, %v5032_v52  ;;  %v2806_v20 = vpop.f32.mrb[53].mxu1  ;;  %v2859_v48 = vpop.f32.mrb[57].mxu0 }
0x1441   : > { %v5047_v5 = vadd.f32 %v2806_v20, %v5036_v53  ;;  %v5050_v40 = vadd.f32 %v2859_v48, %v5038_v0  ;;  %v2808_v19 = vpop.f32.mrb[54].mxu1  ;;  %v2861_v22 = vpop.f32.mrb[58].mxu0 }
0x1442   : > { %v2876_v6 = vmul.f32 %v5041_v26, %v5041_v26  ;;  %v2878_v7 = vmul.f32 %v5044_v54, %v5044_v54  ;;  %v5057_v2 = vadd.f32 %v2808_v19, %v5028_v47  ;;  %v5060_v8 = vadd.f32 %v2861_v22, %v5032_v52  ;;  %v2810_v56 = vpop.f32.mrb[55].mxu1  ;;  %v2863_v27 = vpop.f32.mrb[59].mxu0 }
0x1443   : > { %v2877_v9 = vmul.f32 %v5047_v5, %v5047_v5  ;;  %v2879_v10 = vmul.f32 %v5050_v40, %v5050_v40  ;;  %v5067_v11 = vadd.f32 %v2810_v56, %v5036_v53  ;;  %v5070_v12 = vadd.f32 %v2863_v27, %v5038_v0 }
0x1444   : > { %v2892_v59 = vmul.f32 %v2876_v6, %v5041_v26  ;;  %v2894_v13 = vmul.f32 %v2878_v7, %v5044_v54  ;;  %v2880_v14 = vmul.f32 %v5057_v2, %v5057_v2  ;;  %v2882_v17 = vmul.f32 %v5060_v8, %v5060_v8 }
0x1445   : > { %v2893_v18 = vmul.f32 %v2877_v9, %v5047_v5  ;;  %v2895_v16 = vmul.f32 %v2879_v10, %v5050_v40  ;;  %v2881_v25 = vmul.f32 %v5067_v11, %v5067_v11  ;;  %v2883_v28 = vmul.f32 %v5070_v12, %v5070_v12 }
0x1446   : > { %v2908_v62 = vmul.f32 0.044715, %v2892_v59  ;;  %v2910_v30 = vmul.f32 0.044715, %v2894_v13  ;;  %v2896_v31 = vmul.f32 %v2880_v14, %v5057_v2  ;;  %v2898_v33 = vmul.f32 %v2882_v17, %v5060_v8 }
0x1447   : > { %v2909_v61 = vmul.f32 0.044715, %v2893_v18  ;;  %v2911_v41 = vmul.f32 0.044715, %v2895_v16  ;;  %v2897_v36 = vmul.f32 %v2881_v25, %v5067_v11  ;;  %v2899_v38 = vmul.f32 %v2883_v28, %v5070_v12 }
0x1448   : > { %v2924_v39 = vadd.f32 %v2908_v62, %v5041_v26  ;;  %v2926_v15 = vadd.f32 %v2910_v30, %v5044_v54  ;;  %v2912_v23 = vmul.f32 0.044715, %v2896_v31  ;;  %v2914_v42 = vmul.f32 0.044715, %v2898_v33 }
0x1449   : > { %v2925_v21 = vadd.f32 %v2909_v61, %v5047_v5  ;;  %v2927_v43 = vadd.f32 %v2911_v41, %v5050_v40  ;;  %v2913_v34 = vmul.f32 0.044715, %v2897_v36  ;;  %v2915_v49 = vmul.f32 0.044715, %v2899_v38 }
0x144a   : > { %v2940_v50 = vmul.f32 0.7978846, %v2924_v39  ;;  %v2942_v51 = vmul.f32 0.7978846, %v2926_v15  ;;  %v2928_v29 = vadd.f32 %v2912_v23, %v5057_v2  ;;  %v2930_v45 = vadd.f32 %v2914_v42, %v5060_v8 }
0x144b   : > { %v2941_v32 = vmul.f32 0.7978846, %v2925_v21  ;;  %v2943_v60 = vmul.f32 0.7978846, %v2927_v43  ;;  %v2929_v46 = vadd.f32 %v2913_v34, %v5067_v11  ;;  %v2931_v58 = vadd.f32 %v2915_v49, %v5070_v12 }
0x144c   : > { %4290 = vtanh.f32 %v2940_v50  ;;  %v2944_v55 = vmul.f32 0.7978846, %v2928_v29  ;;  %v2946_v57 = vmul.f32 0.7978846, %v2930_v45 }
0x144d   : > { %4292 = vtanh.f32 %v2942_v51  ;;  %v2945_v35 = vmul.f32 0.7978846, %v2929_v46  ;;  %v2947_v37 = vmul.f32 0.7978846, %v2931_v58 }
0x144e   : > { %4294 = vtanh.f32 %v2941_v32 }
0x144f   : > { %4296 = vtanh.f32 %v2943_v60 }
0x1450   : > { %4298 = vtanh.f32 %v2944_v55 }
0x1451   : > { %4300 = vtanh.f32 %v2946_v57 }
0x1452   : > { %4302 = vtanh.f32 %v2945_v35 }
0x1453   : > { %4304 = vtanh.f32 %v2947_v37 }
0x1456   : > { %v4291_v63 = vpop.eup %4290 }
0x1457   : > { %v4293_v1 = vpop.eup %4292  ;;  %v2972_v20 = vadd.f32 1.0, %v4291_v63 }
0x1458   : > { %v4295_v48 = vpop.eup %4294  ;;  %v2974_v19 = vadd.f32 1.0, %v4293_v1 }
0x1459   : > { %v4297_v22 = vpop.eup %4296  ;;  %v2973_v6 = vadd.f32 1.0, %v4295_v48  ;;  %v2988_v9 = vmul.f32 0.5, %v2972_v20 }
0x145a   : > { %v4299_v7 = vpop.eup %4298  ;;  %v2975_v56 = vadd.f32 1.0, %v4297_v22  ;;  %v2990_v13 = vmul.f32 0.5, %v2974_v19 }
0x145b   : > { %v4301_v27 = vpop.eup %4300  ;;  %v2976_v10 = vadd.f32 1.0, %v4299_v7  ;;  %v2989_v25 = vmul.f32 0.5, %v2973_v6  ;;  %v3004_v31 = vmul.f32 %v2988_v9, %v5041_v26 }
0x145c   : > { %v4303_v59 = vpop.eup %4302  ;;  %v2978_v14 = vadd.f32 1.0, %v4301_v27  ;;  %v2991_v30 = vmul.f32 0.5, %v2975_v56  ;;  %v3006_v41 = vmul.f32 %v2990_v13, %v5044_v54 }
0x145d   : > { %v4305_v17 = vpop.eup %4304  ;;  %v2992_v18 = vmul.f32 0.5, %v2976_v10  ;;  %v2977_v16 = vadd.f32 1.0, %v4303_v59  ;;  %v3005_v15 = vmul.f32 %v2989_v25, %v5047_v5 }
0x145e   : > { %v2994_v28 = vmul.f32 0.5, %v2978_v14  ;;  %v2979_v62 = vadd.f32 1.0, %v4305_v17  ;;  %v3007_v21 = vmul.f32 %v2991_v30, %v5050_v40 }
0x145f   : > { %v3008_v33 = vmul.f32 %v2992_v18, %v5057_v2  ;;  %v2993_v61 = vmul.f32 0.5, %v2977_v16 }
0x1460   : > { %v3010_v36 = vmul.f32 %v2994_v28, %v5060_v8  ;;  %v2995_v38 = vmul.f32 0.5, %v2979_v62 }
0x1461   : > { %v3020_v39 = vpack.c.bf16 %v3008_v33, %v3004_v31  ;;  %v3009_v23 = vmul.f32 %v2993_v61, %v5067_v11 }
0x1462   : > { %v3022_v42 = vpack.c.bf16 %v3010_v36, %v3006_v41  ;;  %v3011_v43 = vmul.f32 %v2995_v38, %v5070_v12 }
0x1463   : > { %v3021_v34 = vpack.c.bf16 %v3009_v23, %v3005_v15 }
0x1464   : > { %v3023_v26 = vpack.c.bf16 %v3011_v43, %v3007_v21 }
0x1465   : > { %3323 = vmatprep.mubr.bf16.mxu1 %v3021_v34 }
0x1466   : > { %3372 = vmatprep.mubr.bf16.mxu0 %v3023_v26  ;;  %3324 = vmatmul.mubr.bf16.vlgmr.msra.gmra.mrb[60].mxu1 %v3020_v39 }
0x1467   : > { %3373 = vmatmul.mubr.bf16.vlgmr.msra.gmra.mrb[64].mxu0 %v3022_v42 }
0x14cf   : > { %v2814_v54 = vpop.f32.mrb[56].mxu1  ;;  %v2867_v2 = vpop.f32.mrb[60].mxu0 }
0x14d0   : > { %v5105_v8 = vadd.f32 %v2814_v54, %v5028_v47  ;;  %v5108_v5 = vadd.f32 %v2867_v2, %v5032_v52  ;;  %v2816_v11 = vpop.f32.mrb[57].mxu1  ;;  %v2869_v49 = vpop.f32.mrb[61].mxu0 }
0x14d1   : > { %v5111_v40 = vadd.f32 %v2816_v11, %v5036_v53  ;;  %v5114_v12 = vadd.f32 %v2869_v49, %v5038_v0  ;;  %v2818_v50 = vpop.f32.mrb[58].mxu1  ;;  %v2871_v51 = vpop.f32.mrb[62].mxu0 }
0x14d2   : > { %v2884_v29 = vmul.f32 %v5105_v8, %v5105_v8  ;;  %v2886_v45 = vmul.f32 %v5108_v5, %v5108_v5  ;;  %v5121_v32 = vadd.f32 %v2818_v50, %v5028_v47  ;;  %v5124_v60 = vadd.f32 %v2871_v51, %v5032_v52  ;;  %v2820_v46 = vpop.f32.mrb[59].mxu1  ;;  %v2873_v58 = vpop.f32.mrb[63].mxu0 }
0x14d3   : > { %v2885_v55 = vmul.f32 %v5111_v40, %v5111_v40  ;;  %v2887_v57 = vmul.f32 %v5114_v12, %v5114_v12  ;;  %v5131_v35 = vadd.f32 %v2820_v46, %v5036_v53  ;;  %v5134_v37 = vadd.f32 %v2873_v58, %v5038_v0 }
0x14d4   : > { %v2900_v47 = vmul.f32 %v2884_v29, %v5105_v8  ;;  %v2902_v63 = vmul.f32 %v2886_v45, %v5108_v5  ;;  %v2888_v52 = vmul.f32 %v5121_v32, %v5121_v32  ;;  %v2890_v1 = vmul.f32 %v5124_v60, %v5124_v60 }
0x14d5   : > { %v2901_v20 = vmul.f32 %v2885_v55, %v5111_v40  ;;  %v2903_v48 = vmul.f32 %v2887_v57, %v5114_v12  ;;  %v2889_v53 = vmul.f32 %v5131_v35, %v5131_v35  ;;  %v2891_v0 = vmul.f32 %v5134_v37, %v5134_v37 }
0x14d6   : > { %v2916_v19 = vmul.f32 0.044715, %v2900_v47  ;;  %v2918_v22 = vmul.f32 0.044715, %v2902_v63  ;;  %v2904_v6 = vmul.f32 %v2888_v52, %v5121_v32  ;;  %v2906_v7 = vmul.f32 %v2890_v1, %v5124_v60 }
0x14d7   : > { %v2917_v56 = vmul.f32 0.044715, %v2901_v20  ;;  %v2919_v27 = vmul.f32 0.044715, %v2903_v48  ;;  %v2905_v9 = vmul.f32 %v2889_v53, %v5131_v35  ;;  %v2907_v10 = vmul.f32 %v2891_v0, %v5134_v37 }
0x14d8   : > { %v2932_v59 = vadd.f32 %v2916_v19, %v5105_v8  ;;  %v2934_v13 = vadd.f32 %v2918_v22, %v5108_v5  ;;  %v2920_v14 = vmul.f32 0.044715, %v2904_v6  ;;  %v2922_v17 = vmul.f32 0.044715, %v2906_v7 }
0x14d9   : > { %v2933_v18 = vadd.f32 %v2917_v56, %v5111_v40  ;;  %v2935_v16 = vadd.f32 %v2919_v27, %v5114_v12  ;;  %v2921_v25 = vmul.f32 0.044715, %v2905_v9  ;;  %v2923_v28 = vmul.f32 0.044715, %v2907_v10 }
0x14da   : > { %v2948_v62 = vmul.f32 0.7978846, %v2932_v59  ;;  %v2950_v30 = vmul.f32 0.7978846, %v2934_v13  ;;  %v2936_v31 = vadd.f32 %v2920_v14, %v5121_v32  ;;  %v2938_v33 = vadd.f32 %v2922_v17, %v5124_v60 }
0x14db   : > { %v2949_v61 = vmul.f32 0.7978846, %v2933_v18  ;;  %v2951_v41 = vmul.f32 0.7978846, %v2935_v16  ;;  %v2937_v36 = vadd.f32 %v2921_v25, %v5131_v35  ;;  %v2939_v38 = vadd.f32 %v2923_v28, %v5134_v37 }
0x14dc   : > { %4306 = vtanh.f32 %v2948_v62  ;;  %v2952_v39 = vmul.f32 0.7978846, %v2936_v31  ;;  %v2954_v15 = vmul.f32 0.7978846, %v2938_v33 }
0x14dd   : > { %4308 = vtanh.f32 %v2950_v30  ;;  %v2953_v23 = vmul.f32 0.7978846, %v2937_v36  ;;  %v2955_v42 = vmul.f32 0.7978846, %v2939_v38 }
0x14de   : > { %4310 = vtanh.f32 %v2949_v61 }
0x14df   : > { %4312 = vtanh.f32 %v2951_v41 }
0x14e0   : > { %4314 = vtanh.f32 %v2952_v39 }
0x14e1   : > { %4316 = vtanh.f32 %v2954_v15 }
0x14e2   : > { %4318 = vtanh.f32 %v2953_v23 }
0x14e3   : > { %4320 = vtanh.f32 %v2955_v42 }
0x14e6   : > { %v4307_v21 = vpop.eup %4306 }
0x14e7   : > { %v4309_v43 = vpop.eup %4308  ;;  %v2980_v34 = vadd.f32 1.0, %v4307_v21 }
0x14e8   : > { %v4311_v26 = vpop.eup %4310  ;;  %v2982_v54 = vadd.f32 1.0, %v4309_v43 }
0x14e9   : > { %v4313_v2 = vpop.eup %4312  ;;  %v2981_v11 = vadd.f32 1.0, %v4311_v26  ;;  %v2996_v45 = vmul.f32 0.5, %v2980_v34 }
0x14ea   : > { %v4315_v49 = vpop.eup %4314  ;;  %v2983_v50 = vadd.f32 1.0, %v4313_v2  ;;  %v2998_v55 = vmul.f32 0.5, %v2982_v54 }
0x14eb   : > { %v4317_v51 = vpop.eup %4316  ;;  %v2984_v29 = vadd.f32 1.0, %v4315_v49  ;;  %v2997_v63 = vmul.f32 0.5, %v2981_v11  ;;  %v3012_v0 = vmul.f32 %v2996_v45, %v5105_v8 }
0x14ec   : > { %v4319_v46 = vpop.eup %4318  ;;  %v2986_v58 = vadd.f32 1.0, %v4317_v51  ;;  %v2999_v20 = vmul.f32 0.5, %v2983_v50  ;;  %v3014_v6 = vmul.f32 %v2998_v55, %v5108_v5 }
0x14ed   : > { %v4321_v57 = vpop.eup %4320  ;;  %v2985_v47 = vadd.f32 1.0, %v4319_v46  ;;  %v3000_v52 = vmul.f32 0.5, %v2984_v29  ;;  %v3013_v56 = vmul.f32 %v2997_v63, %v5111_v40  ;;  %v3702_v40 = vld [vmem:[%s701_s17] ss:$0 sm:$0xff] }
0x14ee   : > { %v2987_v1 = vadd.f32 1.0, %v4321_v57  ;;  %v3002_v48 = vmul.f32 0.5, %v2986_v58  ;;  %v3015_v10 = vmul.f32 %v2999_v20, %v5114_v12 }
0x14ef   : > { %v3001_v53 = vmul.f32 0.5, %v2985_v47  ;;  %v3016_v19 = vmul.f32 %v3000_v52, %v5121_v32 }
0x14f0   : > { %v3003_v22 = vmul.f32 0.5, %v2987_v1  ;;  %v3018_v7 = vmul.f32 %v3002_v48, %v5124_v60 }
0x14f1   : > { %v3017_v27 = vmul.f32 %v3001_v53, %v5131_v35  ;;  %v3024_v9 = vpack.c.bf16 %v3016_v19, %v3012_v0 }
0x14f2   : > { %v3019_v59 = vmul.f32 %v3003_v22, %v5134_v37  ;;  %v3026_v13 = vpack.c.bf16 %v3018_v7, %v3014_v6 }
0x14f3   : > { %v3025_v14 = vpack.c.bf16 %v3017_v27, %v3013_v56 }
0x14f4   : > { %v3027_v8 = vpack.c.bf16 %v3019_v59, %v3015_v10 }
0x14f5   : > { %3331 = vmatprep.mubr.bf16.mxu1 %v3025_v14 }
0x14f6   : > { %3380 = vmatprep.mubr.bf16.mxu0 %v3027_v8  ;;  %3332 = vmatmul.mubr.bf16.gmra.mrb[64].mxu1 %v3024_v9 }
0x14f7   : > { %3381 = vmatmul.mubr.bf16.gmra.mrb[68].mxu0 %v3026_v13 }
0x1539   : > { %v3822_v5 = vpop.f32.mrb[60].mxu1 }
0x153a   : > { %v3850_v32 = vpop.f32.mrb[64].mxu0  ;;  %v3823_v60 = vpop.f32.mrb[61].mxu1 }
0x153b   : > { %v3824_v35 = vadd.f32 %v3823_v60, %v3822_v5  ;;  %v3851_v12 = vpop.f32.mrb[65].mxu0  ;;  %v3825_v37 = vpop.f32.mrb[62].mxu1 }
0x153c   : > { %v3852_v17 = vadd.f32 %v3851_v12, %v3850_v32  ;;  %v3853_v18 = vpop.f32.mrb[66].mxu0  ;;  %v3826_v16 = vpop.f32.mrb[63].mxu1 }
0x153d   : > { %v3326_v25 = vadd.f32 %v3824_v35, %v3702_v40  ;;  %v3827_v28 = vadd.f32 %v3826_v16, %v3825_v37  ;;  %v3854_v62 = vpop.f32.mrb[67].mxu0 }
0x153e   : > { %v3855_v30 = vadd.f32 %v3854_v62, %v3853_v18 }
0x153f   : > { %v3375_v31 = vadd.f32 %v3852_v17, %v3326_v25  ;;  %v3329_v33 = vadd.f32 %v3827_v28, %v3702_v40 }
0x1541   : > { %v3389_v61 = vadd.f32 %v3375_v31, %v4892_v44  ;;  %v3378_v41 = vadd.f32 %v3855_v30, %v3329_v33 }
0x1543   : > { %3393 = vst [vmem:[%s4553_s21] sm:$0xff] %v3389_v61  ;;  %v3390_v36 = vadd.f32 %v3378_v41, %v4895_v24 }
0x1545   : > { %3394 = vst [vmem:[%s4553_s21 + $0x8] sm:$0xff] %v3390_v36 }
0x15c9   : > { %v3828_v38 = vpop.f32.mrb[64].mxu1 }
0x15ca   : > { %v3856_v39 = vpop.f32.mrb[68].mxu0  ;;  %v3829_v15 = vpop.f32.mrb[65].mxu1 }
0x15cb   : > { %v3830_v23 = vadd.f32 %v3829_v15, %v3828_v38  ;;  %v3857_v42 = vpop.f32.mrb[69].mxu0  ;;  %v3831_v21 = vpop.f32.mrb[66].mxu1 }
0x15cc   : > { %v3858_v43 = vadd.f32 %v3857_v42, %v3856_v39  ;;  %v3859_v34 = vpop.f32.mrb[70].mxu0  ;;  %v3832_v26 = vpop.f32.mrb[67].mxu1 }
0x15cd   : > { %v3334_v54 = vadd.f32 %v3830_v23, %v3702_v40  ;;  %v3833_v2 = vadd.f32 %v3832_v26, %v3831_v21  ;;  %v3860_v11 = vpop.f32.mrb[71].mxu0 }
0x15ce   : > { %v3861_v44 = vadd.f32 %v3860_v11, %v3859_v34 }
0x15cf   : > { %v3383_v49 = vadd.f32 %v3858_v43, %v3334_v54  ;;  %v3337_v50 = vadd.f32 %v3833_v2, %v3702_v40 }
0x15d1   : > { %v3391_v24 = vadd.f32 %v3383_v49, %v4915_v3  ;;  %v3386_v51 = vadd.f32 %v3861_v44, %v3337_v50 }
0x15d3   : > { %3395 = vst [vmem:[%s4553_s21 + $0x10] sm:$0xff] %v3391_v24  ;;  %v3392_v29 = vadd.f32 %v3386_v51, %v4921_v4 }
0x15d5   : > { %3396 = vst [vmem:[%s4553_s21 + $0x18] sm:$0xff] %v3392_v29 }
0x15d6 PF: > { %s5240_s24 = sld [smem:[#allocation5_spill]]  ;;  %s5241_s18 = sld [smem:[#allocation3_spill]] }
0x15d7   : > { %s5242_s19 = sld [smem:[#allocation4_spill]]  ;;  %s5243_s20 = sld [smem:[#allocation6_spill]] }
0x15d8   : > { %s5244_s21 = sld [smem:[#allocation7_spill]] }
0x15dc   : > { %s25_s22 = sadd.s32 1, %s5240_s24  }
0x15dd   : > { %p22_p8 = scmp.ge.s32.totalorder %s25_s22, 6  }
0x15df   :  { %24 = sbr.rel (!%p22_p8) target bundleno = 6 (0x6), region = 150 }

</bundles_post_ra>
